<compile_context>
chip_gen: v6e
topology: v6e:2x2x1
jax: 0.10.0
libtpu: 0.0.40
codegen_flags: <defaults>
</compile_context>

<pallas_src>
import numpy as np
import jax
import jax.numpy as jnp
from jax import lax
from jax.experimental import pallas as pl
from jax.experimental.pallas import tpu as pltpu


def _full_spec(shape):
    """Full-array block (single grid step), constant index map."""
    rank = len(shape)
    return pl.BlockSpec(shape, lambda i, _r=rank: (0,) * _r)


def _dot_t(a, b):
    """a @ b.T by contracting the last axis of both (no explicit transpose)."""
    return lax.dot_general(a, b, (((1,), (1,)), ((), ())),
                           preferred_element_type=jnp.float32)


def make_bilstm_attn_kernel(*, num_layers, t_out, Bp, H, Din):
    twoH = 2 * H
    TB = t_out * Bp

    def kernel(*refs):
        # refs: len, x_fwd, x_rev, batch_mask,
        #       [w_in, whh_il, bias_il] * num_layers, w_fc, b_fc, out
        len_ref, xf_ref, xr_ref, bmask_ref = refs[0:4]
        layer_refs = []
        idx = 4
        for _ in range(num_layers):
            layer_refs.append(tuple(refs[idx:idx + 3]))
            idx += 3
        wfc_ref = refs[idx]
        bfc_ref = refs[idx + 1]
        out_ref = refs[idx + 2]

        lengths = len_ref[...]                               # (Bp, 1) int32
        # Hoisted broadcasts / lane masks (JAX does not CSE broadcast_in_dim).
        len_b2 = jnp.broadcast_to(lengths, (Bp, twoH))       # (Bp, 2H) int32
        len_bh = jnp.broadcast_to(lengths, (Bp, H))          # (Bp, H)  int32
        fwd_lane = lax.broadcasted_iota(jnp.int32, (Bp, twoH), 1) < H

        # Per-timestep hidden-state history kept in registers (Python lists).
        hf_rec = [None] * t_out
        hb_rec = [None] * t_out

        for layer in range(num_layers):
            w_in_ref, whh_ref, b_ref = layer_refs[layer]
            w_in = w_in_ref[...]          # bf16 (2*Din | 4H, 8H) gate-interleaved
            whh = whh_ref[...]            # bf16 (2H, 8H) block-diag interleaved
            bias = b_ref[...]             # f32  (1, 8H)

            # ---- hoisted input projection (one slab per layer, off the serial
            # chain). Row block s of gx_slab holds the fwd gates for time s and
            # the bwd gates for time t_out-1-s, in interleaved column layout
            # [i_f i_b f_f f_b g_f g_b o_f o_b]. ----
            if layer == 0:
                xf = xf_ref[...]          # (TB, Din) bf16, time-major
                xr = xr_ref[...]          # (TB, Din) bf16, time-reversed
                gx_slab = (
                    jnp.dot(xf, w_in[0:Din, :],
                            preferred_element_type=jnp.float32)
                    + jnp.dot(xr, w_in[Din:2 * Din, :],
                              preferred_element_type=jnp.float32)
                    + bias)                                  # (TB, 8H) f32
            else:
                hf_slab = jnp.concatenate(hf_rec, axis=0).astype(jnp.bfloat16)
                hb_slab = jnp.concatenate(hb_rec, axis=0).astype(jnp.bfloat16)
                hf_rev = jnp.concatenate(hf_rec[::-1], axis=0).astype(jnp.bfloat16)
                hb_rev = jnp.concatenate(hb_rec[::-1], axis=0).astype(jnp.bfloat16)
                gx_slab = (
                    jnp.dot(hf_slab, w_in[0:H, :],
                            preferred_element_type=jnp.float32)
                    + jnp.dot(hb_slab, w_in[H:2 * H, :],
                              preferred_element_type=jnp.float32)
                    + jnp.dot(hf_rev, w_in[2 * H:3 * H, :],
                              preferred_element_type=jnp.float32)
                    + jnp.dot(hb_rev, w_in[3 * H:4 * H, :],
                              preferred_element_type=jnp.float32)
                    + bias)                                  # (TB, 8H) f32

            # ---- fused fwd+bwd recurrence: one (Bp,2H)@(2H,8H) bf16 matmul per
            # step; state never leaves vregs. ----
            hcat = jnp.zeros((Bp, twoH), jnp.float32)        # [h_f | h_b]
            ccat = jnp.zeros((Bp, twoH), jnp.float32)        # [c_f | c_b]
            for s in range(t_out):
                tb = t_out - 1 - s
                gx = gx_slab[s * Bp:(s + 1) * Bp, :]         # (Bp, 8H), aligned
                gates = gx + jnp.dot(hcat.astype(jnp.bfloat16), whh,
                                     preferred_element_type=jnp.float32)
                i_g = jax.nn.sigmoid(gates[:, 0:2 * H])
                f_g = jax.nn.sigmoid(gates[:, 2 * H:4 * H])
                g_g = jnp.tanh(gates[:, 4 * H:6 * H])
                o_g = jax.nn.sigmoid(gates[:, 6 * H:8 * H])
                c_new = f_g * ccat + i_g * g_g
                h_new = o_g * jnp.tanh(c_new)
                # Packed-sequence semantics: freeze state on padded timesteps.
                # fwd half is at time s, bwd half at time tb.
                step_lane = jnp.where(fwd_lane, jnp.int32(s), jnp.int32(tb))
                mask_cat = len_b2 > step_lane                # (Bp, 2H) bool
                hcat = jnp.where(mask_cat, h_new, hcat)
                ccat = jnp.where(mask_cat, c_new, ccat)
                # Layer outputs (pad_packed: exact zeros at padded positions;
                # bwd state is still its zero init while tb >= len).
                hf_rec[s] = jnp.where(len_bh > s, hcat[:, 0:H], 0.0)
                hb_rec[tb] = hcat[:, H:2 * H]

        # ---- scaled dot-product self-attention + linear head (fused tail).
        # One whole-slab matmul for all batches; cross-batch entries are killed
        # with an additive -1e9 mask; fwd/bwd features never concatenated. ----
        slab_f = jnp.concatenate(hf_rec, axis=0)             # (TB, H) f32
        slab_b = jnp.concatenate(hb_rec, axis=0)             # (TB, H) f32
        scale = 1.0 / float(np.sqrt(2 * H))
        scores = (_dot_t(slab_f, slab_f) + _dot_t(slab_b, slab_b)) * scale
        scores = scores + bmask_ref[...]                     # (TB, TB)
        scores = scores - jnp.max(scores, axis=-1, keepdims=True)
        e = jnp.exp(scores)
        attn = e / jnp.sum(e, axis=-1, keepdims=True)        # exact softmax
        ctx_f = jnp.dot(attn, slab_f, preferred_element_type=jnp.float32)
        ctx_b = jnp.dot(attn, slab_b, preferred_element_type=jnp.float32)
        wfc = wfc_ref[...]                                   # (2H, O) f32
        bfc = bfc_ref[...]                                   # (1, O)  f32
        y = (jnp.dot(ctx_f, wfc[0:H, :], preferred_element_type=jnp.float32)
             + jnp.dot(ctx_b, wfc[H:2 * H, :],
                       preferred_element_type=jnp.float32)
             + bfc)                                          # (TB, O)
        out_ref[...] = y.astype(out_ref.dtype)               # single dense store

    return kernel


# ----------------------------------------------------------------------------
# Wrapper-side weight preparation (pure JAX / XLA, runs once outside kernel).
# ----------------------------------------------------------------------------
def _scatter_gate_cols(w, H, direction):
    """(D, 4H) gate-major [i,f,g,o] -> (D, 8H) with columns placed at the
    interleaved positions of `direction` (0=fwd, 1=bwd), zeros elsewhere."""
    D = w.shape[0]
    z = jnp.zeros((D, H), w.dtype)
    parts = []
    for g in range(4):
        blk = w[:, g * H:(g + 1) * H]
        parts += ([blk, z] if direction == 0 else [z, blk])
    return jnp.concatenate(parts, axis=1)


def prepare_weights(params, num_layers):
    H = params["hidden_dim"]
    prepped = []
    for layer in range(num_layers):
        L = params["layers"][layer]
        wih_f, wih_b = L["wih_f"], L["wih_b"]
        whh_f, whh_b = L["whh_f"], L["whh_b"]
        if layer == 0:
            # rows [0:Din] multiply x(t)  (fwd gates); [Din:2Din] multiply
            # x(t_out-1-t) (bwd gates).
            w_in = jnp.concatenate(
                [_scatter_gate_cols(wih_f, H, 0),
                 _scatter_gate_cols(wih_b, H, 1)], axis=0)
        else:
            # rows multiply [hf(t), hb(t), hf(rev t), hb(rev t)] respectively.
            w_in = jnp.concatenate(
                [_scatter_gate_cols(wih_f[0:H], H, 0),
                 _scatter_gate_cols(wih_f[H:2 * H], H, 0),
                 _scatter_gate_cols(wih_b[0:H], H, 1),
                 _scatter_gate_cols(wih_b[H:2 * H], H, 1)], axis=0)
        whh_il = jnp.concatenate(
            [_scatter_gate_cols(whh_f, H, 0),
             _scatter_gate_cols(whh_b, H, 1)], axis=0)       # (2H, 8H) block-diag
        bias_il = jnp.concatenate(
            [jnp.concatenate([L["b_f"][:, g * H:(g + 1) * H],
                              L["b_b"][:, g * H:(g + 1) * H]], axis=1)
             for g in range(4)], axis=1)                      # (1, 8H)
        prepped.append((w_in.astype(jnp.bfloat16),
                        whh_il.astype(jnp.bfloat16),
                        bias_il.astype(jnp.float32)))
    return prepped


def bilstm_attention_forward(x, lengths, params, num_layers, t_out):
    """x: (B, T, input_dim) batch_first; lengths: (B,) int; returns (B, t_out, O)."""
    B, T, Din = x.shape
    H = params["hidden_dim"]
    O = params["w_fc"].shape[1]
    Bp = int(np.ceil(max(B, 1) / 8)) * 8     # pad batch to f32 sublane tile
    TB = t_out * Bp

    x = x[:, :t_out, :].astype(jnp.float32)  # recurrence only over valid range
    lengths = lengths.astype(jnp.int32)
    if Bp > B:
        x = jnp.pad(x, ((0, Bp - B), (0, 0), (0, 0)))
        lengths = jnp.pad(lengths, (0, Bp - B))
    len_col = lengths.reshape(Bp, 1)

    # Time-major flattening + time reversal done once outside the kernel.
    x_tm = jnp.transpose(x, (1, 0, 2))                        # (t_out, Bp, Din)
    xf = x_tm.reshape(TB, Din).astype(jnp.bfloat16)
    xr = x_tm[::-1].reshape(TB, Din).astype(jnp.bfloat16)

    # Additive attention mask: row/col r = t*Bp + b; -1e9 for different batches.
    bid = np.arange(TB) % Bp
    bmask = jnp.asarray(np.where(bid[:, None] == bid[None, :], 0.0, -1e9),
                        dtype=jnp.float32)

    inputs = [len_col, xf, xr, bmask]
    for w_in, whh, bias in prepare_weights(params, num_layers):
        inputs += [w_in, whh, bias]
    inputs += [params["w_fc"], params["b_fc"]]

    kernel = make_bilstm_attn_kernel(num_layers=num_layers, t_out=t_out,
                                     Bp=Bp, H=H, Din=Din)
    out_flat = pl.pallas_call(
        kernel,
        out_shape=jax.ShapeDtypeStruct((TB, O), jnp.float32),
        grid=(1,),
        in_specs=[_full_spec(a.shape) for a in inputs],
        out_specs=_full_spec((TB, O)),
        compiler_params=pltpu.CompilerParams(
            dimension_semantics=("arbitrary",)),
    )(*inputs)

    # Time-major (TB, O) -> (B, t_out, O); cheap XLA reshape/transpose.
    return out_flat.reshape(t_out, Bp, O).transpose(1, 0, 2)[:B]


def init_params(key, input_dim, hidden_dim, output_dim, num_layers):
    H = hidden_dim
    k = 1.0 / np.sqrt(H)

    def unif(kk, shape):
        return jax.random.uniform(kk, shape, jnp.float32, -k, k)

    layers = []
    for layer in range(num_layers):
        D = input_dim if layer == 0 else 2 * H
        key, *ks = jax.random.split(key, 9)
        layers.append(dict(
            wih_f=unif(ks[0], (D, 4 * H)), whh_f=unif(ks[1], (H, 4 * H)),
            wih_b=unif(ks[2], (D, 4 * H)), whh_b=unif(ks[3], (H, 4 * H)),
            # b_ih + b_hh, each uniform(-k, k) (nn.LSTM init distribution).
            b_f=unif(ks[4], (1, 4 * H)) + unif(ks[5], (1, 4 * H)),
            b_b=unif(ks[6], (1, 4 * H)) + unif(ks[7], (1, 4 * H)),
        ))
    kfc = 1.0 / np.sqrt(2 * H)
    key, k1, k2 = jax.random.split(key, 3)
    return {
        "layers": layers,
        "w_fc": jax.random.uniform(k1, (2 * H, output_dim), jnp.float32, -kfc, kfc),
        "b_fc": jax.random.uniform(k2, (1, output_dim), jnp.float32, -kfc, kfc),
        "hidden_dim": H,
    }


if __name__ == "__main__":
    input_dim, hidden_dim, output_dim = 16, 32, 8
    num_layers = 2          # dropout_rate inactive (eval semantics)
    B, T = 2, 8

    key = jax.random.PRNGKey(0)
    key, kx = jax.random.split(key)
    x = jax.random.normal(kx, (B, T, input_dim), jnp.float32)
    lengths_np = np.array([T, 5], dtype=np.int32)
    lengths = jnp.asarray(lengths_np)
    t_out = int(lengths_np.max())

    params = init_params(key, input_dim, hidden_dim, output_dim, num_layers)

    out = bilstm_attention_forward(x, lengths, params, num_layers, t_out)
    out = jax.block_until_ready(out)
    assert out.shape == (B, t_out, output_dim)
    assert bool(jnp.all(jnp.isfinite(out)))
    print("KERNEL_OK")
</pallas_src>

<mosaic_0001>
module attributes {stable_mosaic.version = 11 : i64} {
  func.func @kernel(%arg0: i32, %arg1: memref<8x1xi32, #tpu.memory_space<vmem>>, %arg2: memref<64x16xbf16, #tpu.memory_space<vmem>>, %arg3: memref<64x16xbf16, #tpu.memory_space<vmem>>, %arg4: memref<64x64xf32, #tpu.memory_space<vmem>>, %arg5: memref<32x256xbf16, #tpu.memory_space<vmem>>, %arg6: memref<64x256xbf16, #tpu.memory_space<vmem>>, %arg7: memref<1x256xf32, #tpu.memory_space<vmem>>, %arg8: memref<128x256xbf16, #tpu.memory_space<vmem>>, %arg9: memref<64x256xbf16, #tpu.memory_space<vmem>>, %arg10: memref<1x256xf32, #tpu.memory_space<vmem>>, %arg11: memref<64x8xf32, #tpu.memory_space<vmem>>, %arg12: memref<1x8xf32, #tpu.memory_space<vmem>>, %arg13: memref<64x8xf32, #tpu.memory_space<vmem>>) attributes {dimension_semantics = [#tpu.dimension_semantics<arbitrary>], iteration_bounds = array<i64: 1>, scalar_prefetch = 0 : i64, scratch_operands = 0 : i64, tpu.core_type = #tpu.core_type<tc>, window_params = [{pipeline_mode = #tpu.pipeline_mode<synchronous>, transform_indices = @transform_0, window_bounds = array<i64: 8, 1>}, {pipeline_mode = #tpu.pipeline_mode<synchronous>, transform_indices = @transform_1, window_bounds = array<i64: 64, 16>}, {pipeline_mode = #tpu.pipeline_mode<synchronous>, transform_indices = @transform_2, window_bounds = array<i64: 64, 16>}, {pipeline_mode = #tpu.pipeline_mode<synchronous>, transform_indices = @transform_3, window_bounds = array<i64: 64, 64>}, {pipeline_mode = #tpu.pipeline_mode<synchronous>, transform_indices = @transform_4, window_bounds = array<i64: 32, 256>}, {pipeline_mode = #tpu.pipeline_mode<synchronous>, transform_indices = @transform_5, window_bounds = array<i64: 64, 256>}, {pipeline_mode = #tpu.pipeline_mode<synchronous>, transform_indices = @transform_6, window_bounds = array<i64: 1, 256>}, {pipeline_mode = #tpu.pipeline_mode<synchronous>, transform_indices = @transform_7, window_bounds = array<i64: 128, 256>}, {pipeline_mode = #tpu.pipeline_mode<synchronous>, transform_indices = @transform_8, window_bounds = array<i64: 64, 256>}, {pipeline_mode = #tpu.pipeline_mode<synchronous>, transform_indices = @transform_9, window_bounds = array<i64: 1, 256>}, {pipeline_mode = #tpu.pipeline_mode<synchronous>, transform_indices = @transform_10, window_bounds = array<i64: 64, 8>}, {pipeline_mode = #tpu.pipeline_mode<synchronous>, transform_indices = @transform_11, window_bounds = array<i64: 1, 8>}, {pipeline_mode = #tpu.pipeline_mode<synchronous>, transform_indices = @transform_12, window_bounds = array<i64: 64, 8>}]} {
    %c0 = arith.constant 0 : index
    %c0_0 = arith.constant 0 : index
    %0 = vector.load %arg1[%c0, %c0_0] : memref<8x1xi32, #tpu.memory_space<vmem>>, vector<8x1xi32>
    %1 = vector.shape_cast %0 : vector<8x1xi32> to vector<8x1xi32>
    %2 = vector.broadcast %1 : vector<8x1xi32> to vector<8x64xi32>
    %3 = vector.shape_cast %0 : vector<8x1xi32> to vector<8x1xi32>
    %4 = vector.broadcast %3 : vector<8x1xi32> to vector<8x32xi32>
    %5 = tpu.iota {dimensions = array<i32: 1>} : vector<8x64xi32>
    %c32_i32 = arith.constant 32 : i32
    %6 = vector.broadcast %c32_i32 : i32 to vector<8x64xi32>
    %7 = arith.cmpi slt, %5, %6 : vector<8x64xi32>
    %c0_1 = arith.constant 0 : index
    %c0_2 = arith.constant 0 : index
    %8 = vector.load %arg5[%c0_1, %c0_2] : memref<32x256xbf16, #tpu.memory_space<vmem>>, vector<32x256xbf16>
    %c0_3 = arith.constant 0 : index
    %c0_4 = arith.constant 0 : index
    %9 = vector.load %arg6[%c0_3, %c0_4] : memref<64x256xbf16, #tpu.memory_space<vmem>>, vector<64x256xbf16>
    %c0_5 = arith.constant 0 : index
    %c0_6 = arith.constant 0 : index
    %10 = vector.load %arg7[%c0_5, %c0_6] : memref<1x256xf32, #tpu.memory_space<vmem>>, vector<1x256xf32>
    %c0_7 = arith.constant 0 : index
    %c0_8 = arith.constant 0 : index
    %11 = vector.load %arg2[%c0_7, %c0_8] : memref<64x16xbf16, #tpu.memory_space<vmem>>, vector<64x16xbf16>
    %c0_9 = arith.constant 0 : index
    %c0_10 = arith.constant 0 : index
    %12 = vector.load %arg3[%c0_9, %c0_10] : memref<64x16xbf16, #tpu.memory_space<vmem>>, vector<64x16xbf16>
    %13 = vector.extract_strided_slice %8 {offsets = [0, 0], sizes = [16, 256], strides = [1, 1]} : vector<32x256xbf16> to vector<16x256xbf16>
    %cst = arith.constant dense<0.000000e+00> : vector<64x256xf32>
    %14 = tpu.matmul %11, %13, %cst {dimension_numbers = #tpu.dot_dimension_numbers<[1], [0], [0], [1], [0, 0, 1, 1], [], []>} : vector<64x16xbf16>, vector<16x256xbf16>, vector<64x256xf32> -> vector<64x256xf32>
    %15 = vector.extract_strided_slice %8 {offsets = [16, 0], sizes = [16, 256], strides = [1, 1]} : vector<32x256xbf16> to vector<16x256xbf16>
    %cst_11 = arith.constant dense<0.000000e+00> : vector<64x256xf32>
    %16 = tpu.matmul %12, %15, %cst_11 {dimension_numbers = #tpu.dot_dimension_numbers<[1], [0], [0], [1], [0, 0, 1, 1], [], []>} : vector<64x16xbf16>, vector<16x256xbf16>, vector<64x256xf32> -> vector<64x256xf32>
    %17 = arith.addf %14, %16 : vector<64x256xf32>
    %18 = vector.broadcast %10 : vector<1x256xf32> to vector<64x256xf32>
    %19 = arith.addf %17, %18 : vector<64x256xf32>
    %cst_12 = arith.constant 0.000000e+00 : f32
    %20 = vector.broadcast %cst_12 : f32 to vector<8x64xf32>
    %cst_13 = arith.constant 0.000000e+00 : f32
    %21 = vector.broadcast %cst_13 : f32 to vector<8x64xf32>
    %22 = vector.extract_strided_slice %19 {offsets = [0, 0], sizes = [8, 256], strides = [1, 1]} : vector<64x256xf32> to vector<8x256xf32>
    %23 = arith.truncf %20 : vector<8x64xf32> to vector<8x64xbf16>
    %cst_14 = arith.constant dense<0.000000e+00> : vector<8x256xf32>
    %24 = tpu.matmul %23, %9, %cst_14 {dimension_numbers = #tpu.dot_dimension_numbers<[1], [0], [0], [1], [0, 0, 1, 1], [], []>} : vector<8x64xbf16>, vector<64x256xbf16>, vector<8x256xf32> -> vector<8x256xf32>
    %25 = arith.addf %22, %24 : vector<8x256xf32>
    %26 = vector.extract_strided_slice %25 {offsets = [0, 0], sizes = [8, 64], strides = [1, 1]} : vector<8x256xf32> to vector<8x64xf32>
    %27 = arith.negf %26 : vector<8x64xf32>
    %28 = math.exp %27 : vector<8x64xf32>
    %cst_15 = arith.constant 1.000000e+00 : f32
    %29 = vector.broadcast %cst_15 : f32 to vector<8x64xf32>
    %30 = arith.addf %29, %28 : vector<8x64xf32>
    %31 = arith.divf %29, %30 : vector<8x64xf32>
    %32 = vector.extract_strided_slice %25 {offsets = [0, 64], sizes = [8, 64], strides = [1, 1]} : vector<8x256xf32> to vector<8x64xf32>
    %33 = arith.negf %32 : vector<8x64xf32>
    %34 = math.exp %33 : vector<8x64xf32>
    %cst_16 = arith.constant 1.000000e+00 : f32
    %35 = vector.broadcast %cst_16 : f32 to vector<8x64xf32>
    %36 = arith.addf %35, %34 : vector<8x64xf32>
    %37 = arith.divf %35, %36 : vector<8x64xf32>
    %38 = vector.extract_strided_slice %25 {offsets = [0, 128], sizes = [8, 64], strides = [1, 1]} : vector<8x256xf32> to vector<8x64xf32>
    %39 = math.tanh %38 : vector<8x64xf32>
    %40 = vector.extract_strided_slice %25 {offsets = [0, 192], sizes = [8, 64], strides = [1, 1]} : vector<8x256xf32> to vector<8x64xf32>
    %41 = arith.negf %40 : vector<8x64xf32>
    %42 = math.exp %41 : vector<8x64xf32>
    %cst_17 = arith.constant 1.000000e+00 : f32
    %43 = vector.broadcast %cst_17 : f32 to vector<8x64xf32>
    %44 = arith.addf %43, %42 : vector<8x64xf32>
    %45 = arith.divf %43, %44 : vector<8x64xf32>
    %46 = arith.mulf %37, %21 : vector<8x64xf32>
    %47 = arith.mulf %31, %39 : vector<8x64xf32>
    %48 = arith.addf %46, %47 : vector<8x64xf32>
    %49 = math.tanh %48 : vector<8x64xf32>
    %50 = arith.mulf %45, %49 : vector<8x64xf32>
    %c0_i32 = arith.constant 0 : i32
    %c7_i32 = arith.constant 7 : i32
    %51 = vector.broadcast %c0_i32 : i32 to vector<8x64xi32>
    %52 = vector.broadcast %c7_i32 : i32 to vector<8x64xi32>
    %53 = arith.select %7, %51, %52 : vector<8x64xi1>, vector<8x64xi32>
    %54 = arith.cmpi sgt, %2, %53 : vector<8x64xi32>
    %55 = arith.select %54, %50, %20 : vector<8x64xi1>, vector<8x64xf32>
    %56 = arith.select %54, %48, %21 : vector<8x64xi1>, vector<8x64xf32>
    %c0_i32_18 = arith.constant 0 : i32
    %57 = vector.broadcast %c0_i32_18 : i32 to vector<8x32xi32>
    %58 = arith.cmpi sgt, %4, %57 : vector<8x32xi32>
    %59 = vector.extract_strided_slice %55 {offsets = [0, 0], sizes = [8, 32], strides = [1, 1]} : vector<8x64xf32> to vector<8x32xf32>
    %cst_19 = arith.constant 0.000000e+00 : f32
    %60 = vector.broadcast %cst_19 : f32 to vector<8x32xf32>
    %61 = arith.select %58, %59, %60 : vector<8x32xi1>, vector<8x32xf32>
    %62 = vector.extract_strided_slice %55 {offsets = [0, 32], sizes = [8, 32], strides = [1, 1]} : vector<8x64xf32> to vector<8x32xf32>
    %63 = vector.extract_strided_slice %19 {offsets = [8, 0], sizes = [8, 256], strides = [1, 1]} : vector<64x256xf32> to vector<8x256xf32>
    %64 = arith.truncf %55 : vector<8x64xf32> to vector<8x64xbf16>
    %cst_20 = arith.constant dense<0.000000e+00> : vector<8x256xf32>
    %65 = tpu.matmul %64, %9, %cst_20 {dimension_numbers = #tpu.dot_dimension_numbers<[1], [0], [0], [1], [0, 0, 1, 1], [], []>} : vector<8x64xbf16>, vector<64x256xbf16>, vector<8x256xf32> -> vector<8x256xf32>
    %66 = arith.addf %63, %65 : vector<8x256xf32>
    %67 = vector.extract_strided_slice %66 {offsets = [0, 0], sizes = [8, 64], strides = [1, 1]} : vector<8x256xf32> to vector<8x64xf32>
    %68 = arith.negf %67 : vector<8x64xf32>
    %69 = math.exp %68 : vector<8x64xf32>
    %cst_21 = arith.constant 1.000000e+00 : f32
    %70 = vector.broadcast %cst_21 : f32 to vector<8x64xf32>
    %71 = arith.addf %70, %69 : vector<8x64xf32>
    %72 = arith.divf %70, %71 : vector<8x64xf32>
    %73 = vector.extract_strided_slice %66 {offsets = [0, 64], sizes = [8, 64], strides = [1, 1]} : vector<8x256xf32> to vector<8x64xf32>
    %74 = arith.negf %73 : vector<8x64xf32>
    %75 = math.exp %74 : vector<8x64xf32>
    %cst_22 = arith.constant 1.000000e+00 : f32
    %76 = vector.broadcast %cst_22 : f32 to vector<8x64xf32>
    %77 = arith.addf %76, %75 : vector<8x64xf32>
    %78 = arith.divf %76, %77 : vector<8x64xf32>
    %79 = vector.extract_strided_slice %66 {offsets = [0, 128], sizes = [8, 64], strides = [1, 1]} : vector<8x256xf32> to vector<8x64xf32>
    %80 = math.tanh %79 : vector<8x64xf32>
    %81 = vector.extract_strided_slice %66 {offsets = [0, 192], sizes = [8, 64], strides = [1, 1]} : vector<8x256xf32> to vector<8x64xf32>
    %82 = arith.negf %81 : vector<8x64xf32>
    %83 = math.exp %82 : vector<8x64xf32>
    %cst_23 = arith.constant 1.000000e+00 : f32
    %84 = vector.broadcast %cst_23 : f32 to vector<8x64xf32>
    %85 = arith.addf %84, %83 : vector<8x64xf32>
    %86 = arith.divf %84, %85 : vector<8x64xf32>
    %87 = arith.mulf %78, %56 : vector<8x64xf32>
    %88 = arith.mulf %72, %80 : vector<8x64xf32>
    %89 = arith.addf %87, %88 : vector<8x64xf32>
    %90 = math.tanh %89 : vector<8x64xf32>
    %91 = arith.mulf %86, %90 : vector<8x64xf32>
    %c1_i32 = arith.constant 1 : i32
    %c6_i32 = arith.constant 6 : i32
    %92 = vector.broadcast %c1_i32 : i32 to vector<8x64xi32>
    %93 = vector.broadcast %c6_i32 : i32 to vector<8x64xi32>
    %94 = arith.select %7, %92, %93 : vector<8x64xi1>, vector<8x64xi32>
    %95 = arith.cmpi sgt, %2, %94 : vector<8x64xi32>
    %96 = arith.select %95, %91, %55 : vector<8x64xi1>, vector<8x64xf32>
    %97 = arith.select %95, %89, %56 : vector<8x64xi1>, vector<8x64xf32>
    %c1_i32_24 = arith.constant 1 : i32
    %98 = vector.broadcast %c1_i32_24 : i32 to vector<8x32xi32>
    %99 = arith.cmpi sgt, %4, %98 : vector<8x32xi32>
    %100 = vector.extract_strided_slice %96 {offsets = [0, 0], sizes = [8, 32], strides = [1, 1]} : vector<8x64xf32> to vector<8x32xf32>
    %cst_25 = arith.constant 0.000000e+00 : f32
    %101 = vector.broadcast %cst_25 : f32 to vector<8x32xf32>
    %102 = arith.select %99, %100, %101 : vector<8x32xi1>, vector<8x32xf32>
    %103 = vector.extract_strided_slice %96 {offsets = [0, 32], sizes = [8, 32], strides = [1, 1]} : vector<8x64xf32> to vector<8x32xf32>
    %104 = vector.extract_strided_slice %19 {offsets = [16, 0], sizes = [8, 256], strides = [1, 1]} : vector<64x256xf32> to vector<8x256xf32>
    %105 = arith.truncf %96 : vector<8x64xf32> to vector<8x64xbf16>
    %cst_26 = arith.constant dense<0.000000e+00> : vector<8x256xf32>
    %106 = tpu.matmul %105, %9, %cst_26 {dimension_numbers = #tpu.dot_dimension_numbers<[1], [0], [0], [1], [0, 0, 1, 1], [], []>} : vector<8x64xbf16>, vector<64x256xbf16>, vector<8x256xf32> -> vector<8x256xf32>
    %107 = arith.addf %104, %106 : vector<8x256xf32>
    %108 = vector.extract_strided_slice %107 {offsets = [0, 0], sizes = [8, 64], strides = [1, 1]} : vector<8x256xf32> to vector<8x64xf32>
    %109 = arith.negf %108 : vector<8x64xf32>
    %110 = math.exp %109 : vector<8x64xf32>
    %cst_27 = arith.constant 1.000000e+00 : f32
    %111 = vector.broadcast %cst_27 : f32 to vector<8x64xf32>
    %112 = arith.addf %111, %110 : vector<8x64xf32>
    %113 = arith.divf %111, %112 : vector<8x64xf32>
    %114 = vector.extract_strided_slice %107 {offsets = [0, 64], sizes = [8, 64], strides = [1, 1]} : vector<8x256xf32> to vector<8x64xf32>
    %115 = arith.negf %114 : vector<8x64xf32>
    %116 = math.exp %115 : vector<8x64xf32>
    %cst_28 = arith.constant 1.000000e+00 : f32
    %117 = vector.broadcast %cst_28 : f32 to vector<8x64xf32>
    %118 = arith.addf %117, %116 : vector<8x64xf32>
    %119 = arith.divf %117, %118 : vector<8x64xf32>
    %120 = vector.extract_strided_slice %107 {offsets = [0, 128], sizes = [8, 64], strides = [1, 1]} : vector<8x256xf32> to vector<8x64xf32>
    %121 = math.tanh %120 : vector<8x64xf32>
    %122 = vector.extract_strided_slice %107 {offsets = [0, 192], sizes = [8, 64], strides = [1, 1]} : vector<8x256xf32> to vector<8x64xf32>
    %123 = arith.negf %122 : vector<8x64xf32>
    %124 = math.exp %123 : vector<8x64xf32>
    %cst_29 = arith.constant 1.000000e+00 : f32
    %125 = vector.broadcast %cst_29 : f32 to vector<8x64xf32>
    %126 = arith.addf %125, %124 : vector<8x64xf32>
    %127 = arith.divf %125, %126 : vector<8x64xf32>
    %128 = arith.mulf %119, %97 : vector<8x64xf32>
    %129 = arith.mulf %113, %121 : vector<8x64xf32>
    %130 = arith.addf %128, %129 : vector<8x64xf32>
    %131 = math.tanh %130 : vector<8x64xf32>
    %132 = arith.mulf %127, %131 : vector<8x64xf32>
    %c2_i32 = arith.constant 2 : i32
    %c5_i32 = arith.constant 5 : i32
    %133 = vector.broadcast %c2_i32 : i32 to vector<8x64xi32>
    %134 = vector.broadcast %c5_i32 : i32 to vector<8x64xi32>
    %135 = arith.select %7, %133, %134 : vector<8x64xi1>, vector<8x64xi32>
    %136 = arith.cmpi sgt, %2, %135 : vector<8x64xi32>
    %137 = arith.select %136, %132, %96 : vector<8x64xi1>, vector<8x64xf32>
    %138 = arith.select %136, %130, %97 : vector<8x64xi1>, vector<8x64xf32>
    %c2_i32_30 = arith.constant 2 : i32
    %139 = vector.broadcast %c2_i32_30 : i32 to vector<8x32xi32>
    %140 = arith.cmpi sgt, %4, %139 : vector<8x32xi32>
    %141 = vector.extract_strided_slice %137 {offsets = [0, 0], sizes = [8, 32], strides = [1, 1]} : vector<8x64xf32> to vector<8x32xf32>
    %cst_31 = arith.constant 0.000000e+00 : f32
    %142 = vector.broadcast %cst_31 : f32 to vector<8x32xf32>
    %143 = arith.select %140, %141, %142 : vector<8x32xi1>, vector<8x32xf32>
    %144 = vector.extract_strided_slice %137 {offsets = [0, 32], sizes = [8, 32], strides = [1, 1]} : vector<8x64xf32> to vector<8x32xf32>
    %145 = vector.extract_strided_slice %19 {offsets = [24, 0], sizes = [8, 256], strides = [1, 1]} : vector<64x256xf32> to vector<8x256xf32>
    %146 = arith.truncf %137 : vector<8x64xf32> to vector<8x64xbf16>
    %cst_32 = arith.constant dense<0.000000e+00> : vector<8x256xf32>
    %147 = tpu.matmul %146, %9, %cst_32 {dimension_numbers = #tpu.dot_dimension_numbers<[1], [0], [0], [1], [0, 0, 1, 1], [], []>} : vector<8x64xbf16>, vector<64x256xbf16>, vector<8x256xf32> -> vector<8x256xf32>
    %148 = arith.addf %145, %147 : vector<8x256xf32>
    %149 = vector.extract_strided_slice %148 {offsets = [0, 0], sizes = [8, 64], strides = [1, 1]} : vector<8x256xf32> to vector<8x64xf32>
    %150 = arith.negf %149 : vector<8x64xf32>
    %151 = math.exp %150 : vector<8x64xf32>
    %cst_33 = arith.constant 1.000000e+00 : f32
    %152 = vector.broadcast %cst_33 : f32 to vector<8x64xf32>
    %153 = arith.addf %152, %151 : vector<8x64xf32>
    %154 = arith.divf %152, %153 : vector<8x64xf32>
    %155 = vector.extract_strided_slice %148 {offsets = [0, 64], sizes = [8, 64], strides = [1, 1]} : vector<8x256xf32> to vector<8x64xf32>
    %156 = arith.negf %155 : vector<8x64xf32>
    %157 = math.exp %156 : vector<8x64xf32>
    %cst_34 = arith.constant 1.000000e+00 : f32
    %158 = vector.broadcast %cst_34 : f32 to vector<8x64xf32>
    %159 = arith.addf %158, %157 : vector<8x64xf32>
    %160 = arith.divf %158, %159 : vector<8x64xf32>
    %161 = vector.extract_strided_slice %148 {offsets = [0, 128], sizes = [8, 64], strides = [1, 1]} : vector<8x256xf32> to vector<8x64xf32>
    %162 = math.tanh %161 : vector<8x64xf32>
    %163 = vector.extract_strided_slice %148 {offsets = [0, 192], sizes = [8, 64], strides = [1, 1]} : vector<8x256xf32> to vector<8x64xf32>
    %164 = arith.negf %163 : vector<8x64xf32>
    %165 = math.exp %164 : vector<8x64xf32>
    %cst_35 = arith.constant 1.000000e+00 : f32
    %166 = vector.broadcast %cst_35 : f32 to vector<8x64xf32>
    %167 = arith.addf %166, %165 : vector<8x64xf32>
    %168 = arith.divf %166, %167 : vector<8x64xf32>
    %169 = arith.mulf %160, %138 : vector<8x64xf32>
    %170 = arith.mulf %154, %162 : vector<8x64xf32>
    %171 = arith.addf %169, %170 : vector<8x64xf32>
    %172 = math.tanh %171 : vector<8x64xf32>
    %173 = arith.mulf %168, %172 : vector<8x64xf32>
    %c3_i32 = arith.constant 3 : i32
    %c4_i32 = arith.constant 4 : i32
    %174 = vector.broadcast %c3_i32 : i32 to vector<8x64xi32>
    %175 = vector.broadcast %c4_i32 : i32 to vector<8x64xi32>
    %176 = arith.select %7, %174, %175 : vector<8x64xi1>, vector<8x64xi32>
    %177 = arith.cmpi sgt, %2, %176 : vector<8x64xi32>
    %178 = arith.select %177, %173, %137 : vector<8x64xi1>, vector<8x64xf32>
    %179 = arith.select %177, %171, %138 : vector<8x64xi1>, vector<8x64xf32>
    %c3_i32_36 = arith.constant 3 : i32
    %180 = vector.broadcast %c3_i32_36 : i32 to vector<8x32xi32>
    %181 = arith.cmpi sgt, %4, %180 : vector<8x32xi32>
    %182 = vector.extract_strided_slice %178 {offsets = [0, 0], sizes = [8, 32], strides = [1, 1]} : vector<8x64xf32> to vector<8x32xf32>
    %cst_37 = arith.constant 0.000000e+00 : f32
    %183 = vector.broadcast %cst_37 : f32 to vector<8x32xf32>
    %184 = arith.select %181, %182, %183 : vector<8x32xi1>, vector<8x32xf32>
    %185 = vector.extract_strided_slice %178 {offsets = [0, 32], sizes = [8, 32], strides = [1, 1]} : vector<8x64xf32> to vector<8x32xf32>
    %186 = vector.extract_strided_slice %19 {offsets = [32, 0], sizes = [8, 256], strides = [1, 1]} : vector<64x256xf32> to vector<8x256xf32>
    %187 = arith.truncf %178 : vector<8x64xf32> to vector<8x64xbf16>
    %cst_38 = arith.constant dense<0.000000e+00> : vector<8x256xf32>
    %188 = tpu.matmul %187, %9, %cst_38 {dimension_numbers = #tpu.dot_dimension_numbers<[1], [0], [0], [1], [0, 0, 1, 1], [], []>} : vector<8x64xbf16>, vector<64x256xbf16>, vector<8x256xf32> -> vector<8x256xf32>
    %189 = arith.addf %186, %188 : vector<8x256xf32>
    %190 = vector.extract_strided_slice %189 {offsets = [0, 0], sizes = [8, 64], strides = [1, 1]} : vector<8x256xf32> to vector<8x64xf32>
    %191 = arith.negf %190 : vector<8x64xf32>
    %192 = math.exp %191 : vector<8x64xf32>
    %cst_39 = arith.constant 1.000000e+00 : f32
    %193 = vector.broadcast %cst_39 : f32 to vector<8x64xf32>
    %194 = arith.addf %193, %192 : vector<8x64xf32>
    %195 = arith.divf %193, %194 : vector<8x64xf32>
    %196 = vector.extract_strided_slice %189 {offsets = [0, 64], sizes = [8, 64], strides = [1, 1]} : vector<8x256xf32> to vector<8x64xf32>
    %197 = arith.negf %196 : vector<8x64xf32>
    %198 = math.exp %197 : vector<8x64xf32>
    %cst_40 = arith.constant 1.000000e+00 : f32
    %199 = vector.broadcast %cst_40 : f32 to vector<8x64xf32>
    %200 = arith.addf %199, %198 : vector<8x64xf32>
    %201 = arith.divf %199, %200 : vector<8x64xf32>
    %202 = vector.extract_strided_slice %189 {offsets = [0, 128], sizes = [8, 64], strides = [1, 1]} : vector<8x256xf32> to vector<8x64xf32>
    %203 = math.tanh %202 : vector<8x64xf32>
    %204 = vector.extract_strided_slice %189 {offsets = [0, 192], sizes = [8, 64], strides = [1, 1]} : vector<8x256xf32> to vector<8x64xf32>
    %205 = arith.negf %204 : vector<8x64xf32>
    %206 = math.exp %205 : vector<8x64xf32>
    %cst_41 = arith.constant 1.000000e+00 : f32
    %207 = vector.broadcast %cst_41 : f32 to vector<8x64xf32>
    %208 = arith.addf %207, %206 : vector<8x64xf32>
    %209 = arith.divf %207, %208 : vector<8x64xf32>
    %210 = arith.mulf %201, %179 : vector<8x64xf32>
    %211 = arith.mulf %195, %203 : vector<8x64xf32>
    %212 = arith.addf %210, %211 : vector<8x64xf32>
    %213 = math.tanh %212 : vector<8x64xf32>
    %214 = arith.mulf %209, %213 : vector<8x64xf32>
    %c4_i32_42 = arith.constant 4 : i32
    %c3_i32_43 = arith.constant 3 : i32
    %215 = vector.broadcast %c4_i32_42 : i32 to vector<8x64xi32>
    %216 = vector.broadcast %c3_i32_43 : i32 to vector<8x64xi32>
    %217 = arith.select %7, %215, %216 : vector<8x64xi1>, vector<8x64xi32>
    %218 = arith.cmpi sgt, %2, %217 : vector<8x64xi32>
    %219 = arith.select %218, %214, %178 : vector<8x64xi1>, vector<8x64xf32>
    %220 = arith.select %218, %212, %179 : vector<8x64xi1>, vector<8x64xf32>
    %c4_i32_44 = arith.constant 4 : i32
    %221 = vector.broadcast %c4_i32_44 : i32 to vector<8x32xi32>
    %222 = arith.cmpi sgt, %4, %221 : vector<8x32xi32>
    %223 = vector.extract_strided_slice %219 {offsets = [0, 0], sizes = [8, 32], strides = [1, 1]} : vector<8x64xf32> to vector<8x32xf32>
    %cst_45 = arith.constant 0.000000e+00 : f32
    %224 = vector.broadcast %cst_45 : f32 to vector<8x32xf32>
    %225 = arith.select %222, %223, %224 : vector<8x32xi1>, vector<8x32xf32>
    %226 = vector.extract_strided_slice %219 {offsets = [0, 32], sizes = [8, 32], strides = [1, 1]} : vector<8x64xf32> to vector<8x32xf32>
    %227 = vector.extract_strided_slice %19 {offsets = [40, 0], sizes = [8, 256], strides = [1, 1]} : vector<64x256xf32> to vector<8x256xf32>
    %228 = arith.truncf %219 : vector<8x64xf32> to vector<8x64xbf16>
    %cst_46 = arith.constant dense<0.000000e+00> : vector<8x256xf32>
    %229 = tpu.matmul %228, %9, %cst_46 {dimension_numbers = #tpu.dot_dimension_numbers<[1], [0], [0], [1], [0, 0, 1, 1], [], []>} : vector<8x64xbf16>, vector<64x256xbf16>, vector<8x256xf32> -> vector<8x256xf32>
    %230 = arith.addf %227, %229 : vector<8x256xf32>
    %231 = vector.extract_strided_slice %230 {offsets = [0, 0], sizes = [8, 64], strides = [1, 1]} : vector<8x256xf32> to vector<8x64xf32>
    %232 = arith.negf %231 : vector<8x64xf32>
    %233 = math.exp %232 : vector<8x64xf32>
    %cst_47 = arith.constant 1.000000e+00 : f32
    %234 = vector.broadcast %cst_47 : f32 to vector<8x64xf32>
    %235 = arith.addf %234, %233 : vector<8x64xf32>
    %236 = arith.divf %234, %235 : vector<8x64xf32>
    %237 = vector.extract_strided_slice %230 {offsets = [0, 64], sizes = [8, 64], strides = [1, 1]} : vector<8x256xf32> to vector<8x64xf32>
    %238 = arith.negf %237 : vector<8x64xf32>
    %239 = math.exp %238 : vector<8x64xf32>
    %cst_48 = arith.constant 1.000000e+00 : f32
    %240 = vector.broadcast %cst_48 : f32 to vector<8x64xf32>
    %241 = arith.addf %240, %239 : vector<8x64xf32>
    %242 = arith.divf %240, %241 : vector<8x64xf32>
    %243 = vector.extract_strided_slice %230 {offsets = [0, 128], sizes = [8, 64], strides = [1, 1]} : vector<8x256xf32> to vector<8x64xf32>
    %244 = math.tanh %243 : vector<8x64xf32>
    %245 = vector.extract_strided_slice %230 {offsets = [0, 192], sizes = [8, 64], strides = [1, 1]} : vector<8x256xf32> to vector<8x64xf32>
    %246 = arith.negf %245 : vector<8x64xf32>
    %247 = math.exp %246 : vector<8x64xf32>
    %cst_49 = arith.constant 1.000000e+00 : f32
    %248 = vector.broadcast %cst_49 : f32 to vector<8x64xf32>
    %249 = arith.addf %248, %247 : vector<8x64xf32>
    %250 = arith.divf %248, %249 : vector<8x64xf32>
    %251 = arith.mulf %242, %220 : vector<8x64xf32>
    %252 = arith.mulf %236, %244 : vector<8x64xf32>
    %253 = arith.addf %251, %252 : vector<8x64xf32>
    %254 = math.tanh %253 : vector<8x64xf32>
    %255 = arith.mulf %250, %254 : vector<8x64xf32>
    %c5_i32_50 = arith.constant 5 : i32
    %c2_i32_51 = arith.constant 2 : i32
    %256 = vector.broadcast %c5_i32_50 : i32 to vector<8x64xi32>
    %257 = vector.broadcast %c2_i32_51 : i32 to vector<8x64xi32>
    %258 = arith.select %7, %256, %257 : vector<8x64xi1>, vector<8x64xi32>
    %259 = arith.cmpi sgt, %2, %258 : vector<8x64xi32>
    %260 = arith.select %259, %255, %219 : vector<8x64xi1>, vector<8x64xf32>
    %261 = arith.select %259, %253, %220 : vector<8x64xi1>, vector<8x64xf32>
    %c5_i32_52 = arith.constant 5 : i32
    %262 = vector.broadcast %c5_i32_52 : i32 to vector<8x32xi32>
    %263 = arith.cmpi sgt, %4, %262 : vector<8x32xi32>
    %264 = vector.extract_strided_slice %260 {offsets = [0, 0], sizes = [8, 32], strides = [1, 1]} : vector<8x64xf32> to vector<8x32xf32>
    %cst_53 = arith.constant 0.000000e+00 : f32
    %265 = vector.broadcast %cst_53 : f32 to vector<8x32xf32>
    %266 = arith.select %263, %264, %265 : vector<8x32xi1>, vector<8x32xf32>
    %267 = vector.extract_strided_slice %260 {offsets = [0, 32], sizes = [8, 32], strides = [1, 1]} : vector<8x64xf32> to vector<8x32xf32>
    %268 = vector.extract_strided_slice %19 {offsets = [48, 0], sizes = [8, 256], strides = [1, 1]} : vector<64x256xf32> to vector<8x256xf32>
    %269 = arith.truncf %260 : vector<8x64xf32> to vector<8x64xbf16>
    %cst_54 = arith.constant dense<0.000000e+00> : vector<8x256xf32>
    %270 = tpu.matmul %269, %9, %cst_54 {dimension_numbers = #tpu.dot_dimension_numbers<[1], [0], [0], [1], [0, 0, 1, 1], [], []>} : vector<8x64xbf16>, vector<64x256xbf16>, vector<8x256xf32> -> vector<8x256xf32>
    %271 = arith.addf %268, %270 : vector<8x256xf32>
    %272 = vector.extract_strided_slice %271 {offsets = [0, 0], sizes = [8, 64], strides = [1, 1]} : vector<8x256xf32> to vector<8x64xf32>
    %273 = arith.negf %272 : vector<8x64xf32>
    %274 = math.exp %273 : vector<8x64xf32>
    %cst_55 = arith.constant 1.000000e+00 : f32
    %275 = vector.broadcast %cst_55 : f32 to vector<8x64xf32>
    %276 = arith.addf %275, %274 : vector<8x64xf32>
    %277 = arith.divf %275, %276 : vector<8x64xf32>
    %278 = vector.extract_strided_slice %271 {offsets = [0, 64], sizes = [8, 64], strides = [1, 1]} : vector<8x256xf32> to vector<8x64xf32>
    %279 = arith.negf %278 : vector<8x64xf32>
    %280 = math.exp %279 : vector<8x64xf32>
    %cst_56 = arith.constant 1.000000e+00 : f32
    %281 = vector.broadcast %cst_56 : f32 to vector<8x64xf32>
    %282 = arith.addf %281, %280 : vector<8x64xf32>
    %283 = arith.divf %281, %282 : vector<8x64xf32>
    %284 = vector.extract_strided_slice %271 {offsets = [0, 128], sizes = [8, 64], strides = [1, 1]} : vector<8x256xf32> to vector<8x64xf32>
    %285 = math.tanh %284 : vector<8x64xf32>
    %286 = vector.extract_strided_slice %271 {offsets = [0, 192], sizes = [8, 64], strides = [1, 1]} : vector<8x256xf32> to vector<8x64xf32>
    %287 = arith.negf %286 : vector<8x64xf32>
    %288 = math.exp %287 : vector<8x64xf32>
    %cst_57 = arith.constant 1.000000e+00 : f32
    %289 = vector.broadcast %cst_57 : f32 to vector<8x64xf32>
    %290 = arith.addf %289, %288 : vector<8x64xf32>
    %291 = arith.divf %289, %290 : vector<8x64xf32>
    %292 = arith.mulf %283, %261 : vector<8x64xf32>
    %293 = arith.mulf %277, %285 : vector<8x64xf32>
    %294 = arith.addf %292, %293 : vector<8x64xf32>
    %295 = math.tanh %294 : vector<8x64xf32>
    %296 = arith.mulf %291, %295 : vector<8x64xf32>
    %c6_i32_58 = arith.constant 6 : i32
    %c1_i32_59 = arith.constant 1 : i32
    %297 = vector.broadcast %c6_i32_58 : i32 to vector<8x64xi32>
    %298 = vector.broadcast %c1_i32_59 : i32 to vector<8x64xi32>
    %299 = arith.select %7, %297, %298 : vector<8x64xi1>, vector<8x64xi32>
    %300 = arith.cmpi sgt, %2, %299 : vector<8x64xi32>
    %301 = arith.select %300, %296, %260 : vector<8x64xi1>, vector<8x64xf32>
    %302 = arith.select %300, %294, %261 : vector<8x64xi1>, vector<8x64xf32>
    %c6_i32_60 = arith.constant 6 : i32
    %303 = vector.broadcast %c6_i32_60 : i32 to vector<8x32xi32>
    %304 = arith.cmpi sgt, %4, %303 : vector<8x32xi32>
    %305 = vector.extract_strided_slice %301 {offsets = [0, 0], sizes = [8, 32], strides = [1, 1]} : vector<8x64xf32> to vector<8x32xf32>
    %cst_61 = arith.constant 0.000000e+00 : f32
    %306 = vector.broadcast %cst_61 : f32 to vector<8x32xf32>
    %307 = arith.select %304, %305, %306 : vector<8x32xi1>, vector<8x32xf32>
    %308 = vector.extract_strided_slice %301 {offsets = [0, 32], sizes = [8, 32], strides = [1, 1]} : vector<8x64xf32> to vector<8x32xf32>
    %309 = vector.extract_strided_slice %19 {offsets = [56, 0], sizes = [8, 256], strides = [1, 1]} : vector<64x256xf32> to vector<8x256xf32>
    %310 = arith.truncf %301 : vector<8x64xf32> to vector<8x64xbf16>
    %cst_62 = arith.constant dense<0.000000e+00> : vector<8x256xf32>
    %311 = tpu.matmul %310, %9, %cst_62 {dimension_numbers = #tpu.dot_dimension_numbers<[1], [0], [0], [1], [0, 0, 1, 1], [], []>} : vector<8x64xbf16>, vector<64x256xbf16>, vector<8x256xf32> -> vector<8x256xf32>
    %312 = arith.addf %309, %311 : vector<8x256xf32>
    %313 = vector.extract_strided_slice %312 {offsets = [0, 0], sizes = [8, 64], strides = [1, 1]} : vector<8x256xf32> to vector<8x64xf32>
    %314 = arith.negf %313 : vector<8x64xf32>
    %315 = math.exp %314 : vector<8x64xf32>
    %cst_63 = arith.constant 1.000000e+00 : f32
    %316 = vector.broadcast %cst_63 : f32 to vector<8x64xf32>
    %317 = arith.addf %316, %315 : vector<8x64xf32>
    %318 = arith.divf %316, %317 : vector<8x64xf32>
    %319 = vector.extract_strided_slice %312 {offsets = [0, 64], sizes = [8, 64], strides = [1, 1]} : vector<8x256xf32> to vector<8x64xf32>
    %320 = arith.negf %319 : vector<8x64xf32>
    %321 = math.exp %320 : vector<8x64xf32>
    %cst_64 = arith.constant 1.000000e+00 : f32
    %322 = vector.broadcast %cst_64 : f32 to vector<8x64xf32>
    %323 = arith.addf %322, %321 : vector<8x64xf32>
    %324 = arith.divf %322, %323 : vector<8x64xf32>
    %325 = vector.extract_strided_slice %312 {offsets = [0, 128], sizes = [8, 64], strides = [1, 1]} : vector<8x256xf32> to vector<8x64xf32>
    %326 = math.tanh %325 : vector<8x64xf32>
    %327 = vector.extract_strided_slice %312 {offsets = [0, 192], sizes = [8, 64], strides = [1, 1]} : vector<8x256xf32> to vector<8x64xf32>
    %328 = arith.negf %327 : vector<8x64xf32>
    %329 = math.exp %328 : vector<8x64xf32>
    %cst_65 = arith.constant 1.000000e+00 : f32
    %330 = vector.broadcast %cst_65 : f32 to vector<8x64xf32>
    %331 = arith.addf %330, %329 : vector<8x64xf32>
    %332 = arith.divf %330, %331 : vector<8x64xf32>
    %333 = arith.mulf %324, %302 : vector<8x64xf32>
    %334 = arith.mulf %318, %326 : vector<8x64xf32>
    %335 = arith.addf %333, %334 : vector<8x64xf32>
    %336 = math.tanh %335 : vector<8x64xf32>
    %337 = arith.mulf %332, %336 : vector<8x64xf32>
    %c7_i32_66 = arith.constant 7 : i32
    %c0_i32_67 = arith.constant 0 : i32
    %338 = vector.broadcast %c7_i32_66 : i32 to vector<8x64xi32>
    %339 = vector.broadcast %c0_i32_67 : i32 to vector<8x64xi32>
    %340 = arith.select %7, %338, %339 : vector<8x64xi1>, vector<8x64xi32>
    %341 = arith.cmpi sgt, %2, %340 : vector<8x64xi32>
    %342 = arith.select %341, %337, %301 : vector<8x64xi1>, vector<8x64xf32>
    %c7_i32_68 = arith.constant 7 : i32
    %343 = vector.broadcast %c7_i32_68 : i32 to vector<8x32xi32>
    %344 = arith.cmpi sgt, %4, %343 : vector<8x32xi32>
    %345 = vector.extract_strided_slice %342 {offsets = [0, 0], sizes = [8, 32], strides = [1, 1]} : vector<8x64xf32> to vector<8x32xf32>
    %cst_69 = arith.constant 0.000000e+00 : f32
    %346 = vector.broadcast %cst_69 : f32 to vector<8x32xf32>
    %347 = arith.select %344, %345, %346 : vector<8x32xi1>, vector<8x32xf32>
    %348 = vector.extract_strided_slice %342 {offsets = [0, 32], sizes = [8, 32], strides = [1, 1]} : vector<8x64xf32> to vector<8x32xf32>
    %c0_70 = arith.constant 0 : index
    %c0_71 = arith.constant 0 : index
    %349 = vector.load %arg8[%c0_70, %c0_71] : memref<128x256xbf16, #tpu.memory_space<vmem>>, vector<128x256xbf16>
    %c0_72 = arith.constant 0 : index
    %c0_73 = arith.constant 0 : index
    %350 = vector.load %arg9[%c0_72, %c0_73] : memref<64x256xbf16, #tpu.memory_space<vmem>>, vector<64x256xbf16>
    %c0_74 = arith.constant 0 : index
    %c0_75 = arith.constant 0 : index
    %351 = vector.load %arg10[%c0_74, %c0_75] : memref<1x256xf32, #tpu.memory_space<vmem>>, vector<1x256xf32>
    %352 = tpu.concatenate %61, %102, %143, %184, %225, %266, %307, %347 in 0 : vector<8x32xf32>, vector<8x32xf32>, vector<8x32xf32>, vector<8x32xf32>, vector<8x32xf32>, vector<8x32xf32>, vector<8x32xf32>, vector<8x32xf32> -> vector<64x32xf32>
    %353 = arith.truncf %352 : vector<64x32xf32> to vector<64x32xbf16>
    %354 = tpu.concatenate %348, %308, %267, %226, %185, %144, %103, %62 in 0 : vector<8x32xf32>, vector<8x32xf32>, vector<8x32xf32>, vector<8x32xf32>, vector<8x32xf32>, vector<8x32xf32>, vector<8x32xf32>, vector<8x32xf32> -> vector<64x32xf32>
    %355 = arith.truncf %354 : vector<64x32xf32> to vector<64x32xbf16>
    %356 = tpu.concatenate %347, %307, %266, %225, %184, %143, %102, %61 in 0 : vector<8x32xf32>, vector<8x32xf32>, vector<8x32xf32>, vector<8x32xf32>, vector<8x32xf32>, vector<8x32xf32>, vector<8x32xf32>, vector<8x32xf32> -> vector<64x32xf32>
    %357 = arith.truncf %356 : vector<64x32xf32> to vector<64x32xbf16>
    %358 = tpu.concatenate %62, %103, %144, %185, %226, %267, %308, %348 in 0 : vector<8x32xf32>, vector<8x32xf32>, vector<8x32xf32>, vector<8x32xf32>, vector<8x32xf32>, vector<8x32xf32>, vector<8x32xf32>, vector<8x32xf32> -> vector<64x32xf32>
    %359 = arith.truncf %358 : vector<64x32xf32> to vector<64x32xbf16>
    %360 = vector.extract_strided_slice %349 {offsets = [0, 0], sizes = [32, 256], strides = [1, 1]} : vector<128x256xbf16> to vector<32x256xbf16>
    %cst_76 = arith.constant dense<0.000000e+00> : vector<64x256xf32>
    %361 = tpu.matmul %353, %360, %cst_76 {dimension_numbers = #tpu.dot_dimension_numbers<[1], [0], [0], [1], [0, 0, 1, 1], [], []>} : vector<64x32xbf16>, vector<32x256xbf16>, vector<64x256xf32> -> vector<64x256xf32>
    %362 = vector.extract_strided_slice %349 {offsets = [32, 0], sizes = [32, 256], strides = [1, 1]} : vector<128x256xbf16> to vector<32x256xbf16>
    %cst_77 = arith.constant dense<0.000000e+00> : vector<64x256xf32>
    %363 = tpu.matmul %355, %362, %cst_77 {dimension_numbers = #tpu.dot_dimension_numbers<[1], [0], [0], [1], [0, 0, 1, 1], [], []>} : vector<64x32xbf16>, vector<32x256xbf16>, vector<64x256xf32> -> vector<64x256xf32>
    %364 = arith.addf %361, %363 : vector<64x256xf32>
    %365 = vector.extract_strided_slice %349 {offsets = [64, 0], sizes = [32, 256], strides = [1, 1]} : vector<128x256xbf16> to vector<32x256xbf16>
    %cst_78 = arith.constant dense<0.000000e+00> : vector<64x256xf32>
    %366 = tpu.matmul %357, %365, %cst_78 {dimension_numbers = #tpu.dot_dimension_numbers<[1], [0], [0], [1], [0, 0, 1, 1], [], []>} : vector<64x32xbf16>, vector<32x256xbf16>, vector<64x256xf32> -> vector<64x256xf32>
    %367 = arith.addf %364, %366 : vector<64x256xf32>
    %368 = vector.extract_strided_slice %349 {offsets = [96, 0], sizes = [32, 256], strides = [1, 1]} : vector<128x256xbf16> to vector<32x256xbf16>
    %cst_79 = arith.constant dense<0.000000e+00> : vector<64x256xf32>
    %369 = tpu.matmul %359, %368, %cst_79 {dimension_numbers = #tpu.dot_dimension_numbers<[1], [0], [0], [1], [0, 0, 1, 1], [], []>} : vector<64x32xbf16>, vector<32x256xbf16>, vector<64x256xf32> -> vector<64x256xf32>
    %370 = arith.addf %367, %369 : vector<64x256xf32>
    %371 = vector.broadcast %351 : vector<1x256xf32> to vector<64x256xf32>
    %372 = arith.addf %370, %371 : vector<64x256xf32>
    %cst_80 = arith.constant 0.000000e+00 : f32
    %373 = vector.broadcast %cst_80 : f32 to vector<8x64xf32>
    %cst_81 = arith.constant 0.000000e+00 : f32
    %374 = vector.broadcast %cst_81 : f32 to vector<8x64xf32>
    %375 = vector.extract_strided_slice %372 {offsets = [0, 0], sizes = [8, 256], strides = [1, 1]} : vector<64x256xf32> to vector<8x256xf32>
    %376 = arith.truncf %373 : vector<8x64xf32> to vector<8x64xbf16>
    %cst_82 = arith.constant dense<0.000000e+00> : vector<8x256xf32>
    %377 = tpu.matmul %376, %350, %cst_82 {dimension_numbers = #tpu.dot_dimension_numbers<[1], [0], [0], [1], [0, 0, 1, 1], [], []>} : vector<8x64xbf16>, vector<64x256xbf16>, vector<8x256xf32> -> vector<8x256xf32>
    %378 = arith.addf %375, %377 : vector<8x256xf32>
    %379 = vector.extract_strided_slice %378 {offsets = [0, 0], sizes = [8, 64], strides = [1, 1]} : vector<8x256xf32> to vector<8x64xf32>
    %380 = arith.negf %379 : vector<8x64xf32>
    %381 = math.exp %380 : vector<8x64xf32>
    %cst_83 = arith.constant 1.000000e+00 : f32
    %382 = vector.broadcast %cst_83 : f32 to vector<8x64xf32>
    %383 = arith.addf %382, %381 : vector<8x64xf32>
    %384 = arith.divf %382, %383 : vector<8x64xf32>
    %385 = vector.extract_strided_slice %378 {offsets = [0, 64], sizes = [8, 64], strides = [1, 1]} : vector<8x256xf32> to vector<8x64xf32>
    %386 = arith.negf %385 : vector<8x64xf32>
    %387 = math.exp %386 : vector<8x64xf32>
    %cst_84 = arith.constant 1.000000e+00 : f32
    %388 = vector.broadcast %cst_84 : f32 to vector<8x64xf32>
    %389 = arith.addf %388, %387 : vector<8x64xf32>
    %390 = arith.divf %388, %389 : vector<8x64xf32>
    %391 = vector.extract_strided_slice %378 {offsets = [0, 128], sizes = [8, 64], strides = [1, 1]} : vector<8x256xf32> to vector<8x64xf32>
    %392 = math.tanh %391 : vector<8x64xf32>
    %393 = vector.extract_strided_slice %378 {offsets = [0, 192], sizes = [8, 64], strides = [1, 1]} : vector<8x256xf32> to vector<8x64xf32>
    %394 = arith.negf %393 : vector<8x64xf32>
    %395 = math.exp %394 : vector<8x64xf32>
    %cst_85 = arith.constant 1.000000e+00 : f32
    %396 = vector.broadcast %cst_85 : f32 to vector<8x64xf32>
    %397 = arith.addf %396, %395 : vector<8x64xf32>
    %398 = arith.divf %396, %397 : vector<8x64xf32>
    %399 = arith.mulf %390, %374 : vector<8x64xf32>
    %400 = arith.mulf %384, %392 : vector<8x64xf32>
    %401 = arith.addf %399, %400 : vector<8x64xf32>
    %402 = math.tanh %401 : vector<8x64xf32>
    %403 = arith.mulf %398, %402 : vector<8x64xf32>
    %c0_i32_86 = arith.constant 0 : i32
    %c7_i32_87 = arith.constant 7 : i32
    %404 = vector.broadcast %c0_i32_86 : i32 to vector<8x64xi32>
    %405 = vector.broadcast %c7_i32_87 : i32 to vector<8x64xi32>
    %406 = arith.select %7, %404, %405 : vector<8x64xi1>, vector<8x64xi32>
    %407 = arith.cmpi sgt, %2, %406 : vector<8x64xi32>
    %408 = arith.select %407, %403, %373 : vector<8x64xi1>, vector<8x64xf32>
    %409 = arith.select %407, %401, %374 : vector<8x64xi1>, vector<8x64xf32>
    %c0_i32_88 = arith.constant 0 : i32
    %410 = vector.broadcast %c0_i32_88 : i32 to vector<8x32xi32>
    %411 = arith.cmpi sgt, %4, %410 : vector<8x32xi32>
    %412 = vector.extract_strided_slice %408 {offsets = [0, 0], sizes = [8, 32], strides = [1, 1]} : vector<8x64xf32> to vector<8x32xf32>
    %cst_89 = arith.constant 0.000000e+00 : f32
    %413 = vector.broadcast %cst_89 : f32 to vector<8x32xf32>
    %414 = arith.select %411, %412, %413 : vector<8x32xi1>, vector<8x32xf32>
    %415 = vector.extract_strided_slice %408 {offsets = [0, 32], sizes = [8, 32], strides = [1, 1]} : vector<8x64xf32> to vector<8x32xf32>
    %416 = vector.extract_strided_slice %372 {offsets = [8, 0], sizes = [8, 256], strides = [1, 1]} : vector<64x256xf32> to vector<8x256xf32>
    %417 = arith.truncf %408 : vector<8x64xf32> to vector<8x64xbf16>
    %cst_90 = arith.constant dense<0.000000e+00> : vector<8x256xf32>
    %418 = tpu.matmul %417, %350, %cst_90 {dimension_numbers = #tpu.dot_dimension_numbers<[1], [0], [0], [1], [0, 0, 1, 1], [], []>} : vector<8x64xbf16>, vector<64x256xbf16>, vector<8x256xf32> -> vector<8x256xf32>
    %419 = arith.addf %416, %418 : vector<8x256xf32>
    %420 = vector.extract_strided_slice %419 {offsets = [0, 0], sizes = [8, 64], strides = [1, 1]} : vector<8x256xf32> to vector<8x64xf32>
    %421 = arith.negf %420 : vector<8x64xf32>
    %422 = math.exp %421 : vector<8x64xf32>
    %cst_91 = arith.constant 1.000000e+00 : f32
    %423 = vector.broadcast %cst_91 : f32 to vector<8x64xf32>
    %424 = arith.addf %423, %422 : vector<8x64xf32>
    %425 = arith.divf %423, %424 : vector<8x64xf32>
    %426 = vector.extract_strided_slice %419 {offsets = [0, 64], sizes = [8, 64], strides = [1, 1]} : vector<8x256xf32> to vector<8x64xf32>
    %427 = arith.negf %426 : vector<8x64xf32>
    %428 = math.exp %427 : vector<8x64xf32>
    %cst_92 = arith.constant 1.000000e+00 : f32
    %429 = vector.broadcast %cst_92 : f32 to vector<8x64xf32>
    %430 = arith.addf %429, %428 : vector<8x64xf32>
    %431 = arith.divf %429, %430 : vector<8x64xf32>
    %432 = vector.extract_strided_slice %419 {offsets = [0, 128], sizes = [8, 64], strides = [1, 1]} : vector<8x256xf32> to vector<8x64xf32>
    %433 = math.tanh %432 : vector<8x64xf32>
    %434 = vector.extract_strided_slice %419 {offsets = [0, 192], sizes = [8, 64], strides = [1, 1]} : vector<8x256xf32> to vector<8x64xf32>
    %435 = arith.negf %434 : vector<8x64xf32>
    %436 = math.exp %435 : vector<8x64xf32>
    %cst_93 = arith.constant 1.000000e+00 : f32
    %437 = vector.broadcast %cst_93 : f32 to vector<8x64xf32>
    %438 = arith.addf %437, %436 : vector<8x64xf32>
    %439 = arith.divf %437, %438 : vector<8x64xf32>
    %440 = arith.mulf %431, %409 : vector<8x64xf32>
    %441 = arith.mulf %425, %433 : vector<8x64xf32>
    %442 = arith.addf %440, %441 : vector<8x64xf32>
    %443 = math.tanh %442 : vector<8x64xf32>
    %444 = arith.mulf %439, %443 : vector<8x64xf32>
    %c1_i32_94 = arith.constant 1 : i32
    %c6_i32_95 = arith.constant 6 : i32
    %445 = vector.broadcast %c1_i32_94 : i32 to vector<8x64xi32>
    %446 = vector.broadcast %c6_i32_95 : i32 to vector<8x64xi32>
    %447 = arith.select %7, %445, %446 : vector<8x64xi1>, vector<8x64xi32>
    %448 = arith.cmpi sgt, %2, %447 : vector<8x64xi32>
    %449 = arith.select %448, %444, %408 : vector<8x64xi1>, vector<8x64xf32>
    %450 = arith.select %448, %442, %409 : vector<8x64xi1>, vector<8x64xf32>
    %c1_i32_96 = arith.constant 1 : i32
    %451 = vector.broadcast %c1_i32_96 : i32 to vector<8x32xi32>
    %452 = arith.cmpi sgt, %4, %451 : vector<8x32xi32>
    %453 = vector.extract_strided_slice %449 {offsets = [0, 0], sizes = [8, 32], strides = [1, 1]} : vector<8x64xf32> to vector<8x32xf32>
    %cst_97 = arith.constant 0.000000e+00 : f32
    %454 = vector.broadcast %cst_97 : f32 to vector<8x32xf32>
    %455 = arith.select %452, %453, %454 : vector<8x32xi1>, vector<8x32xf32>
    %456 = vector.extract_strided_slice %449 {offsets = [0, 32], sizes = [8, 32], strides = [1, 1]} : vector<8x64xf32> to vector<8x32xf32>
    %457 = vector.extract_strided_slice %372 {offsets = [16, 0], sizes = [8, 256], strides = [1, 1]} : vector<64x256xf32> to vector<8x256xf32>
    %458 = arith.truncf %449 : vector<8x64xf32> to vector<8x64xbf16>
    %cst_98 = arith.constant dense<0.000000e+00> : vector<8x256xf32>
    %459 = tpu.matmul %458, %350, %cst_98 {dimension_numbers = #tpu.dot_dimension_numbers<[1], [0], [0], [1], [0, 0, 1, 1], [], []>} : vector<8x64xbf16>, vector<64x256xbf16>, vector<8x256xf32> -> vector<8x256xf32>
    %460 = arith.addf %457, %459 : vector<8x256xf32>
    %461 = vector.extract_strided_slice %460 {offsets = [0, 0], sizes = [8, 64], strides = [1, 1]} : vector<8x256xf32> to vector<8x64xf32>
    %462 = arith.negf %461 : vector<8x64xf32>
    %463 = math.exp %462 : vector<8x64xf32>
    %cst_99 = arith.constant 1.000000e+00 : f32
    %464 = vector.broadcast %cst_99 : f32 to vector<8x64xf32>
    %465 = arith.addf %464, %463 : vector<8x64xf32>
    %466 = arith.divf %464, %465 : vector<8x64xf32>
    %467 = vector.extract_strided_slice %460 {offsets = [0, 64], sizes = [8, 64], strides = [1, 1]} : vector<8x256xf32> to vector<8x64xf32>
    %468 = arith.negf %467 : vector<8x64xf32>
    %469 = math.exp %468 : vector<8x64xf32>
    %cst_100 = arith.constant 1.000000e+00 : f32
    %470 = vector.broadcast %cst_100 : f32 to vector<8x64xf32>
    %471 = arith.addf %470, %469 : vector<8x64xf32>
    %472 = arith.divf %470, %471 : vector<8x64xf32>
    %473 = vector.extract_strided_slice %460 {offsets = [0, 128], sizes = [8, 64], strides = [1, 1]} : vector<8x256xf32> to vector<8x64xf32>
    %474 = math.tanh %473 : vector<8x64xf32>
    %475 = vector.extract_strided_slice %460 {offsets = [0, 192], sizes = [8, 64], strides = [1, 1]} : vector<8x256xf32> to vector<8x64xf32>
    %476 = arith.negf %475 : vector<8x64xf32>
    %477 = math.exp %476 : vector<8x64xf32>
    %cst_101 = arith.constant 1.000000e+00 : f32
    %478 = vector.broadcast %cst_101 : f32 to vector<8x64xf32>
    %479 = arith.addf %478, %477 : vector<8x64xf32>
    %480 = arith.divf %478, %479 : vector<8x64xf32>
    %481 = arith.mulf %472, %450 : vector<8x64xf32>
    %482 = arith.mulf %466, %474 : vector<8x64xf32>
    %483 = arith.addf %481, %482 : vector<8x64xf32>
    %484 = math.tanh %483 : vector<8x64xf32>
    %485 = arith.mulf %480, %484 : vector<8x64xf32>
    %c2_i32_102 = arith.constant 2 : i32
    %c5_i32_103 = arith.constant 5 : i32
    %486 = vector.broadcast %c2_i32_102 : i32 to vector<8x64xi32>
    %487 = vector.broadcast %c5_i32_103 : i32 to vector<8x64xi32>
    %488 = arith.select %7, %486, %487 : vector<8x64xi1>, vector<8x64xi32>
    %489 = arith.cmpi sgt, %2, %488 : vector<8x64xi32>
    %490 = arith.select %489, %485, %449 : vector<8x64xi1>, vector<8x64xf32>
    %491 = arith.select %489, %483, %450 : vector<8x64xi1>, vector<8x64xf32>
    %c2_i32_104 = arith.constant 2 : i32
    %492 = vector.broadcast %c2_i32_104 : i32 to vector<8x32xi32>
    %493 = arith.cmpi sgt, %4, %492 : vector<8x32xi32>
    %494 = vector.extract_strided_slice %490 {offsets = [0, 0], sizes = [8, 32], strides = [1, 1]} : vector<8x64xf32> to vector<8x32xf32>
    %cst_105 = arith.constant 0.000000e+00 : f32
    %495 = vector.broadcast %cst_105 : f32 to vector<8x32xf32>
    %496 = arith.select %493, %494, %495 : vector<8x32xi1>, vector<8x32xf32>
    %497 = vector.extract_strided_slice %490 {offsets = [0, 32], sizes = [8, 32], strides = [1, 1]} : vector<8x64xf32> to vector<8x32xf32>
    %498 = vector.extract_strided_slice %372 {offsets = [24, 0], sizes = [8, 256], strides = [1, 1]} : vector<64x256xf32> to vector<8x256xf32>
    %499 = arith.truncf %490 : vector<8x64xf32> to vector<8x64xbf16>
    %cst_106 = arith.constant dense<0.000000e+00> : vector<8x256xf32>
    %500 = tpu.matmul %499, %350, %cst_106 {dimension_numbers = #tpu.dot_dimension_numbers<[1], [0], [0], [1], [0, 0, 1, 1], [], []>} : vector<8x64xbf16>, vector<64x256xbf16>, vector<8x256xf32> -> vector<8x256xf32>
    %501 = arith.addf %498, %500 : vector<8x256xf32>
    %502 = vector.extract_strided_slice %501 {offsets = [0, 0], sizes = [8, 64], strides = [1, 1]} : vector<8x256xf32> to vector<8x64xf32>
    %503 = arith.negf %502 : vector<8x64xf32>
    %504 = math.exp %503 : vector<8x64xf32>
    %cst_107 = arith.constant 1.000000e+00 : f32
    %505 = vector.broadcast %cst_107 : f32 to vector<8x64xf32>
    %506 = arith.addf %505, %504 : vector<8x64xf32>
    %507 = arith.divf %505, %506 : vector<8x64xf32>
    %508 = vector.extract_strided_slice %501 {offsets = [0, 64], sizes = [8, 64], strides = [1, 1]} : vector<8x256xf32> to vector<8x64xf32>
    %509 = arith.negf %508 : vector<8x64xf32>
    %510 = math.exp %509 : vector<8x64xf32>
    %cst_108 = arith.constant 1.000000e+00 : f32
    %511 = vector.broadcast %cst_108 : f32 to vector<8x64xf32>
    %512 = arith.addf %511, %510 : vector<8x64xf32>
    %513 = arith.divf %511, %512 : vector<8x64xf32>
    %514 = vector.extract_strided_slice %501 {offsets = [0, 128], sizes = [8, 64], strides = [1, 1]} : vector<8x256xf32> to vector<8x64xf32>
    %515 = math.tanh %514 : vector<8x64xf32>
    %516 = vector.extract_strided_slice %501 {offsets = [0, 192], sizes = [8, 64], strides = [1, 1]} : vector<8x256xf32> to vector<8x64xf32>
    %517 = arith.negf %516 : vector<8x64xf32>
    %518 = math.exp %517 : vector<8x64xf32>
    %cst_109 = arith.constant 1.000000e+00 : f32
    %519 = vector.broadcast %cst_109 : f32 to vector<8x64xf32>
    %520 = arith.addf %519, %518 : vector<8x64xf32>
    %521 = arith.divf %519, %520 : vector<8x64xf32>
    %522 = arith.mulf %513, %491 : vector<8x64xf32>
    %523 = arith.mulf %507, %515 : vector<8x64xf32>
    %524 = arith.addf %522, %523 : vector<8x64xf32>
    %525 = math.tanh %524 : vector<8x64xf32>
    %526 = arith.mulf %521, %525 : vector<8x64xf32>
    %c3_i32_110 = arith.constant 3 : i32
    %c4_i32_111 = arith.constant 4 : i32
    %527 = vector.broadcast %c3_i32_110 : i32 to vector<8x64xi32>
    %528 = vector.broadcast %c4_i32_111 : i32 to vector<8x64xi32>
    %529 = arith.select %7, %527, %528 : vector<8x64xi1>, vector<8x64xi32>
    %530 = arith.cmpi sgt, %2, %529 : vector<8x64xi32>
    %531 = arith.select %530, %526, %490 : vector<8x64xi1>, vector<8x64xf32>
    %532 = arith.select %530, %524, %491 : vector<8x64xi1>, vector<8x64xf32>
    %c3_i32_112 = arith.constant 3 : i32
    %533 = vector.broadcast %c3_i32_112 : i32 to vector<8x32xi32>
    %534 = arith.cmpi sgt, %4, %533 : vector<8x32xi32>
    %535 = vector.extract_strided_slice %531 {offsets = [0, 0], sizes = [8, 32], strides = [1, 1]} : vector<8x64xf32> to vector<8x32xf32>
    %cst_113 = arith.constant 0.000000e+00 : f32
    %536 = vector.broadcast %cst_113 : f32 to vector<8x32xf32>
    %537 = arith.select %534, %535, %536 : vector<8x32xi1>, vector<8x32xf32>
    %538 = vector.extract_strided_slice %531 {offsets = [0, 32], sizes = [8, 32], strides = [1, 1]} : vector<8x64xf32> to vector<8x32xf32>
    %539 = vector.extract_strided_slice %372 {offsets = [32, 0], sizes = [8, 256], strides = [1, 1]} : vector<64x256xf32> to vector<8x256xf32>
    %540 = arith.truncf %531 : vector<8x64xf32> to vector<8x64xbf16>
    %cst_114 = arith.constant dense<0.000000e+00> : vector<8x256xf32>
    %541 = tpu.matmul %540, %350, %cst_114 {dimension_numbers = #tpu.dot_dimension_numbers<[1], [0], [0], [1], [0, 0, 1, 1], [], []>} : vector<8x64xbf16>, vector<64x256xbf16>, vector<8x256xf32> -> vector<8x256xf32>
    %542 = arith.addf %539, %541 : vector<8x256xf32>
    %543 = vector.extract_strided_slice %542 {offsets = [0, 0], sizes = [8, 64], strides = [1, 1]} : vector<8x256xf32> to vector<8x64xf32>
    %544 = arith.negf %543 : vector<8x64xf32>
    %545 = math.exp %544 : vector<8x64xf32>
    %cst_115 = arith.constant 1.000000e+00 : f32
    %546 = vector.broadcast %cst_115 : f32 to vector<8x64xf32>
    %547 = arith.addf %546, %545 : vector<8x64xf32>
    %548 = arith.divf %546, %547 : vector<8x64xf32>
    %549 = vector.extract_strided_slice %542 {offsets = [0, 64], sizes = [8, 64], strides = [1, 1]} : vector<8x256xf32> to vector<8x64xf32>
    %550 = arith.negf %549 : vector<8x64xf32>
    %551 = math.exp %550 : vector<8x64xf32>
    %cst_116 = arith.constant 1.000000e+00 : f32
    %552 = vector.broadcast %cst_116 : f32 to vector<8x64xf32>
    %553 = arith.addf %552, %551 : vector<8x64xf32>
    %554 = arith.divf %552, %553 : vector<8x64xf32>
    %555 = vector.extract_strided_slice %542 {offsets = [0, 128], sizes = [8, 64], strides = [1, 1]} : vector<8x256xf32> to vector<8x64xf32>
    %556 = math.tanh %555 : vector<8x64xf32>
    %557 = vector.extract_strided_slice %542 {offsets = [0, 192], sizes = [8, 64], strides = [1, 1]} : vector<8x256xf32> to vector<8x64xf32>
    %558 = arith.negf %557 : vector<8x64xf32>
    %559 = math.exp %558 : vector<8x64xf32>
    %cst_117 = arith.constant 1.000000e+00 : f32
    %560 = vector.broadcast %cst_117 : f32 to vector<8x64xf32>
    %561 = arith.addf %560, %559 : vector<8x64xf32>
    %562 = arith.divf %560, %561 : vector<8x64xf32>
    %563 = arith.mulf %554, %532 : vector<8x64xf32>
    %564 = arith.mulf %548, %556 : vector<8x64xf32>
    %565 = arith.addf %563, %564 : vector<8x64xf32>
    %566 = math.tanh %565 : vector<8x64xf32>
    %567 = arith.mulf %562, %566 : vector<8x64xf32>
    %c4_i32_118 = arith.constant 4 : i32
    %c3_i32_119 = arith.constant 3 : i32
    %568 = vector.broadcast %c4_i32_118 : i32 to vector<8x64xi32>
    %569 = vector.broadcast %c3_i32_119 : i32 to vector<8x64xi32>
    %570 = arith.select %7, %568, %569 : vector<8x64xi1>, vector<8x64xi32>
    %571 = arith.cmpi sgt, %2, %570 : vector<8x64xi32>
    %572 = arith.select %571, %567, %531 : vector<8x64xi1>, vector<8x64xf32>
    %573 = arith.select %571, %565, %532 : vector<8x64xi1>, vector<8x64xf32>
    %c4_i32_120 = arith.constant 4 : i32
    %574 = vector.broadcast %c4_i32_120 : i32 to vector<8x32xi32>
    %575 = arith.cmpi sgt, %4, %574 : vector<8x32xi32>
    %576 = vector.extract_strided_slice %572 {offsets = [0, 0], sizes = [8, 32], strides = [1, 1]} : vector<8x64xf32> to vector<8x32xf32>
    %cst_121 = arith.constant 0.000000e+00 : f32
    %577 = vector.broadcast %cst_121 : f32 to vector<8x32xf32>
    %578 = arith.select %575, %576, %577 : vector<8x32xi1>, vector<8x32xf32>
    %579 = vector.extract_strided_slice %572 {offsets = [0, 32], sizes = [8, 32], strides = [1, 1]} : vector<8x64xf32> to vector<8x32xf32>
    %580 = vector.extract_strided_slice %372 {offsets = [40, 0], sizes = [8, 256], strides = [1, 1]} : vector<64x256xf32> to vector<8x256xf32>
    %581 = arith.truncf %572 : vector<8x64xf32> to vector<8x64xbf16>
    %cst_122 = arith.constant dense<0.000000e+00> : vector<8x256xf32>
    %582 = tpu.matmul %581, %350, %cst_122 {dimension_numbers = #tpu.dot_dimension_numbers<[1], [0], [0], [1], [0, 0, 1, 1], [], []>} : vector<8x64xbf16>, vector<64x256xbf16>, vector<8x256xf32> -> vector<8x256xf32>
    %583 = arith.addf %580, %582 : vector<8x256xf32>
    %584 = vector.extract_strided_slice %583 {offsets = [0, 0], sizes = [8, 64], strides = [1, 1]} : vector<8x256xf32> to vector<8x64xf32>
    %585 = arith.negf %584 : vector<8x64xf32>
    %586 = math.exp %585 : vector<8x64xf32>
    %cst_123 = arith.constant 1.000000e+00 : f32
    %587 = vector.broadcast %cst_123 : f32 to vector<8x64xf32>
    %588 = arith.addf %587, %586 : vector<8x64xf32>
    %589 = arith.divf %587, %588 : vector<8x64xf32>
    %590 = vector.extract_strided_slice %583 {offsets = [0, 64], sizes = [8, 64], strides = [1, 1]} : vector<8x256xf32> to vector<8x64xf32>
    %591 = arith.negf %590 : vector<8x64xf32>
    %592 = math.exp %591 : vector<8x64xf32>
    %cst_124 = arith.constant 1.000000e+00 : f32
    %593 = vector.broadcast %cst_124 : f32 to vector<8x64xf32>
    %594 = arith.addf %593, %592 : vector<8x64xf32>
    %595 = arith.divf %593, %594 : vector<8x64xf32>
    %596 = vector.extract_strided_slice %583 {offsets = [0, 128], sizes = [8, 64], strides = [1, 1]} : vector<8x256xf32> to vector<8x64xf32>
    %597 = math.tanh %596 : vector<8x64xf32>
    %598 = vector.extract_strided_slice %583 {offsets = [0, 192], sizes = [8, 64], strides = [1, 1]} : vector<8x256xf32> to vector<8x64xf32>
    %599 = arith.negf %598 : vector<8x64xf32>
    %600 = math.exp %599 : vector<8x64xf32>
    %cst_125 = arith.constant 1.000000e+00 : f32
    %601 = vector.broadcast %cst_125 : f32 to vector<8x64xf32>
    %602 = arith.addf %601, %600 : vector<8x64xf32>
    %603 = arith.divf %601, %602 : vector<8x64xf32>
    %604 = arith.mulf %595, %573 : vector<8x64xf32>
    %605 = arith.mulf %589, %597 : vector<8x64xf32>
    %606 = arith.addf %604, %605 : vector<8x64xf32>
    %607 = math.tanh %606 : vector<8x64xf32>
    %608 = arith.mulf %603, %607 : vector<8x64xf32>
    %c5_i32_126 = arith.constant 5 : i32
    %c2_i32_127 = arith.constant 2 : i32
    %609 = vector.broadcast %c5_i32_126 : i32 to vector<8x64xi32>
    %610 = vector.broadcast %c2_i32_127 : i32 to vector<8x64xi32>
    %611 = arith.select %7, %609, %610 : vector<8x64xi1>, vector<8x64xi32>
    %612 = arith.cmpi sgt, %2, %611 : vector<8x64xi32>
    %613 = arith.select %612, %608, %572 : vector<8x64xi1>, vector<8x64xf32>
    %614 = arith.select %612, %606, %573 : vector<8x64xi1>, vector<8x64xf32>
    %c5_i32_128 = arith.constant 5 : i32
    %615 = vector.broadcast %c5_i32_128 : i32 to vector<8x32xi32>
    %616 = arith.cmpi sgt, %4, %615 : vector<8x32xi32>
    %617 = vector.extract_strided_slice %613 {offsets = [0, 0], sizes = [8, 32], strides = [1, 1]} : vector<8x64xf32> to vector<8x32xf32>
    %cst_129 = arith.constant 0.000000e+00 : f32
    %618 = vector.broadcast %cst_129 : f32 to vector<8x32xf32>
    %619 = arith.select %616, %617, %618 : vector<8x32xi1>, vector<8x32xf32>
    %620 = vector.extract_strided_slice %613 {offsets = [0, 32], sizes = [8, 32], strides = [1, 1]} : vector<8x64xf32> to vector<8x32xf32>
    %621 = vector.extract_strided_slice %372 {offsets = [48, 0], sizes = [8, 256], strides = [1, 1]} : vector<64x256xf32> to vector<8x256xf32>
    %622 = arith.truncf %613 : vector<8x64xf32> to vector<8x64xbf16>
    %cst_130 = arith.constant dense<0.000000e+00> : vector<8x256xf32>
    %623 = tpu.matmul %622, %350, %cst_130 {dimension_numbers = #tpu.dot_dimension_numbers<[1], [0], [0], [1], [0, 0, 1, 1], [], []>} : vector<8x64xbf16>, vector<64x256xbf16>, vector<8x256xf32> -> vector<8x256xf32>
    %624 = arith.addf %621, %623 : vector<8x256xf32>
    %625 = vector.extract_strided_slice %624 {offsets = [0, 0], sizes = [8, 64], strides = [1, 1]} : vector<8x256xf32> to vector<8x64xf32>
    %626 = arith.negf %625 : vector<8x64xf32>
    %627 = math.exp %626 : vector<8x64xf32>
    %cst_131 = arith.constant 1.000000e+00 : f32
    %628 = vector.broadcast %cst_131 : f32 to vector<8x64xf32>
    %629 = arith.addf %628, %627 : vector<8x64xf32>
    %630 = arith.divf %628, %629 : vector<8x64xf32>
    %631 = vector.extract_strided_slice %624 {offsets = [0, 64], sizes = [8, 64], strides = [1, 1]} : vector<8x256xf32> to vector<8x64xf32>
    %632 = arith.negf %631 : vector<8x64xf32>
    %633 = math.exp %632 : vector<8x64xf32>
    %cst_132 = arith.constant 1.000000e+00 : f32
    %634 = vector.broadcast %cst_132 : f32 to vector<8x64xf32>
    %635 = arith.addf %634, %633 : vector<8x64xf32>
    %636 = arith.divf %634, %635 : vector<8x64xf32>
    %637 = vector.extract_strided_slice %624 {offsets = [0, 128], sizes = [8, 64], strides = [1, 1]} : vector<8x256xf32> to vector<8x64xf32>
    %638 = math.tanh %637 : vector<8x64xf32>
    %639 = vector.extract_strided_slice %624 {offsets = [0, 192], sizes = [8, 64], strides = [1, 1]} : vector<8x256xf32> to vector<8x64xf32>
    %640 = arith.negf %639 : vector<8x64xf32>
    %641 = math.exp %640 : vector<8x64xf32>
    %cst_133 = arith.constant 1.000000e+00 : f32
    %642 = vector.broadcast %cst_133 : f32 to vector<8x64xf32>
    %643 = arith.addf %642, %641 : vector<8x64xf32>
    %644 = arith.divf %642, %643 : vector<8x64xf32>
    %645 = arith.mulf %636, %614 : vector<8x64xf32>
    %646 = arith.mulf %630, %638 : vector<8x64xf32>
    %647 = arith.addf %645, %646 : vector<8x64xf32>
    %648 = math.tanh %647 : vector<8x64xf32>
    %649 = arith.mulf %644, %648 : vector<8x64xf32>
    %c6_i32_134 = arith.constant 6 : i32
    %c1_i32_135 = arith.constant 1 : i32
    %650 = vector.broadcast %c6_i32_134 : i32 to vector<8x64xi32>
    %651 = vector.broadcast %c1_i32_135 : i32 to vector<8x64xi32>
    %652 = arith.select %7, %650, %651 : vector<8x64xi1>, vector<8x64xi32>
    %653 = arith.cmpi sgt, %2, %652 : vector<8x64xi32>
    %654 = arith.select %653, %649, %613 : vector<8x64xi1>, vector<8x64xf32>
    %655 = arith.select %653, %647, %614 : vector<8x64xi1>, vector<8x64xf32>
    %c6_i32_136 = arith.constant 6 : i32
    %656 = vector.broadcast %c6_i32_136 : i32 to vector<8x32xi32>
    %657 = arith.cmpi sgt, %4, %656 : vector<8x32xi32>
    %658 = vector.extract_strided_slice %654 {offsets = [0, 0], sizes = [8, 32], strides = [1, 1]} : vector<8x64xf32> to vector<8x32xf32>
    %cst_137 = arith.constant 0.000000e+00 : f32
    %659 = vector.broadcast %cst_137 : f32 to vector<8x32xf32>
    %660 = arith.select %657, %658, %659 : vector<8x32xi1>, vector<8x32xf32>
    %661 = vector.extract_strided_slice %654 {offsets = [0, 32], sizes = [8, 32], strides = [1, 1]} : vector<8x64xf32> to vector<8x32xf32>
    %662 = vector.extract_strided_slice %372 {offsets = [56, 0], sizes = [8, 256], strides = [1, 1]} : vector<64x256xf32> to vector<8x256xf32>
    %663 = arith.truncf %654 : vector<8x64xf32> to vector<8x64xbf16>
    %cst_138 = arith.constant dense<0.000000e+00> : vector<8x256xf32>
    %664 = tpu.matmul %663, %350, %cst_138 {dimension_numbers = #tpu.dot_dimension_numbers<[1], [0], [0], [1], [0, 0, 1, 1], [], []>} : vector<8x64xbf16>, vector<64x256xbf16>, vector<8x256xf32> -> vector<8x256xf32>
    %665 = arith.addf %662, %664 : vector<8x256xf32>
    %666 = vector.extract_strided_slice %665 {offsets = [0, 0], sizes = [8, 64], strides = [1, 1]} : vector<8x256xf32> to vector<8x64xf32>
    %667 = arith.negf %666 : vector<8x64xf32>
    %668 = math.exp %667 : vector<8x64xf32>
    %cst_139 = arith.constant 1.000000e+00 : f32
    %669 = vector.broadcast %cst_139 : f32 to vector<8x64xf32>
    %670 = arith.addf %669, %668 : vector<8x64xf32>
    %671 = arith.divf %669, %670 : vector<8x64xf32>
    %672 = vector.extract_strided_slice %665 {offsets = [0, 64], sizes = [8, 64], strides = [1, 1]} : vector<8x256xf32> to vector<8x64xf32>
    %673 = arith.negf %672 : vector<8x64xf32>
    %674 = math.exp %673 : vector<8x64xf32>
    %cst_140 = arith.constant 1.000000e+00 : f32
    %675 = vector.broadcast %cst_140 : f32 to vector<8x64xf32>
    %676 = arith.addf %675, %674 : vector<8x64xf32>
    %677 = arith.divf %675, %676 : vector<8x64xf32>
    %678 = vector.extract_strided_slice %665 {offsets = [0, 128], sizes = [8, 64], strides = [1, 1]} : vector<8x256xf32> to vector<8x64xf32>
    %679 = math.tanh %678 : vector<8x64xf32>
    %680 = vector.extract_strided_slice %665 {offsets = [0, 192], sizes = [8, 64], strides = [1, 1]} : vector<8x256xf32> to vector<8x64xf32>
    %681 = arith.negf %680 : vector<8x64xf32>
    %682 = math.exp %681 : vector<8x64xf32>
    %cst_141 = arith.constant 1.000000e+00 : f32
    %683 = vector.broadcast %cst_141 : f32 to vector<8x64xf32>
    %684 = arith.addf %683, %682 : vector<8x64xf32>
    %685 = arith.divf %683, %684 : vector<8x64xf32>
    %686 = arith.mulf %677, %655 : vector<8x64xf32>
    %687 = arith.mulf %671, %679 : vector<8x64xf32>
    %688 = arith.addf %686, %687 : vector<8x64xf32>
    %689 = math.tanh %688 : vector<8x64xf32>
    %690 = arith.mulf %685, %689 : vector<8x64xf32>
    %c7_i32_142 = arith.constant 7 : i32
    %c0_i32_143 = arith.constant 0 : i32
    %691 = vector.broadcast %c7_i32_142 : i32 to vector<8x64xi32>
    %692 = vector.broadcast %c0_i32_143 : i32 to vector<8x64xi32>
    %693 = arith.select %7, %691, %692 : vector<8x64xi1>, vector<8x64xi32>
    %694 = arith.cmpi sgt, %2, %693 : vector<8x64xi32>
    %695 = arith.select %694, %690, %654 : vector<8x64xi1>, vector<8x64xf32>
    %c7_i32_144 = arith.constant 7 : i32
    %696 = vector.broadcast %c7_i32_144 : i32 to vector<8x32xi32>
    %697 = arith.cmpi sgt, %4, %696 : vector<8x32xi32>
    %698 = vector.extract_strided_slice %695 {offsets = [0, 0], sizes = [8, 32], strides = [1, 1]} : vector<8x64xf32> to vector<8x32xf32>
    %cst_145 = arith.constant 0.000000e+00 : f32
    %699 = vector.broadcast %cst_145 : f32 to vector<8x32xf32>
    %700 = arith.select %697, %698, %699 : vector<8x32xi1>, vector<8x32xf32>
    %701 = vector.extract_strided_slice %695 {offsets = [0, 32], sizes = [8, 32], strides = [1, 1]} : vector<8x64xf32> to vector<8x32xf32>
    %702 = tpu.concatenate %414, %455, %496, %537, %578, %619, %660, %700 in 0 : vector<8x32xf32>, vector<8x32xf32>, vector<8x32xf32>, vector<8x32xf32>, vector<8x32xf32>, vector<8x32xf32>, vector<8x32xf32>, vector<8x32xf32> -> vector<64x32xf32>
    %703 = tpu.concatenate %701, %661, %620, %579, %538, %497, %456, %415 in 0 : vector<8x32xf32>, vector<8x32xf32>, vector<8x32xf32>, vector<8x32xf32>, vector<8x32xf32>, vector<8x32xf32>, vector<8x32xf32>, vector<8x32xf32> -> vector<64x32xf32>
    %cst_146 = arith.constant dense<0.000000e+00> : vector<64x64xf32>
    %704 = tpu.matmul %702, %702, %cst_146 {dimension_numbers = #tpu.dot_dimension_numbers<[1], [1], [0], [0], [0, 0, 1, 0], [], []>} : vector<64x32xf32>, vector<64x32xf32>, vector<64x64xf32> -> vector<64x64xf32>
    %cst_147 = arith.constant dense<0.000000e+00> : vector<64x64xf32>
    %705 = tpu.matmul %703, %703, %cst_147 {dimension_numbers = #tpu.dot_dimension_numbers<[1], [1], [0], [0], [0, 0, 1, 0], [], []>} : vector<64x32xf32>, vector<64x32xf32>, vector<64x64xf32> -> vector<64x64xf32>
    %706 = arith.addf %704, %705 : vector<64x64xf32>
    %cst_148 = arith.constant 1.250000e-01 : f32
    %707 = vector.broadcast %cst_148 : f32 to vector<64x64xf32>
    %708 = arith.mulf %706, %707 : vector<64x64xf32>
    %c0_149 = arith.constant 0 : index
    %c0_150 = arith.constant 0 : index
    %709 = vector.load %arg4[%c0_149, %c0_150] : memref<64x64xf32, #tpu.memory_space<vmem>>, vector<64x64xf32>
    %710 = arith.addf %708, %709 : vector<64x64xf32>
    %cst_151 = arith.constant dense<0xFF800000> : vector<64xf32>
    %711 = vector.multi_reduction <maximumf>, %710, %cst_151 [1] : vector<64x64xf32> to vector<64xf32>
    %712 = vector.shape_cast %711 : vector<64xf32> to vector<64x1xf32>
    %713 = vector.broadcast %712 : vector<64x1xf32> to vector<64x64xf32>
    %714 = arith.subf %710, %713 : vector<64x64xf32>
    %715 = math.exp %714 : vector<64x64xf32>
    %cst_152 = arith.constant dense<0.000000e+00> : vector<64xf32>
    %716 = vector.multi_reduction <add>, %715, %cst_152 [1] : vector<64x64xf32> to vector<64xf32>
    %717 = vector.shape_cast %716 : vector<64xf32> to vector<64x1xf32>
    %718 = vector.broadcast %717 : vector<64x1xf32> to vector<64x64xf32>
    %719 = arith.divf %715, %718 : vector<64x64xf32>
    %cst_153 = arith.constant dense<0.000000e+00> : vector<64x32xf32>
    %720 = tpu.matmul %719, %702, %cst_153 {dimension_numbers = #tpu.dot_dimension_numbers<[1], [0], [0], [1], [0, 0, 1, 1], [], []>} : vector<64x64xf32>, vector<64x32xf32>, vector<64x32xf32> -> vector<64x32xf32>
    %cst_154 = arith.constant dense<0.000000e+00> : vector<64x32xf32>
    %721 = tpu.matmul %719, %703, %cst_154 {dimension_numbers = #tpu.dot_dimension_numbers<[1], [0], [0], [1], [0, 0, 1, 1], [], []>} : vector<64x64xf32>, vector<64x32xf32>, vector<64x32xf32> -> vector<64x32xf32>
    %c0_155 = arith.constant 0 : index
    %c0_156 = arith.constant 0 : index
    %722 = vector.load %arg11[%c0_155, %c0_156] : memref<64x8xf32, #tpu.memory_space<vmem>>, vector<64x8xf32>
    %c0_157 = arith.constant 0 : index
    %c0_158 = arith.constant 0 : index
    %723 = vector.load %arg12[%c0_157, %c0_158] : memref<1x8xf32, #tpu.memory_space<vmem>>, vector<1x8xf32>
    %724 = vector.extract_strided_slice %722 {offsets = [0, 0], sizes = [32, 8], strides = [1, 1]} : vector<64x8xf32> to vector<32x8xf32>
    %cst_159 = arith.constant dense<0.000000e+00> : vector<64x8xf32>
    %725 = tpu.matmul %720, %724, %cst_159 {dimension_numbers = #tpu.dot_dimension_numbers<[1], [0], [0], [1], [0, 0, 1, 1], [], []>} : vector<64x32xf32>, vector<32x8xf32>, vector<64x8xf32> -> vector<64x8xf32>
    %726 = vector.extract_strided_slice %722 {offsets = [32, 0], sizes = [32, 8], strides = [1, 1]} : vector<64x8xf32> to vector<32x8xf32>
    %cst_160 = arith.constant dense<0.000000e+00> : vector<64x8xf32>
    %727 = tpu.matmul %721, %726, %cst_160 {dimension_numbers = #tpu.dot_dimension_numbers<[1], [0], [0], [1], [0, 0, 1, 1], [], []>} : vector<64x32xf32>, vector<32x8xf32>, vector<64x8xf32> -> vector<64x8xf32>
    %728 = arith.addf %725, %727 : vector<64x8xf32>
    %729 = vector.broadcast %723 : vector<1x8xf32> to vector<64x8xf32>
    %730 = arith.addf %728, %729 : vector<64x8xf32>
    %c0_161 = arith.constant 0 : index
    %c0_162 = arith.constant 0 : index
    %731 = vector.load %arg13[%c0_161, %c0_162] : memref<64x8xf32, #tpu.memory_space<vmem>>, vector<64x8xf32>
    tpu.vector_store %arg13[%c0_161, %c0_162], %730 {strides = array<i32>} : memref<64x8xf32, #tpu.memory_space<vmem>>, vector<64x8xf32>,
    return
  }
  func.func @transform_0(%arg0: i32) -> (i32, i32) {
    %c0_i32 = arith.constant 0 : i32
    %c0_i32_0 = arith.constant 0 : i32
    %c0_i32_1 = arith.constant 0 : i32
    return %c0_i32, %c0_i32_0 : i32, i32
  }
  func.func @transform_1(%arg0: i32) -> (i32, i32) {
    %c0_i32 = arith.constant 0 : i32
    %c0_i32_0 = arith.constant 0 : i32
    %c0_i32_1 = arith.constant 0 : i32
    return %c0_i32, %c0_i32_0 : i32, i32
  }
  func.func @transform_2(%arg0: i32) -> (i32, i32) {
    %c0_i32 = arith.constant 0 : i32
    %c0_i32_0 = arith.constant 0 : i32
    %c0_i32_1 = arith.constant 0 : i32
    return %c0_i32, %c0_i32_0 : i32, i32
  }
  func.func @transform_3(%arg0: i32) -> (i32, i32) {
    %c0_i32 = arith.constant 0 : i32
    %c0_i32_0 = arith.constant 0 : i32
    %c0_i32_1 = arith.constant 0 : i32
    return %c0_i32, %c0_i32_0 : i32, i32
  }
  func.func @transform_4(%arg0: i32) -> (i32, i32) {
    %c0_i32 = arith.constant 0 : i32
    %c0_i32_0 = arith.constant 0 : i32
    %c0_i32_1 = arith.constant 0 : i32
    return %c0_i32, %c0_i32_0 : i32, i32
  }
  func.func @transform_5(%arg0: i32) -> (i32, i32) {
    %c0_i32 = arith.constant 0 : i32
    %c0_i32_0 = arith.constant 0 : i32
    %c0_i32_1 = arith.constant 0 : i32
    return %c0_i32, %c0_i32_0 : i32, i32
  }
  func.func @transform_6(%arg0: i32) -> (i32, i32) {
    %c0_i32 = arith.constant 0 : i32
    %c0_i32_0 = arith.constant 0 : i32
    %c0_i32_1 = arith.constant 0 : i32
    return %c0_i32, %c0_i32_0 : i32, i32
  }
  func.func @transform_7(%arg0: i32) -> (i32, i32) {
    %c0_i32 = arith.constant 0 : i32
    %c0_i32_0 = arith.constant 0 : i32
    %c0_i32_1 = arith.constant 0 : i32
    return %c0_i32, %c0_i32_0 : i32, i32
  }
  func.func @transform_8(%arg0: i32) -> (i32, i32) {
    %c0_i32 = arith.constant 0 : i32
    %c0_i32_0 = arith.constant 0 : i32
    %c0_i32_1 = arith.constant 0 : i32
    return %c0_i32, %c0_i32_0 : i32, i32
  }
  func.func @transform_9(%arg0: i32) -> (i32, i32) {
    %c0_i32 = arith.constant 0 : i32
    %c0_i32_0 = arith.constant 0 : i32
    %c0_i32_1 = arith.constant 0 : i32
    return %c0_i32, %c0_i32_0 : i32, i32
  }
  func.func @transform_10(%arg0: i32) -> (i32, i32) {
    %c0_i32 = arith.constant 0 : i32
    %c0_i32_0 = arith.constant 0 : i32
    %c0_i32_1 = arith.constant 0 : i32
    return %c0_i32, %c0_i32_0 : i32, i32
  }
  func.func @transform_11(%arg0: i32) -> (i32, i32) {
    %c0_i32 = arith.constant 0 : i32
    %c0_i32_0 = arith.constant 0 : i32
    %c0_i32_1 = arith.constant 0 : i32
    return %c0_i32, %c0_i32_0 : i32, i32
  }
  func.func @transform_12(%arg0: i32) -> (i32, i32) {
    %c0_i32 = arith.constant 0 : i32
    %c0_i32_0 = arith.constant 0 : i32
    %c0_i32_1 = arith.constant 0 : i32
    return %c0_i32, %c0_i32_0 : i32, i32
  }
}

</mosaic_0001>

<bundles_post_ra>
// kernel: tpu_custom_call.1
= control target key start
LH: loop header
LB: loop body
LE: loop exit
PB: predicated region body
PF: predicated region fallthrough
CT: control target
= control target key end

     0   :  { %17 = vsyncpa [#allocation3], 0  ;;  %s5311_s0 = inlined_call_operand.vmem [shape: s32[8,1], index: 0, kind: input, shape index: {}]   ;;  %s5312_s1 = inlined_call_operand.vmem [shape: bf16[64,16], index: 1, kind: input, shape index: {}]   ;;  %s5313_s2 = inlined_call_operand.vmem [shape: bf16[64,16], index: 2, kind: input, shape index: {}]   ;;  %s5314_s3 = inlined_call_operand.hbm [shape: f32[64,64], index: 3, kind: input, shape index: {}]   ;;  %s5315_s4 = inlined_call_operand.vmem [shape: bf16[32,256], index: 4, kind: input, shape index: {}]   ;;  %s5316_s5 = inlined_call_operand.hbm [shape: bf16[64,256], index: 5, kind: input, shape index: {}]   ;;  %s5317_s6 = inlined_call_operand.vmem [shape: f32[1,256], index: 6, kind: input, shape index: {}]   ;;  %s5318_s7 = inlined_call_operand.vmem [shape: bf16[128,256], index: 7, kind: input, shape index: {}]   ;;  %s5319_s8 = inlined_call_operand.hbm [shape: bf16[64,256], index: 8, kind: input, shape index: {}]   ;;  %s5320_s9 = inlined_call_operand.vmem [shape: f32[1,256], index: 9, kind: input, shape index: {}]   ;;  %s5321_s10 = inlined_call_operand.vmem [shape: f32[64,8], index: 10, kind: input, shape index: {}]   ;;  %s5322_s11 = inlined_call_operand.vmem [shape: f32[1,8], index: 11, kind: input, shape index: {}]   ;;  %s5323_s12 = inlined_call_operand.vmem [shape: f32[64,8], index: 12, kind: output, shape index: {}]  }
   0x1   :  { %18 = vsyncpa [#allocation5], 0  ;;  %s4065_s21 = smov [#allocation4]   ;;  %s4066_s23 = smov [#allocation2]  }
   0x2   :  { %s44_s22 = sshll.u32 %s4065_s21, 4  ;;  %s30_s24 = sshll.u32 %s4066_s23, 4  ;;  %s45_s22 = int_to_ptr.vmem [resolvable:$true] %s44_s22  ;;  %s31_s24 = int_to_ptr.vmem [resolvable:$true] %s30_s24 }
   0x3   :  { %s4009_s25 = scalar_lea.vmem %s45_s22, 1024  ;;  %p4014_p1 = scmp.lt.s32.totalorder %s45_s22, %s45_s22 }
   0x4   :  { %p4010_p0 = scmp.ne.s32.totalorder %s45_s22, %s4009_s25  ;;  %p4015_p2 = scmp.lt.s32.totalorder %s4009_s25, %s4009_s25 }
   0x6   :  { %p4016_p3 = por %p4015_p2, %p4014_p1 }
   0x8   :  { %p4017_p4 = pnand %p4016_p3, %p4010_p0 }
   0xa   :  { %4020 = shalt.err (!%p4017_p4)
}
   0xb   :  { %s4067_s26 = smov 128   ;;  %s4068_s27 = smov 8  }
   0xc   :  { %50 = dma.hbm_to_vmem [thread:$0]  %s5316_s5, 1024, %s45_s22, [#allocation5], %s4067_s26, %s4067_s26, %s4068_s27  }
   0xd   :  { %s4029_s30 = scalar_lea.vmem %s31_s24, 1024  ;;  %p4034_p6 = scmp.lt.s32.totalorder %s31_s24, %s31_s24 }
   0xe   :  { %p4030_p5 = scmp.ne.s32.totalorder %s31_s24, %s4029_s30  ;;  %p4035_p7 = scmp.lt.s32.totalorder %s4029_s30, %s4029_s30 }
  0x10   :  { %p4036_p8 = por %p4035_p7, %p4034_p6 }
  0x12   :  { %p4037_p9 = pnand %p4036_p8, %p4030_p5 }
  0x14   :  { %4040 = shalt.err (!%p4037_p9)
}
  0x15   :  { %36 = dma.hbm_to_vmem [thread:$0]  %s5314_s3, 1024, %s31_s24, [#allocation3], %s4067_s26, %s4067_s26, %s4068_s27  }
  0x16   :  { %s4069_s15 = smov [#allocation6]  }
  0x17   :  { %s60_s16 = sshll.u32 %s4069_s15, 4  ;;  %s61_s16 = int_to_ptr.vmem [resolvable:$true] %s60_s16 }
  0x18   :  { %s4049_s17 = scalar_lea.vmem %s61_s16, 1024  ;;  %p4054_p11 = scmp.lt.s32.totalorder %s61_s16, %s61_s16 }
  0x19   :  { %p4050_p10 = scmp.ne.s32.totalorder %s61_s16, %s4049_s17  ;;  %p4055_p12 = scmp.lt.s32.totalorder %s4049_s17, %s4049_s17 }
  0x1b   :  { %p4056_p13 = por %p4055_p12, %p4054_p11 }
  0x1d   :  { %p4057_p0 = pnand %p4056_p13, %p4050_p10 }
  0x1f   :  { %4060 = shalt.err (!%p4057_p0)
}
  0x20   :  { %66 = dma.hbm_to_vmem [thread:$0]  %s5319_s8, 1024, %s61_s16, [#allocation5], %s4067_s26, %s4067_s26, %s4068_s27  }
  0x21   :  { %4061 = dma.done.wait [#allocation3], 1024  }
  0x22   :  { %4062 = vsyncadd [#allocation3], 4294966272 }
  0x23   :  { %4063 = dma.done.wait [#allocation5], 2048  }
  0x24   :  { %4064 = vsyncadd [#allocation5], 4294965248  ;;  %v5327_v0 = vmov 0   ;;  %v3715_v1 = vld [vmem:[%s5315_s4 + $0x14] ss:$8 sps:$4 sm:$0xff]   ;;  %v3721_v5 = vld [vmem:[%s5313_s2] sm:$0xff]   ;;  %v87_v21 = vlaneseq }
  0x25   :  { %194 = vmatprep.mubr.bf16.mxu0 %v5327_v0  ;;  %309 = vmatprep.mubr.bf16.mxu1 %v5327_v0  ;;  %v3717_v2 = vld [vmem:[%s5315_s4 + $0x4] ss:$8 sps:$4 sm:$0xff]   ;;  %v3719_v3 = vld [vmem:[%s5315_s4 + $0x10] ss:$8 sps:$4 sm:$0xff]   ;;  %v3720_v4 = vld [vmem:[%s5315_s4] ss:$8 sps:$4 sm:$0xff]  }
  0x26   :  { %3714 = vset.pattern.permute.xlu0 %v5327_v0  ;;  %176 = vmatprep.subr.bf16.mxu0 %v3715_v1  ;;  %vm149_vm0 = vcmask 130048   ;;  %v3722_v6 = vld [vmem:[%s5312_s1] sm:$0xff]   ;;  %v4175_v7 = vld [vmem:[#allocation4 + $0x34] ss:$8 sps:$4 sm:$0xff]   ;;  %v4177_v8 = vld [vmem:[#allocation4 + $0x30] ss:$8 sps:$4 sm:$0xff]  }
  0x27   :  { %291 = vmatprep.subr.bf16.mxu1 %v3717_v2  ;;  %177 = vmatpush1.bf16.msra.mxu0 %v3719_v3  ;;  %v4183_v9 = vld [vmem:[#allocation4 + $0x24] ss:$8 sps:$4 sm:$0xff]   ;;  %v4187_v10 = vld [vmem:[#allocation4 + $0x20] ss:$8 sps:$4 sm:$0xff]   ;;  %v4198_v13 = vld [vmem:[#allocation4 + $0x14] ss:$8 sps:$4 sm:$0xff]  }
  0x28   :  { %292 = vmatpush1.bf16.msra.mxu1 %v3720_v4  ;;  %429 = vmatprep.subr.bf16.mxu0 %v4175_v7  ;;  %v3726_v11 = vld [vmem:[%s5313_s2 + $0x8] sm:$0xff]   ;;  %v4202_v14 = vld [vmem:[#allocation4 + $0x10] ss:$8 sps:$4 sm:$0xff]   ;;  %v4254_v22 = vshrl.u32 %v87_v21, 7  ;;  %v102_v28 = vld [vmem:[%s5317_s6] sm:$0x3] }
  0x29   :  { %512 = vmatprep.subr.bf16.mxu1 %v4175_v7  ;;  %v3727_v12 = vld [vmem:[%s5312_s1 + $0x8] sm:$0xff]   ;;  %v3731_v17 = vld [vmem:[%s5313_s2 + $0x10] sm:$0xff]   ;;  %v3736_v19 = vld [vmem:[%s5313_s2 + $0x18] sm:$0xff]   ;;  %s4071_s6 = smov 64   ;;  %vm417_vm3 = vcmask 523264   ;;  %s4079_s28 = smov 96  }
  0x2a   :  { %3278 = vmatmul.mubr.msk.bf16.vlgmr.msra.gmra.mxu0 %vm149_vm0, %v3721_v5  ;;  %v4207_v15 = vld [vmem:[#allocation4 + $0x4] ss:$8 sps:$4 sm:$0xff]   ;;  %v4209_v16 = vld [vmem:[#allocation4] ss:$8 sps:$4 sm:$0xff]   ;;  %v3732_v18 = vld [vmem:[%s5312_s1 + $0x10] sm:$0xff]   ;;  %v5330_v25 = vsub.s32 0, %v4254_v22 }
  0x2b   :  { %3288 = vmatmul.mubr.msk.bf16.vlgmr.msra.gmra.mxu1 %vm149_vm0, %v3722_v6  ;;  %204 = vmatprep.mubr.bf16.mxu0 %v5327_v0  ;;  %v3737_v20 = vld [vmem:[%s5312_s1 + $0x18] sm:$0xff]   ;;  %v5329_v29 = vsub.s32 1, %v4254_v22 }
  0x2c   :  { %430 = vmatpush1.bf16.msra.mxu0 %v4177_v8  ;;  %319 = vmatprep.mubr.bf16.mxu1 %v5327_v0  ;;  %v354_v33 = vrot.slane %v102_v28, %v5330_v25 }
  0x2d   :  { %431 = vmatprep.subr.bf16.mxu0 %v4183_v9  ;;  %513 = vmatpush1.bf16.msra.mxu1 %v4177_v8  ;;  %v358_v37 = vrot.slane %v102_v28, %v5329_v29 }
  0x2e   :  { %514 = vmatprep.subr.bf16.mxu1 %v4183_v9 }
  0x30   :  { %432 = vmatpush1.bf16.msra.mxu0 %v4187_v10 }
  0x31   :  { %433 = vmatprep.subr.bf16.mxu0 %v4198_v13  ;;  %515 = vmatpush1.bf16.msra.mxu1 %v4187_v10 }
  0x32   :  { %3279 = vmatmul.mubr.msk.bf16.gmra.mxu0 %vm149_vm0, %v3726_v11  ;;  %516 = vmatprep.subr.bf16.mxu1 %v4198_v13 }
  0x33   :  { %3289 = vmatmul.mubr.msk.bf16.gmra.mxu1 %vm149_vm0, %v3727_v12  ;;  %214 = vmatprep.mubr.bf16.mxu0 %v5327_v0 }
  0x34   :  { %329 = vmatprep.mubr.bf16.mxu1 %v5327_v0  ;;  %434 = vmatpush1.bf16.msra.mxu0 %v4202_v14 }
  0x35   :  { %435 = vmatprep.subr.bf16.mxu0 %v4207_v15  ;;  %517 = vmatpush1.bf16.msra.mxu1 %v4202_v14 }
  0x36   :  { %518 = vmatprep.subr.bf16.mxu1 %v4207_v15 }
  0x38   :  { %436 = vmatpush1.bf16.msra.mxu0 %v4209_v16 }
  0x39   :  { %599 = vmatprep.subr.bf16.mxu0 %v4175_v7  ;;  %519 = vmatpush1.bf16.msra.mxu1 %v4209_v16 }
  0x3a   :  { %3280 = vmatmul.mubr.msk.bf16.gmra.mxu0 %vm149_vm0, %v3731_v17  ;;  %686 = vmatprep.subr.bf16.mxu1 %v4175_v7 }
  0x3b   :  { %3290 = vmatmul.mubr.msk.bf16.gmra.mxu1 %vm149_vm0, %v3732_v18  ;;  %224 = vmatprep.mubr.bf16.mxu0 %v5327_v0 }
  0x3c   :  { %339 = vmatprep.mubr.bf16.mxu1 %v5327_v0 }
  0x42   :  { %3281 = vmatmul.mubr.msk.bf16.gmra.mxu0 %vm149_vm0, %v3736_v19 }
  0x43   :  { %3291 = vmatmul.mubr.msk.bf16.gmra.mxu1 %vm149_vm0, %v3737_v20  ;;  %453 = vmatprep.mubr.bf16.mxu0 %v5327_v0  ;;  %vm1177_vm0 = vcmask 261120  }
  0x44   :  { %536 = vmatprep.mubr.bf16.mxu1 %v5327_v0 }
  0x4a   :  { %454 = vmatmul.mubr.bf16.vlgmr.msra.gmra.mxu0 %v5327_v0 }
  0x4b   :  { %600 = vmatpush1.bf16.msra.mxu0 %v4177_v8  ;;  %623 = vmatprep.mubr.bf16.mxu0 %v5327_v0 }
  0x4c   :  { %601 = vmatprep.subr.bf16.mxu0 %v4183_v9 }
  0x4f   :  { %602 = vmatpush1.bf16.msra.mxu0 %v4187_v10 }
  0x50   :  { %603 = vmatprep.subr.bf16.mxu0 %v4198_v13 }
  0x53   :  { %604 = vmatpush1.bf16.msra.mxu0 %v4202_v14 }
  0x54   :  { %605 = vmatprep.subr.bf16.mxu0 %v4207_v15 }
  0x57   :  { %606 = vmatpush1.bf16.msra.mxu0 %v4209_v16 }
  0x58   :  { %773 = vmatprep.subr.bf16.mxu0 %v4175_v7 }
  0xea   :  { %v196_v23 = vpop.f32.mrf.mxu0 }
  0xeb   :  { %v311_v24 = vpop.f32.mrf.mxu1 }
  0xec   :  { %v4257_v26 = vpop.f32.mrf.mxu0 }
  0xed   :  { %v4259_v27 = vpop.f32.mrf.mxu1 }
  0xee   :  { %v200_v30 = vpop.f32.mrf.mxu0 }
  0xef   :  { %v315_v31 = vpop.f32.mrf.mxu1 }
  0xf0   :  { %v316_v32 = vadd.f32 %v315_v31, %v200_v30  ;;  %v202_v34 = vpop.f32.mrf.mxu0  ;;  %v312_v30 = vadd.f32 %v311_v24, %v196_v23 }
  0xf1   :  { %v317_v35 = vpop.f32.mrf.mxu1 }
  0xf2   :  { %v318_v36 = vadd.f32 %v317_v35, %v202_v34  ;;  %v4269_v38 = vadd.f32 %v354_v33, %v316_v32  ;;  %v206_v39 = vpop.f32.mrf.mxu0 }
  0xf3   :  { %v321_v40 = vpop.f32.mrf.mxu1 }
  0xf4   :  { %v322_v41 = vadd.f32 %v321_v40, %v206_v39  ;;  %v4271_v42 = vadd.f32 %v358_v37, %v318_v36  ;;  %v208_v43 = vpop.f32.mrf.mxu0 }
  0xf5   :  { %v323_v44 = vpop.f32.mrf.mxu1 }
  0xf6   :  { %v324_v45 = vadd.f32 %v323_v44, %v208_v43  ;;  %v4273_v46 = vadd.f32 %v354_v33, %v322_v41  ;;  %v210_v47 = vpop.f32.mrf.mxu0  ;;  %v361_v44 = vadd.f32 %v354_v33, %v312_v30 }
  0xf7   :  { %v325_v48 = vpop.f32.mrf.mxu1 }
  0xf8   :  { %v326_v49 = vadd.f32 %v325_v48, %v210_v47  ;;  %v4275_v50 = vadd.f32 %v358_v37, %v324_v45  ;;  %v212_v51 = vpop.f32.mrf.mxu0 }
  0xf9   :  { %v327_v52 = vpop.f32.mrf.mxu1 }
  0xfa   :  { %v328_v53 = vadd.f32 %v327_v52, %v212_v51  ;;  %v4277_v54 = vadd.f32 %v354_v33, %v326_v49  ;;  %v216_v55 = vpop.f32.mrf.mxu0 }
  0xfb   :  { %v331_v56 = vpop.f32.mrf.mxu1 }
  0xfc   :  { %v332_v57 = vadd.f32 %v331_v56, %v216_v55  ;;  %v4279_v58 = vadd.f32 %v358_v37, %v328_v53  ;;  %v218_v59 = vpop.f32.mrf.mxu0  ;;  %v314_v53 = vadd.f32 %v4259_v27, %v4257_v26 }
  0xfd   :  { %v333_v60 = vpop.f32.mrf.mxu1 }
  0xfe   :  { %v334_v61 = vadd.f32 %v333_v60, %v218_v59  ;;  %v4281_v62 = vadd.f32 %v354_v33, %v332_v57  ;;  %v220_v63 = vpop.f32.mrf.mxu0  ;;  %v362_v55 = vadd.f32 %v358_v37, %v314_v53 }
  0xff   :  { %v335_v1 = vpop.f32.mrf.mxu1 }
 0x100   :  { %v336_v2 = vadd.f32 %v335_v1, %v220_v63  ;;  %v4283_v3 = vadd.f32 %v358_v37, %v334_v61  ;;  %v222_v4 = vpop.f32.mrf.mxu0  ;;  %v83_v63 = vld [vmem:[%s5311_s0] sm:$0xff] }
 0x101   :  { %v337_v5 = vpop.f32.mrf.mxu1 }
 0x102   :  { %v338_v6 = vadd.f32 %v337_v5, %v222_v4  ;;  %v4285_v11 = vadd.f32 %v354_v33, %v336_v2  ;;  %v226_v12 = vpop.f32.mrf.mxu0 }
 0x103   :  { %v341_v17 = vpop.f32.mrf.mxu1 }
 0x104   :  { %v342_v18 = vadd.f32 %v341_v17, %v226_v12  ;;  %v4287_v19 = vadd.f32 %v358_v37, %v338_v6  ;;  %v228_v20 = vpop.f32.mrf.mxu0  ;;  %v4306_v17 = vand.u32 127, %v87_v21 }
 0x105   :  { %v343_v28 = vpop.f32.mrf.mxu1 }
 0x106   :  { %v344_v31 = vadd.f32 %v343_v28, %v228_v20  ;;  %v4289_v32 = vadd.f32 %v354_v33, %v342_v18  ;;  %v230_v34 = vpop.f32.mrf.mxu0  ;;  %vm89_vm1 = vcmp.lt.s32.totalorder %v4306_v17, 32  ;;  %v4072_v20 = vmov 7  }
 0x107   :  { %v345_v35 = vpop.f32.mrf.mxu1  ;;  %v4313_v28 = vsel %vm89_vm1, 0, %v4072_v20 }
 0x108   :  { %v346_v36 = vadd.f32 %v345_v35, %v230_v34  ;;  %v4291_v39 = vadd.f32 %v358_v37, %v344_v31  ;;  %v232_v40 = vpop.f32.mrf.mxu0 }
 0x109   :  { %v347_v41 = vpop.f32.mrf.mxu1 }
 0x10a   :  { %v348_v43 = vadd.f32 %v347_v41, %v232_v40  ;;  %v4293_v45 = vadd.f32 %v354_v33, %v346_v36  ;;  %v455_v47 = vpop.f32.mrf.mxu0 }
 0x10b   :  { %v462_v48 = vadd.f32 %v455_v47, %v361_v44 }
 0x10c   :  { %v4295_v49 = vadd.f32 %v358_v37, %v348_v43  ;;  %v457_v51 = vpop.f32.mrf.mxu0 }
 0x10d   :  { %v3300_v23 = vmul.f32 -1.442695, %v462_v48  ;;  %v463_v56 = vadd.f32 %v457_v51, %v362_v55 }
 0x10e   :  { %v459_v24 = vpop.f32.mrf.mxu0 }
 0x10f   :  { %3777 = vpow2.f32 %v3300_v23  ;;  %v3301_v1 = vmul.f32 -1.442695, %v463_v56 }
 0x110   :  { %v460_v52 = vpop.f32.mrf.mxu0  ;;  %3779 = vtanh.f32 %v463_v56 }
 0x11c   :  { %v3778_v57 = vpop.eup %3777 }
 0x11d   :  { %v467_v59 = vadd.f32 1.0, %v3778_v57  ;;  %v3780_v33 = vpop.eup %3779 }
 0x11f   :  { %3781 = vrcp.f32 %v467_v59 }
 0x120   :  { %3783 = vpow2.f32 %v3301_v1  ;;  %v4073_v1 = vmov 6  }
 0x12c   :  { %v3782_v60 = vpop.eup %3781 }
 0x12d   :  { %v478_v61 = vmul.f32 %v3782_v60, %v3780_v33  ;;  %v3784_v26 = vpop.eup %3783  ;;  %v477_v37 = vmul.f32 0.0, %v3782_v60 }
 0x12e   :  { %v474_v27 = vadd.f32 1.0, %v3784_v26  ;;  %v4345_v26 = vsel %vm89_vm1, 1, %v4073_v1 }
 0x12f   :  { %480 = vrot.lane.b32.xlu0 %v478_v61, %s4071_s6  ;;  %5346 = vst [vmem:[#allocation9_spill] sm:$0xff] %v4345_v26 }
 0x130   :  { %3785 = vrcp.f32 %v474_v27 }
 0x133   :  { %85 = vperm.xlu0 %3714, %v83_v63  }
 0x13d   :  { %v3786_v5 = vpop.eup %3785 }
 0x1a1   :  { %v481_v2 = vpop.permute.xlu0 %480 }
 0x1a2   :  { %v483_v4 = vadd.f32 %v481_v2, %v477_v37 }
 0x1a4   :  { %3787 = vtanh.f32 %v483_v4 }
 0x1ae   :  { %v4309_v18 = vpop.permute.xlu0 %85 }
 0x1af   :  { %vm487_vm2 = vcmp.gt.s32.totalorder %v4309_v18, %v4313_v28  ;;  %vm574_vm4 = vcmp.gt.s32.totalorder %v4309_v18, %v4345_v26  ;;  %vm498_vm5 = vcmp.gt.s32.totalorder %v4309_v18, 0  ;;  %vm5324_vm6 = vcmp.gt.s32.totalorder %v4309_v18, 1 }
 0x1b0   :  { %vm5325_vm9 = vcmp.gt.s32.totalorder %v4309_v18, 2  ;;  %vm5326_vm10 = vcmp.gt.s32.totalorder %v4309_v18, 3  ;;  %vm846_vm13 = vcmp.gt.s32.totalorder %v4309_v18, 4  ;;  %vm933_vm14 = vcmp.gt.s32.totalorder %v4309_v18, 5 }
 0x1b1   :  { %v3788_v6 = vpop.eup %3787 }
 0x1b2   :  { %v485_v12 = vmul.f32 %v3788_v6, %v3786_v5 }
 0x1b4   :  { %489 = vrot.lane.b32.xlu1 %v485_v12, %s4071_s6 }
 0x1b8   :  { %494 = vrot.lane.b32.xlu1 %v483_v4, %s4071_s6 }
 0x226   :  { %v490_v30 = vpop.permute.xlu1 %489 }
 0x227   :  { %v4320_v31 = vsel %vm487_vm2, %v490_v30, 0.0 }
 0x228   :  { %v500_v21 = vpack.c.bf16 %v4320_v31, %v4320_v31  ;;  %v4364_v5 = vsel %vm498_vm5, %v4320_v31, 0.0 }
 0x22a   :  { %v495_v34 = vpop.permute.xlu1 %494  ;;  %3302 = vmatmul.mubr.msk.bf16.vlgmr.msra.gmra.mxu1 %vm417_vm3, %v500_v21 }
 0x22b   :  { %v497_v35 = vsel %vm487_vm2, %v495_v34, 0.0  ;;  %687 = vmatpush1.bf16.msra.mxu1 %v4177_v8  ;;  %710 = vmatprep.mubr.bf16.mxu1 %v5327_v0 }
 0x22c   :  { %561 = vrot.lane.b32.xlu1 %v497_v35, %s4071_s6  ;;  %688 = vmatprep.subr.bf16.mxu1 %v4183_v9 }
 0x22f   :  { %689 = vmatpush1.bf16.msra.mxu1 %v4187_v10 }
 0x230   :  { %690 = vmatprep.subr.bf16.mxu1 %v4198_v13 }
 0x233   :  { %691 = vmatpush1.bf16.msra.mxu1 %v4202_v14 }
 0x234   :  { %692 = vmatprep.subr.bf16.mxu1 %v4207_v15 }
 0x237   :  { %693 = vmatpush1.bf16.msra.mxu1 %v4209_v16 }
 0x238   :  { %860 = vmatprep.subr.bf16.mxu1 %v4175_v7 }
 0x2ea   :  { %v538_v36 = vpop.f32.mrf.mxu1 }
 0x2eb   :  { %v545_v40 = vadd.f32 %v538_v36, %v4269_v38  ;;  %v562_v38 = vpop.permute.xlu1 %561 }
 0x2ec   :  { %v540_v41 = vpop.f32.mrf.mxu1 }
 0x2ed   :  { %v3303_v43 = vmul.f32 -1.442695, %v545_v40  ;;  %v546_v48 = vadd.f32 %v540_v41, %v4271_v42 }
 0x2ee   :  { %v542_v44 = vpop.f32.mrf.mxu1 }
 0x2ef   :  { %3789 = vpow2.f32 %v3303_v43  ;;  %v3304_v55 = vmul.f32 -1.442695, %v546_v48 }
 0x2f0   :  { %v543_v47 = vpop.f32.mrf.mxu1  ;;  %3791 = vtanh.f32 %v546_v48 }
 0x2fc   :  { %v3790_v51 = vpop.eup %3789 }
 0x2fd   :  { %v550_v23 = vadd.f32 1.0, %v3790_v51  ;;  %v3792_v24 = vpop.eup %3791 }
 0x2ff   :  { %3793 = vrcp.f32 %v550_v23 }
 0x300   :  { %3795 = vpow2.f32 %v3304_v55 }
 0x30c   :  { %v3794_v52 = vpop.eup %3793 }
 0x30d   :  { %v565_v53 = vmul.f32 %v3794_v52, %v3792_v24  ;;  %v3796_v56 = vpop.eup %3795  ;;  %v564_v59 = vmul.f32 %v3794_v52, %v562_v38 }
 0x30e   :  { %v557_v57 = vadd.f32 1.0, %v3796_v56 }
 0x30f   :  { %567 = vrot.lane.b32.xlu0 %v565_v53, %s4071_s6 }
 0x310   :  { %3797 = vrcp.f32 %v557_v57 }
 0x31d   :  { %v3798_v42 = vpop.eup %3797 }
 0x381   :  { %v568_v33 = vpop.permute.xlu0 %567 }
 0x382   :  { %v570_v60 = vadd.f32 %v568_v33, %v564_v59  ;;  %v4074_v59 = vmov 5  }
 0x383   :  { %v4392_v33 = vsel %vm89_vm1, 2, %v4074_v59 }
 0x384   :  { %3799 = vtanh.f32 %v570_v60  ;;  %581 = vrot.lane.b32.xlu0 %v570_v60, %s4071_s6  ;;  %5347 = vst [vmem:[#allocation10_spill] sm:$0xff] %v4392_v33  ;;  %vm661_vm7 = vcmp.gt.s32.totalorder %v4309_v18, %v4392_v33 }
 0x391   :  { %v3800_v61 = vpop.eup %3799 }
 0x392   :  { %v572_v63 = vmul.f32 %v3800_v61, %v3798_v42 }
 0x394   :  { %576 = vrot.lane.b32.xlu1 %v572_v63, %s4071_s6 }
 0x3f6   :  { %v582_v27 = vpop.permute.xlu0 %581 }
 0x3f7   :  { %v584_v37 = vsel %vm574_vm4, %v582_v27, %v497_v35 }
 0x3f8   :  { %648 = vrot.lane.b32.xlu1 %v584_v37, %s4071_s6 }
 0x406   :  { %v577_v2 = vpop.permute.xlu1 %576 }
 0x407   :  { %v4359_v4 = vsel %vm574_vm4, %v577_v2, %v4320_v31 }
 0x408   :  { %v4369_v6 = vsel %vm5324_vm6, %v4359_v4, 0.0  ;;  %v587_v12 = vpack.c.bf16 %v4359_v4, %v4359_v4 }
 0x409   :  { %v1140_v20 = vpack.c.bf16 %v4364_v5, %v4369_v6 }
 0x40a   :  { %3305 = vmatmul.mubr.msk.bf16.vlgmr.msra.gmra.mxu0 %vm417_vm3, %v587_v12 }
 0x40b   :  { %774 = vmatpush1.bf16.msra.mxu0 %v4177_v8  ;;  %797 = vmatprep.mubr.bf16.mxu0 %v5327_v0 }
 0x40c   :  { %775 = vmatprep.subr.bf16.mxu0 %v4183_v9 }
 0x40f   :  { %776 = vmatpush1.bf16.msra.mxu0 %v4187_v10 }
 0x410   :  { %777 = vmatprep.subr.bf16.mxu0 %v4198_v13 }
 0x413   :  { %778 = vmatpush1.bf16.msra.mxu0 %v4202_v14 }
 0x414   :  { %779 = vmatprep.subr.bf16.mxu0 %v4207_v15 }
 0x417   :  { %780 = vmatpush1.bf16.msra.mxu0 %v4209_v16 }
 0x418   :  { %947 = vmatprep.subr.bf16.mxu0 %v4175_v7 }
 0x4ca   :  { %v625_v30 = vpop.f32.mrf.mxu0 }
 0x4cb   :  { %v632_v21 = vadd.f32 %v625_v30, %v4273_v46  ;;  %v649_v46 = vpop.permute.xlu1 %648 }
 0x4cc   :  { %v627_v34 = vpop.f32.mrf.mxu0 }
 0x4cd   :  { %v3306_v35 = vmul.f32 -1.442695, %v632_v21  ;;  %v633_v41 = vadd.f32 %v627_v34, %v4275_v50 }
 0x4ce   :  { %v629_v36 = vpop.f32.mrf.mxu0 }
 0x4cf   :  { %3801 = vpow2.f32 %v3306_v35  ;;  %v3307_v23 = vmul.f32 -1.442695, %v633_v41 }
 0x4d0   :  { %v630_v40 = vpop.f32.mrf.mxu0  ;;  %3803 = vtanh.f32 %v633_v41 }
 0x4dc   :  { %v3802_v43 = vpop.eup %3801 }
 0x4dd   :  { %v637_v44 = vadd.f32 1.0, %v3802_v43  ;;  %v3804_v47 = vpop.eup %3803 }
 0x4df   :  { %3805 = vrcp.f32 %v637_v44 }
 0x4e0   :  { %3807 = vpow2.f32 %v3307_v23 }
 0x4ec   :  { %v3806_v48 = vpop.eup %3805 }
 0x4ed   :  { %v652_v51 = vmul.f32 %v3806_v48, %v3804_v47  ;;  %v3808_v24 = vpop.eup %3807  ;;  %v651_v53 = vmul.f32 %v3806_v48, %v649_v46 }
 0x4ee   :  { %v644_v52 = vadd.f32 1.0, %v3808_v24 }
 0x4ef   :  { %654 = vrot.lane.b32.xlu0 %v652_v51, %s4071_s6 }
 0x4f0   :  { %3809 = vrcp.f32 %v644_v52  ;;  %v4075_v52 = vmov 4  }
 0x4fd   :  { %v3810_v50 = vpop.eup %3809 }
 0x561   :  { %v655_v55 = vpop.permute.xlu0 %654 }
 0x562   :  { %v657_v56 = vadd.f32 %v655_v55, %v651_v53  ;;  %v4425_v53 = vsel %vm89_vm1, 3, %v4075_v52 }
 0x563   :  { %5348 = vst [vmem:[#allocation11_spill] sm:$0xff] %v4425_v53  ;;  %vm748_vm8 = vcmp.gt.s32.totalorder %v4309_v18, %v4425_v53 }
 0x564   :  { %3811 = vtanh.f32 %v657_v56  ;;  %668 = vrot.lane.b32.xlu0 %v657_v56, %s4071_s6 }
 0x571   :  { %v3812_v38 = vpop.eup %3811 }
 0x572   :  { %v659_v57 = vmul.f32 %v3812_v38, %v3810_v50 }
 0x574   :  { %663 = vrot.lane.b32.xlu1 %v659_v57, %s4071_s6 }
 0x5d6   :  { %v669_v60 = vpop.permute.xlu0 %668 }
 0x5d7   :  { %v671_v42 = vsel %vm661_vm7, %v669_v60, %v584_v37 }
 0x5d8   :  { %735 = vrot.lane.b32.xlu1 %v671_v42, %s4071_s6 }
 0x5e6   :  { %v664_v61 = vpop.permute.xlu1 %663 }
 0x5e7   :  { %v4404_v63 = vsel %vm661_vm7, %v664_v61, %v4359_v4 }
 0x5e8   :  { %v674_v1 = vpack.c.bf16 %v4404_v63, %v4404_v63  ;;  %v4444_v57 = vsel %vm5325_vm9, %v4404_v63, 0.0  ;;  %vm1020_vm9 = vcmp.gt.s32.totalorder %v4309_v18, 6 }
 0x5ea   :  { %3308 = vmatmul.mubr.msk.bf16.vlgmr.msra.gmra.mxu1 %vm417_vm3, %v674_v1 }
 0x5eb   :  { %861 = vmatpush1.bf16.msra.mxu1 %v4177_v8  ;;  %884 = vmatprep.mubr.bf16.mxu1 %v5327_v0 }
 0x5ec   :  { %862 = vmatprep.subr.bf16.mxu1 %v4183_v9 }
 0x5ef   :  { %863 = vmatpush1.bf16.msra.mxu1 %v4187_v10 }
 0x5f0   :  { %864 = vmatprep.subr.bf16.mxu1 %v4198_v13 }
 0x5f3   :  { %865 = vmatpush1.bf16.msra.mxu1 %v4202_v14 }
 0x5f4   :  { %866 = vmatprep.subr.bf16.mxu1 %v4207_v15 }
 0x5f7   :  { %867 = vmatpush1.bf16.msra.mxu1 %v4209_v16 }
 0x5f8   :  { %1034 = vmatprep.subr.bf16.mxu1 %v4175_v7 }
 0x6aa   :  { %v712_v27 = vpop.f32.mrf.mxu1 }
 0x6ab   :  { %v719_v37 = vadd.f32 %v712_v27, %v4277_v54  ;;  %v736_v54 = vpop.permute.xlu1 %735 }
 0x6ac   :  { %v714_v2 = vpop.f32.mrf.mxu1 }
 0x6ad   :  { %v3309_v12 = vmul.f32 -1.442695, %v719_v37  ;;  %v720_v34 = vadd.f32 %v714_v2, %v4279_v58 }
 0x6ae   :  { %v716_v30 = vpop.f32.mrf.mxu1 }
 0x6af   :  { %3813 = vpow2.f32 %v3309_v12  ;;  %v3310_v7 = vmul.f32 -1.442695, %v720_v34 }
 0x6b0   :  { %v717_v21 = vpop.f32.mrf.mxu1  ;;  %3815 = vtanh.f32 %v720_v34 }
 0x6bc   :  { %v3814_v35 = vpop.eup %3813 }
 0x6bd   :  { %v724_v36 = vadd.f32 1.0, %v3814_v35  ;;  %v3816_v40 = vpop.eup %3815 }
 0x6bf   :  { %3817 = vrcp.f32 %v724_v36 }
 0x6c0   :  { %3819 = vpow2.f32 %v3310_v7 }
 0x6cc   :  { %v3818_v41 = vpop.eup %3817 }
 0x6cd   :  { %v739_v43 = vmul.f32 %v3818_v41, %v3816_v40  ;;  %v3820_v44 = vpop.eup %3819  ;;  %v738_v48 = vmul.f32 %v3818_v41, %v736_v54 }
 0x6ce   :  { %v731_v47 = vadd.f32 1.0, %v3820_v44 }
 0x6cf   :  { %741 = vrot.lane.b32.xlu0 %v739_v43, %s4071_s6 }
 0x6d0   :  { %3821 = vrcp.f32 %v731_v47 }
 0x6dd   :  { %v3822_v58 = vpop.eup %3821 }
 0x741   :  { %v742_v51 = vpop.permute.xlu0 %741 }
 0x742   :  { %v744_v23 = vadd.f32 %v742_v51, %v738_v48 }
 0x744   :  { %3823 = vtanh.f32 %v744_v23  ;;  %755 = vrot.lane.b32.xlu0 %v744_v23, %s4071_s6  ;;  %v4076_v23 = vmov 3  }
 0x751   :  { %v3824_v24 = vpop.eup %3823 }
 0x752   :  { %v746_v46 = vmul.f32 %v3824_v24, %v3822_v58  ;;  %v4471_v58 = vsel %vm89_vm1, 4, %v4076_v23 }
 0x753   :  { %5349 = vst [vmem:[#allocation12_spill] sm:$0xff] %v4471_v58  ;;  %vm835_vm11 = vcmp.gt.s32.totalorder %v4309_v18, %v4471_v58 }
 0x754   :  { %750 = vrot.lane.b32.xlu1 %v746_v46, %s4071_s6 }
 0x7b6   :  { %v756_v55 = vpop.permute.xlu0 %755 }
 0x7b7   :  { %v758_v56 = vsel %vm748_vm8, %v756_v55, %v671_v42 }
 0x7b8   :  { %822 = vrot.lane.b32.xlu1 %v758_v56, %s4071_s6 }
 0x7c6   :  { %v751_v50 = vpop.permute.xlu1 %750 }
 0x7c7   :  { %v4439_v38 = vsel %vm748_vm8, %v751_v50, %v4404_v63 }
 0x7c8   :  { %v4449_v59 = vsel %vm5326_vm10, %v4439_v38, 0.0  ;;  %v761_v60 = vpack.c.bf16 %v4439_v38, %v4439_v38  ;;  %vm1102_vm10 = vcmp.gt.s32.totalorder %v4309_v18, 7 }
 0x7c9   :  { %v1139_v42 = vpack.c.bf16 %v4444_v57, %v4449_v59 }
 0x7ca   :  { %3311 = vmatmul.mubr.msk.bf16.vlgmr.msra.gmra.mxu0 %vm417_vm3, %v761_v60 }
 0x7cb   :  { %948 = vmatpush1.bf16.msra.mxu0 %v4177_v8  ;;  %971 = vmatprep.mubr.bf16.mxu0 %v5327_v0 }
 0x7cc   :  { %949 = vmatprep.subr.bf16.mxu0 %v4183_v9 }
 0x7cf   :  { %950 = vmatpush1.bf16.msra.mxu0 %v4187_v10 }
 0x7d0   :  { %951 = vmatprep.subr.bf16.mxu0 %v4198_v13 }
 0x7d3   :  { %952 = vmatpush1.bf16.msra.mxu0 %v4202_v14 }
 0x7d4   :  { %953 = vmatprep.subr.bf16.mxu0 %v4207_v15 }
 0x7d7   :  { %954 = vmatpush1.bf16.msra.mxu0 %v4209_v16 }
 0x88a   :  { %v799_v61 = vpop.f32.mrf.mxu0 }
 0x88b   :  { %v806_v1 = vadd.f32 %v799_v61, %v4281_v62  ;;  %v823_v62 = vpop.permute.xlu1 %822 }
 0x88c   :  { %v801_v27 = vpop.f32.mrf.mxu0 }
 0x88d   :  { %v3312_v37 = vmul.f32 -1.442695, %v806_v1  ;;  %v807_v30 = vadd.f32 %v801_v27, %v4283_v3 }
 0x88e   :  { %v803_v2 = vpop.f32.mrf.mxu0 }
 0x88f   :  { %3825 = vpow2.f32 %v3312_v37  ;;  %v3313_v41 = vmul.f32 -1.442695, %v807_v30 }
 0x890   :  { %v804_v12 = vpop.f32.mrf.mxu0  ;;  %3827 = vtanh.f32 %v807_v30 }
 0x89c   :  { %v3826_v21 = vpop.eup %3825 }
 0x89d   :  { %v811_v34 = vadd.f32 1.0, %v3826_v21  ;;  %v3828_v35 = vpop.eup %3827 }
 0x89f   :  { %3829 = vrcp.f32 %v811_v34 }
 0x8a0   :  { %3831 = vpow2.f32 %v3313_v41 }
 0x8ac   :  { %v3830_v36 = vpop.eup %3829 }
 0x8ad   :  { %v826_v40 = vmul.f32 %v3830_v36, %v3828_v35  ;;  %v3832_v43 = vpop.eup %3831  ;;  %v825_v44 = vmul.f32 %v3830_v36, %v823_v62 }
 0x8ae   :  { %v818_v7 = vadd.f32 1.0, %v3832_v43 }
 0x8af   :  { %828 = vrot.lane.b32.xlu0 %v826_v40, %s4071_s6  ;;  %v4077_v40 = vmov 2  }
 0x8b0   :  { %3833 = vrcp.f32 %v818_v7  ;;  %v4503_v41 = vsel %vm89_vm1, 5, %v4077_v40 }
 0x8b1   :  { %5350 = vst [vmem:[#allocation13_spill] sm:$0xff] %v4503_v41  ;;  %vm922_vm12 = vcmp.gt.s32.totalorder %v4309_v18, %v4503_v41 }
 0x8bd   :  { %v3834_v3 = vpop.eup %3833 }
 0x921   :  { %v829_v54 = vpop.permute.xlu0 %828 }
 0x922   :  { %v831_v47 = vadd.f32 %v829_v54, %v825_v44 }
 0x924   :  { %3835 = vtanh.f32 %v831_v47  ;;  %842 = vrot.lane.b32.xlu0 %v831_v47, %s4071_s6 }
 0x931   :  { %v3836_v48 = vpop.eup %3835 }
 0x932   :  { %v833_v51 = vmul.f32 %v3836_v48, %v3834_v3 }
 0x934   :  { %837 = vrot.lane.b32.xlu1 %v833_v51, %s4071_s6 }
 0x996   :  { %v843_v24 = vpop.permute.xlu0 %842 }
 0x997   :  { %v845_v46 = vsel %vm835_vm11, %v843_v24, %v758_v56 }
 0x998   :  { %909 = vrot.lane.b32.xlu1 %v845_v46, %s4071_s6 }
 0x9a6   :  { %v838_v52 = vpop.permute.xlu1 %837 }
 0x9a7   :  { %v4483_v55 = vsel %vm835_vm11, %v838_v52, %v4439_v38 }
 0x9a8   :  { %v848_v50 = vpack.c.bf16 %v4483_v55, %v4483_v55  ;;  %v4522_v54 = vsel %vm846_vm13, %v4483_v55, 0.0 }
 0x9aa   :  { %3314 = vmatmul.mubr.msk.bf16.vlgmr.msra.gmra.mxu1 %vm417_vm3, %v848_v50 }
 0x9ab   :  { %1035 = vmatpush1.bf16.msra.mxu1 %v4177_v8  ;;  %1058 = vmatprep.mubr.bf16.mxu1 %v5327_v0 }
 0x9ac   :  { %1036 = vmatprep.subr.bf16.mxu1 %v4183_v9 }
 0x9af   :  { %1037 = vmatpush1.bf16.msra.mxu1 %v4187_v10 }
 0x9b0   :  { %1038 = vmatprep.subr.bf16.mxu1 %v4198_v13 }
 0x9b3   :  { %1039 = vmatpush1.bf16.msra.mxu1 %v4202_v14 }
 0x9b4   :  { %1040 = vmatprep.subr.bf16.mxu1 %v4207_v15 }
 0x9b7   :  { %1041 = vmatpush1.bf16.msra.mxu1 %v4209_v16 }
 0xa6a   :  { %v886_v56 = vpop.f32.mrf.mxu1 }
 0xa6b   :  { %v893_v60 = vadd.f32 %v886_v56, %v4285_v11  ;;  %v910_v11 = vpop.permute.xlu1 %909 }
 0xa6c   :  { %v888_v61 = vpop.f32.mrf.mxu1 }
 0xa6d   :  { %v3315_v1 = vmul.f32 -1.442695, %v893_v60  ;;  %v894_v9 = vadd.f32 %v888_v61, %v4287_v19 }
 0xa6e   :  { %v890_v8 = vpop.f32.mrf.mxu1 }
 0xa6f   :  { %3837 = vpow2.f32 %v3315_v1  ;;  %v3316_v15 = vmul.f32 -1.442695, %v894_v9 }
 0xa70   :  { %v891_v27 = vpop.f32.mrf.mxu1  ;;  %3839 = vtanh.f32 %v894_v9 }
 0xa7c   :  { %v3838_v37 = vpop.eup %3837 }
 0xa7d   :  { %v898_v10 = vadd.f32 1.0, %v3838_v37  ;;  %v3840_v13 = vpop.eup %3839 }
 0xa7f   :  { %3841 = vrcp.f32 %v898_v10 }
 0xa80   :  { %3843 = vpow2.f32 %v3316_v15 }
 0xa8c   :  { %v3842_v14 = vpop.eup %3841 }
 0xa8d   :  { %v913_v2 = vmul.f32 %v3842_v14, %v3840_v13  ;;  %v3844_v16 = vpop.eup %3843  ;;  %v912_v30 = vmul.f32 %v3842_v14, %v910_v11 }
 0xa8e   :  { %v905_v12 = vadd.f32 1.0, %v3844_v16 }
 0xa8f   :  { %915 = vrot.lane.b32.xlu0 %v913_v2, %s4071_s6 }
 0xa90   :  { %3845 = vrcp.f32 %v905_v12  ;;  %v4078_v12 = vmov 1  }
 0xa9d   :  { %v3846_v19 = vpop.eup %3845 }
 0xb01   :  { %v916_v21 = vpop.permute.xlu0 %915 }
 0xb02   :  { %v918_v34 = vadd.f32 %v916_v21, %v912_v30  ;;  %v4545_v30 = vsel %vm89_vm1, 6, %v4078_v12  ;;  %v3747_v12 = vld [vmem:[%s5318_s7 + $0x30] ss:$8 sps:$4 sm:$0xff]  }
 0xb03   :  { %5351 = vst [vmem:[#allocation14_spill] sm:$0xff] %v4545_v30  ;;  %vm1009_vm15 = vcmp.gt.s32.totalorder %v4309_v18, %v4545_v30 }
 0xb04   :  { %3847 = vtanh.f32 %v918_v34  ;;  %929 = vrot.lane.b32.xlu0 %v918_v34, %s4071_s6 }
 0xb11   :  { %v3848_v35 = vpop.eup %3847 }
 0xb12   :  { %v920_v36 = vmul.f32 %v3848_v35, %v3846_v19 }
 0xb14   :  { %924 = vrot.lane.b32.xlu1 %v920_v36, %s4071_s6  ;;  %v3741_v36 = vld [vmem:[%s5318_s7 + $0x10] ss:$8 sps:$4 sm:$0xff]  }
 0xb76   :  { %v930_v43 = vpop.permute.xlu0 %929 }
 0xb77   :  { %v932_v62 = vsel %vm922_vm12, %v930_v43, %v845_v46  ;;  %v3746_v43 = vld [vmem:[%s5318_s7 + $0x4] ss:$8 sps:$4 sm:$0xff]  }
 0xb78   :  { %996 = vrot.lane.b32.xlu1 %v932_v62, %s4071_s6 }
 0xb86   :  { %v925_v7 = vpop.permute.xlu1 %924 }
 0xb87   :  { %v4517_v44 = vsel %vm922_vm12, %v925_v7, %v4483_v55  ;;  %v1129_v7 = vpack.c.bf16 %v4369_v6, %v4364_v5 }
 0xb88   :  { %v4527_v47 = vsel %vm933_vm14, %v4517_v44, 0.0  ;;  %v935_v3 = vpack.c.bf16 %v4517_v44, %v4517_v44 }
 0xb89   :  { %v1138_v48 = vpack.c.bf16 %v4522_v54, %v4527_v47 }
 0xb8a   :  { %3317 = vmatmul.mubr.msk.bf16.vlgmr.msra.gmra.mxu0 %vm417_vm3, %v935_v3  ;;  %v1130_v3 = vpack.c.bf16 %v4449_v59, %v4444_v57 }
 0xb8b   :  { %1222 = vmatprep.mubr.bf16.mxu0 %v5327_v0 }
 0xc4a   :  { %v973_v51 = vpop.f32.mrf.mxu0 }
 0xc4b   :  { %v980_v23 = vadd.f32 %v973_v51, %v4289_v32  ;;  %v997_v32 = vpop.permute.xlu1 %996  ;;  %v1131_v51 = vpack.c.bf16 %v4527_v47, %v4522_v54 }
 0xc4c   :  { %v975_v24 = vpop.f32.mrf.mxu0 }
 0xc4d   :  { %v3318_v46 = vmul.f32 -1.442695, %v980_v23  ;;  %v981_v56 = vadd.f32 %v975_v24, %v4291_v39  ;;  %v3743_v39 = vld [vmem:[%s5318_s7 + $0x14] ss:$8 sps:$4 sm:$0xff]  }
 0xc4e   :  { %v977_v52 = vpop.f32.mrf.mxu0  ;;  %1307 = vmatprep.subr.bf16.mxu1 %v3743_v39 }
 0xc4f   :  { %3849 = vpow2.f32 %v3318_v46  ;;  %v3319_v9 = vmul.f32 -1.442695, %v981_v56 }
 0xc50   :  { %v978_v50 = vpop.f32.mrf.mxu0  ;;  %3851 = vtanh.f32 %v981_v56 }
 0xc5c   :  { %v3850_v60 = vpop.eup %3849 }
 0xc5d   :  { %v985_v61 = vadd.f32 1.0, %v3850_v60  ;;  %v3852_v1 = vpop.eup %3851 }
 0xc5f   :  { %3853 = vrcp.f32 %v985_v61 }
 0xc60   :  { %3855 = vpow2.f32 %v3319_v9 }
 0xc6c   :  { %v3854_v8 = vpop.eup %3853 }
 0xc6d   :  { %v1000_v27 = vmul.f32 %v3854_v8, %v3852_v1  ;;  %v3856_v37 = vpop.eup %3855  ;;  %v999_v13 = vmul.f32 %v3854_v8, %v997_v32 }
 0xc6e   :  { %v992_v10 = vadd.f32 1.0, %v3856_v37 }
 0xc6f   :  { %1002 = vrot.lane.b32.xlu0 %v1000_v27, %s4071_s6 }
 0xc70   :  { %3857 = vrcp.f32 %v992_v10 }
 0xc7d   :  { %v3858_v15 = vpop.eup %3857 }
 0xce1   :  { %v1003_v14 = vpop.permute.xlu0 %1002 }
 0xce2   :  { %v1005_v2 = vadd.f32 %v1003_v14, %v999_v13 }
 0xce4   :  { %3859 = vtanh.f32 %v1005_v2  ;;  %1016 = vrot.lane.b32.xlu0 %v1005_v2, %s4071_s6 }
 0xcf1   :  { %v3860_v16 = vpop.eup %3859 }
 0xcf2   :  { %v1007_v11 = vmul.f32 %v3860_v16, %v3858_v15  ;;  %v1134_v16 = vpack.c.bf16 %v4483_v55, %v4517_v44 }
 0xcf4   :  { %1011 = vrot.lane.b32.xlu1 %v1007_v11, %s4071_s6  ;;  %v1136_v11 = vpack.c.bf16 %v4320_v31, %v4359_v4 }
 0xd56   :  { %v1017_v21 = vpop.permute.xlu0 %1016 }
 0xd57   :  { %v1019_v34 = vsel %vm1009_vm15, %v1017_v21, %v932_v62  ;;  %v3744_v62 = vld [vmem:[%s5318_s7] ss:$8 sps:$4 sm:$0xff]   ;;  %v3749_v21 = vld [vmem:[%s5318_s7 + $0x34] ss:$8 sps:$4 sm:$0xff]  }
 0xd58   :  { %1083 = vrot.lane.b32.xlu1 %v1019_v34, %s4071_s6  ;;  %v3752_v34 = vld [vmem:[%s5318_s7 + $0x24] ss:$8 sps:$4 sm:$0xff]   ;;  %1202 = vmatprep.subr.bf16.mxu0 %v3749_v21 }
 0xd59   :  { %1203 = vmatpush1.bf16.msra.mxu0 %v3747_v12 }
 0xd5a   :  { %1204 = vmatprep.subr.bf16.mxu0 %v3752_v34 }
 0xd66   :  { %v1012_v19 = vpop.permute.xlu1 %1011 }
 0xd67   :  { %v4557_v35 = vsel %vm1009_vm15, %v1012_v19, %v4517_v44  ;;  %v3750_v19 = vld [vmem:[%s5318_s7 + $0x20] ss:$8 sps:$4 sm:$0xff]  }
 0xd68   :  { %v1022_v40 = vpack.c.bf16 %v4557_v35, %v4557_v35  ;;  %1205 = vmatpush1.bf16.msra.mxu0 %v3750_v19  ;;  %v1021_v17 = vsel %vm1020_vm9, %v4557_v35, 0.0 }
 0xd6a   :  { %3320 = vmatmul.mubr.msk.bf16.vlgmr.msra.gmra.mxu1 %vm417_vm3, %v1022_v40  ;;  %v3755_v40 = vld [vmem:[%s5318_s7 + $0x54] ss:$8 sps:$4 sm:$0xff]  }
 0xd6b   :  { %1308 = vmatpush1.bf16.msra.mxu1 %v3741_v36  ;;  %1327 = vmatprep.mubr.bf16.mxu1 %v5327_v0  ;;  %v3758_v36 = vld [vmem:[%s5318_s7 + $0x74] ss:$8 sps:$4 sm:$0xff]  }
 0xd6c   :  { %1309 = vmatprep.subr.bf16.mxu1 %v3746_v43  ;;  %v3756_v43 = vld [vmem:[%s5318_s7 + $0x70] ss:$8 sps:$4 sm:$0xff]   ;;  %1412 = vmatprep.subr.bf16.mxu0 %v3755_v40 }
 0xd6f   :  { %1310 = vmatpush1.bf16.msra.mxu1 %v3744_v62  ;;  %v3759_v62 = vld [vmem:[%s5318_s7 + $0x60] ss:$8 sps:$4 sm:$0xff]  }
 0xd70   :  { %1545 = vmatprep.subr.bf16.mxu1 %v3758_v36 }
 0xd72   :  { %3335 = vmatmul.mubr.msk.bf16.vlgmr.msra.gmra.mxu1 %vm1177_vm0, %v1129_v7  ;;  %v3761_v7 = vld [vmem:[%s5318_s7 + $0x64] ss:$8 sps:$4 sm:$0xff]  }
 0xd73   :  { %1337 = vmatprep.mubr.bf16.mxu1 %v5327_v0  ;;  %1546 = vmatpush1.bf16.msra.mxu1 %v3756_v43 }
 0xd74   :  { %1547 = vmatprep.subr.bf16.mxu1 %v3761_v7 }
 0xd77   :  { %1548 = vmatpush1.bf16.msra.mxu1 %v3759_v62 }
 0xd7a   :  { %3336 = vmatmul.mubr.msk.bf16.gmra.mxu1 %vm1177_vm0, %v1130_v3  ;;  %v4624_v3 = vsel %vm89_vm1, 7, %v5327_v0  ;;  %vm5369_vm1 = vcmp.gt.s32.totalorder %v4309_v18, 3 }
 0xd7b   :  { %1347 = vmatprep.mubr.bf16.mxu1 %v5327_v0  ;;  %5352 = vst [vmem:[#allocation15_spill] sm:$0xff] %v4624_v3  ;;  %vm1096_vm6 = vcmp.gt.s32.totalorder %v4309_v18, %v4624_v3 }
 0xd82   :  { %3337 = vmatmul.mubr.msk.bf16.gmra.mxu1 %vm1177_vm0, %v1131_v51 }
 0xd83   :  { %1357 = vmatprep.mubr.bf16.mxu1 %v5327_v0 }
 0xe2a   :  { %v1060_v23 = vpop.f32.mrf.mxu1 }
 0xe2b   :  { %v1067_v24 = vadd.f32 %v1060_v23, %v4293_v45  ;;  %v1084_v45 = vpop.permute.xlu1 %1083 }
 0xe2c   :  { %v1062_v46 = vpop.f32.mrf.mxu1 }
 0xe2d   :  { %v3321_v52 = vmul.f32 -1.442695, %v1067_v24  ;;  %v1068_v60 = vadd.f32 %v1062_v46, %v4295_v49 }
 0xe2e   :  { %v1064_v50 = vpop.f32.mrf.mxu1 }
 0xe2f   :  { %3861 = vpow2.f32 %v3321_v52  ;;  %v3322_v37 = vmul.f32 -1.442695, %v1068_v60 }
 0xe30   :  { %v1065_v56 = vpop.f32.mrf.mxu1  ;;  %3863 = vtanh.f32 %v1068_v60  ;;  %v1141_v60 = vpack.c.bf16 %v4359_v4, %v4320_v31  ;;  %v3764_v31 = vld [vmem:[%s5318_s7 + $0x44] ss:$8 sps:$4 sm:$0xff]  }
 0xe31   :  { %v1135_v56 = vpack.c.bf16 %v4404_v63, %v4439_v38 }
 0xe32   :  { %v4736_v5 = vpop.f32.mrf.mxu1 }
 0xe34   :  { %v4738_v6 = vpop.f32.mrf.mxu1 }
 0xe3c   :  { %v3862_v61 = vpop.eup %3861 }
 0xe3d   :  { %v1072_v1 = vadd.f32 1.0, %v3862_v61  ;;  %v3864_v8 = vpop.eup %3863  ;;  %v1142_v61 = vpack.c.bf16 %v4439_v38, %v4404_v63  ;;  %v3762_v63 = vld [vmem:[%s5318_s7 + $0x40] ss:$8 sps:$4 sm:$0xff]  }
 0xe3f   :  { %3865 = vrcp.f32 %v1072_v1 }
 0xe40   :  { %3867 = vpow2.f32 %v3322_v37  ;;  %v4671_v37 = vld [vmem:[#allocation6 + $0x30] ss:$8 sps:$4 sm:$0xff]  }
 0xe4c   :  { %v3866_v27 = vpop.eup %3865 }
 0xe4d   :  { %v1087_v9 = vmul.f32 %v3866_v27, %v3864_v8  ;;  %v3868_v32 = vpop.eup %3867  ;;  %v1086_v13 = vmul.f32 %v3866_v27, %v1084_v45  ;;  %v4654_v8 = vld [vmem:[#allocation6 + $0x34] ss:$8 sps:$4 sm:$0xff]   ;;  %v3753_v27 = vld [vmem:[%s5318_s7 + $0x50] ss:$8 sps:$4 sm:$0xff]   ;;  %v4679_v45 = vld [vmem:[#allocation6 + $0x20] ss:$8 sps:$4 sm:$0xff]  }
 0xe4e   :  { %v1079_v10 = vadd.f32 1.0, %v3868_v32  ;;  %5353 = vst [vmem:[#allocation16_spill] sm:$0xff] %v4654_v8  ;;  %1777 = vmatprep.subr.bf16.mxu1 %v4654_v8  ;;  %v4675_v32 = vld [vmem:[#allocation6 + $0x24] ss:$8 sps:$4 sm:$0xff]  }
 0xe4f   :  { %1089 = vrot.lane.b32.xlu0 %v1087_v9, %s4071_s6 }
 0xe50   :  { %3869 = vrcp.f32 %v1079_v10  ;;  %v4681_v10 = vld [vmem:[#allocation6 + $0x14] ss:$8 sps:$4 sm:$0xff]  }
 0xe55   :  { %v5359_v28 = vld [vmem:[#allocation16_spill] sm:$0xff] }
 0xe5d   :  { %v3870_v49 = vpop.eup %3869 }
 0xec1   :  { %v1090_v14 = vpop.permute.xlu0 %1089 }
 0xec2   :  { %v1092_v2 = vadd.f32 %v1090_v14, %v1086_v13  ;;  %v4687_v14 = vld [vmem:[#allocation6 + $0x10] ss:$8 sps:$4 sm:$0xff]  }
 0xec4   :  { %3871 = vtanh.f32 %v1092_v2  ;;  %v4690_v2 = vld [vmem:[#allocation6 + $0x4] ss:$8 sps:$4 sm:$0xff]  }
 0xed1   :  { %v3872_v39 = vpop.eup %3871 }
 0xed2   :  { %v1094_v15 = vmul.f32 %v3872_v39, %v3870_v49  ;;  %v4695_v49 = vld [vmem:[#allocation6] ss:$8 sps:$4 sm:$0xff]  }
 0xed4   :  { %1098 = vrot.lane.b32.xlu1 %v1094_v15, %s4071_s6 }
 0xed8   :  { %1151 = vrot.lane.b32.xlu1 %v1134_v16, %s4079_s28 }
 0xedc   :  { %1155 = vrot.lane.b32.xlu1 %v1136_v11, %s4079_s28 }
 0xf46   :  { %v1099_v51 = vpop.permute.xlu1 %1098 }
 0xf47   :  { %v1101_v23 = vsel %vm1096_vm6, %v1099_v51, %v4557_v35 }
 0xf48   :  { %v1103_v24 = vsel %vm1102_vm10, %v1101_v23, 0.0  ;;  %v1133_v46 = vpack.c.bf16 %v4557_v35, %v1101_v23  ;;  %v1144_v1 = vpack.c.bf16 %v1101_v23, %v4557_v35 }
 0xf49   :  { %v1132_v52 = vpack.c.bf16 %v1103_v24, %v1021_v17  ;;  %v1137_v50 = vpack.c.bf16 %v1021_v17, %v1103_v24 }
 0xf4a   :  { %1149 = vrot.lane.b32.xlu0 %v1133_v46, %s4079_s28  ;;  %v1152_v35 = vpop.permute.xlu1 %1151 }
 0xf4b   :  { %3338 = vmatmul.mubr.msk.bf16.gmra.mxu1 %vm1177_vm0, %v1132_v52 }
 0xf4c   :  { %1565 = vmatprep.mubr.bf16.mxu1 %v5327_v0 }
 0xf4e   :  { %1153 = vrot.lane.b32.xlu0 %v1135_v56, %s4079_s28  ;;  %v1156_v39 = vpop.permute.xlu1 %1155 }
 0xf52   :  { %1493 = vrot.lane.b32.xlu0 %v1141_v60, %s4079_s28 }
 0xf56   :  { %1495 = vrot.lane.b32.xlu0 %v1142_v61, %s4079_s28 }
 0xf5a   :  { %1499 = vrot.lane.b32.xlu0 %v1144_v1, %s4079_s28 }
 0xfbc   :  { %v1150_v4 = vpop.permute.xlu0 %1149 }
 0xfbd   :  { %3327 = vmatmul.mubr.msk.bf16.vlgmr.msra.gmra.mxu0 %vm1177_vm0, %v1150_v4 }
 0xfbe   :  { %1413 = vmatpush1.bf16.msra.mxu0 %v3753_v27  ;;  %1232 = vmatprep.mubr.bf16.mxu0 %v5327_v0 }
 0xfbf   :  { %1414 = vmatprep.subr.bf16.mxu0 %v3764_v31 }
 0xfc0   :  { %v1154_v38 = vpop.permute.xlu0 %1153 }
 0xfc2   :  { %1415 = vmatpush1.bf16.msra.mxu0 %v3762_v63 }
 0xfc3   :  { %1697 = vmatprep.subr.bf16.mxu0 %v4654_v8 }
 0xfc4   :  { %v1494_v9 = vpop.permute.xlu0 %1493 }
 0xfc5   :  { %3328 = vmatmul.mubr.msk.bf16.gmra.mxu0 %vm1177_vm0, %v1152_v35  ;;  %3351 = vmatmul.mubr.msk.bf16.vlgmr.msra.gmra.mxu1 %vm1177_vm0, %v1494_v9 }
 0xfc6   :  { %1242 = vmatprep.mubr.bf16.mxu0 %v5327_v0  ;;  %1575 = vmatprep.mubr.bf16.mxu1 %v5327_v0 }
 0xfc7   :  { %1778 = vmatpush1.bf16.msra.mxu1 %v4671_v37 }
 0xfc8   :  { %1779 = vmatprep.subr.bf16.mxu1 %v4675_v32  ;;  %v1496_v13 = vpop.permute.xlu0 %1495 }
 0xfcb   :  { %1780 = vmatpush1.bf16.msra.mxu1 %v4679_v45 }
 0xfcc   :  { %1781 = vmatprep.subr.bf16.mxu1 %v4681_v10 }
 0xfcd   :  { %3329 = vmatmul.mubr.msk.bf16.gmra.mxu0 %vm1177_vm0, %v1154_v38  ;;  %3352 = vmatmul.mubr.msk.bf16.gmra.mxu1 %vm1177_vm0, %v1496_v13 }
 0xfce   :  { %1252 = vmatprep.mubr.bf16.mxu0 %v5327_v0  ;;  %1585 = vmatprep.mubr.bf16.mxu1 %v5327_v0 }
 0xfcf   :  { %1782 = vmatpush1.bf16.msra.mxu1 %v4687_v14 }
 0xfd0   :  { %1783 = vmatprep.subr.bf16.mxu1 %v4690_v2 }
 0xfd3   :  { %1784 = vmatpush1.bf16.msra.mxu1 %v4695_v49 }
 0xfd4   :  { %1945 = vmatprep.subr.bf16.mxu1 %v4654_v8 }
 0xfd5   :  { %3330 = vmatmul.mubr.msk.bf16.gmra.mxu0 %vm1177_vm0, %v1156_v39 }
 0xfd6   :  { %1432 = vmatprep.mubr.bf16.mxu0 %v5327_v0 }
 0xfdd   :  { %3343 = vmatmul.mubr.msk.bf16.vlgmr.msra.gmra.mxu0 %vm1177_vm0, %v1137_v50 }
 0xfde   :  { %1698 = vmatpush1.bf16.msra.mxu0 %v4671_v37  ;;  %1442 = vmatprep.mubr.bf16.mxu0 %v5327_v0 }
 0xfdf   :  { %1699 = vmatprep.subr.bf16.mxu0 %v4675_v32 }
 0xfe2   :  { %1700 = vmatpush1.bf16.msra.mxu0 %v4679_v45 }
 0xfe3   :  { %1701 = vmatprep.subr.bf16.mxu0 %v4681_v10 }
 0xfe5   :  { %3344 = vmatmul.mubr.msk.bf16.gmra.mxu0 %vm1177_vm0, %v1138_v48 }
 0xfe6   :  { %1452 = vmatprep.mubr.bf16.mxu0 %v5327_v0  ;;  %1702 = vmatpush1.bf16.msra.mxu0 %v4687_v14 }
 0xfe7   :  { %1703 = vmatprep.subr.bf16.mxu0 %v4690_v2 }
 0xfea   :  { %1704 = vmatpush1.bf16.msra.mxu0 %v4695_v49 }
 0xfeb   :  { %1861 = vmatprep.subr.bf16.mxu0 %v4654_v8 }
 0xfed   :  { %3345 = vmatmul.mubr.msk.bf16.gmra.mxu0 %vm1177_vm0, %v1139_v42 }
 0xfee   :  { %1462 = vmatprep.mubr.bf16.mxu0 %v5327_v0 }
 0xff5   :  { %3346 = vmatmul.mubr.msk.bf16.gmra.mxu0 %vm1177_vm0, %v1140_v20  ;;  %v1333_v20 = vpop.f32.mrf.mxu1 }
 0xff6   :  { %1721 = vmatprep.mubr.bf16.mxu0 %v5327_v0 }
 0xff7   :  { %v1335_v57 = vpop.f32.mrf.mxu1 }
 0xff9   :  { %v1339_v59 = vpop.f32.mrf.mxu1 }
 0xffb   :  { %v1341_v42 = vpop.f32.mrf.mxu1 }
 0xffd   :  { %1722 = vmatmul.mubr.bf16.vlgmr.msra.gmra.mxu0 %v5327_v0  ;;  %v1343_v54 = vpop.f32.mrf.mxu1 }
 0xffe   :  { %1862 = vmatpush1.bf16.msra.mxu0 %v4671_v37  ;;  %1885 = vmatprep.mubr.bf16.mxu0 %v5327_v0 }
 0xfff   :  { %1863 = vmatprep.subr.bf16.mxu0 %v4675_v32  ;;  %v1345_v47 = vpop.f32.mrf.mxu1 }
0x1001   :  { %v1349_v48 = vpop.f32.mrf.mxu1 }
0x1002   :  { %1864 = vmatpush1.bf16.msra.mxu0 %v4679_v45 }
0x1003   :  { %1865 = vmatprep.subr.bf16.mxu0 %v4681_v10  ;;  %v1351_v15 = vpop.f32.mrf.mxu1 }
0x1005   :  { %v1353_v11 = vpop.f32.mrf.mxu1 }
0x1006   :  { %1866 = vmatpush1.bf16.msra.mxu0 %v4687_v14 }
0x1007   :  { %1867 = vmatprep.subr.bf16.mxu0 %v4690_v2  ;;  %v1355_v34 = vpop.f32.mrf.mxu1 }
0x100a   :  { %1868 = vmatpush1.bf16.msra.mxu0 %v4695_v49 }
0x100b   :  { %2029 = vmatprep.subr.bf16.mxu0 %v4654_v8  ;;  %v1359_v36 = vpop.f32.mrf.mxu1 }
0x100d   :  { %v1361_v62 = vpop.f32.mrf.mxu1 }
0x100f   :  { %v1363_v23 = vpop.f32.mrf.mxu1 }
0x1011   :  { %v1365_v46 = vpop.f32.mrf.mxu1 }
0x107d   :  { %v1224_v16 = vpop.f32.mrf.mxu0 }
0x107f   :  { %v4740_v12 = vpop.f32.mrf.mxu0 }
0x1081   :  { %v1228_v21 = vpop.f32.mrf.mxu0 }
0x1082   :  { %v1334_v13 = vadd.f32 %v1333_v20, %v1228_v21 }
0x1083   :  { %v1230_v19 = vpop.f32.mrf.mxu0 }
0x1084   :  { %v1336_v0 = vadd.f32 %v1335_v57, %v1230_v19 }
0x1085   :  { %v1234_v40 = vpop.f32.mrf.mxu0  ;;  %v1567_v50 = vpop.f32.mrf.mxu1 }
0x1086   :  { %v1340_v30 = vadd.f32 %v1339_v59, %v1234_v40 }
0x1087   :  { %v1236_v43 = vpop.f32.mrf.mxu0  ;;  %v4742_v61 = vpop.f32.mrf.mxu1 }
0x1088   :  { %v1342_v53 = vadd.f32 %v1341_v42, %v1236_v43 }
0x1089   :  { %v1238_v7 = vpop.f32.mrf.mxu0  ;;  %v4744_v31 = vpop.f32.mrf.mxu1 }
0x108a   :  { %5354 = vst [vmem:[#allocation17_spill] sm:$0xff] %v4744_v31 }
0x108b   :  { %v1240_v51 = vpop.f32.mrf.mxu0  ;;  %v4746_v35 = vpop.f32.mrf.mxu1 }
0x108c   :  { %5355 = vst [vmem:[#allocation18_spill] sm:$0xff] %v4746_v35  ;;  %v1346_v20 = vadd.f32 %v1345_v47, %v1240_v51 }
0x108d   :  { %v1244_v17 = vpop.f32.mrf.mxu0  ;;  %v1577_v25 = vpop.f32.mrf.mxu1 }
0x108f   :  { %v1246_v24 = vpop.f32.mrf.mxu0  ;;  %v1579_v26 = vpop.f32.mrf.mxu1 }
0x1091   :  { %v1248_v52 = vpop.f32.mrf.mxu0  ;;  %v1581_v19 = vpop.f32.mrf.mxu1 }
0x1093   :  { %v1250_v56 = vpop.f32.mrf.mxu0 }
0x1095   :  { %v1254_v60 = vpop.f32.mrf.mxu0 }
0x1097   :  { %v1256_v1 = vpop.f32.mrf.mxu0 }
0x1098   :  { %v1362_v51 = vadd.f32 %v1361_v62, %v1256_v1 }
0x1099   :  { %v1258_v27 = vpop.f32.mrf.mxu0 }
0x109b   :  { %v1260_v4 = vpop.f32.mrf.mxu0 }
0x109c   :  { %v1366_v63 = vadd.f32 %v1365_v46, %v1260_v4  ;;  %v1344_v46 = vadd.f32 %v1343_v54, %v1238_v7  ;;  %v1356_v54 = vadd.f32 %v1355_v34, %v1250_v56 }
0x109d   :  { %v1434_v38 = vpop.f32.mrf.mxu0 }
0x109f   :  { %v1436_v9 = vpop.f32.mrf.mxu0 }
0x10a1   :  { %v1438_v39 = vpop.f32.mrf.mxu0 }
0x10a2   :  { %v4748_v29 = vadd.f32 %v1438_v39, %v1334_v13  ;;  %v1350_v39 = vadd.f32 %v1349_v48, %v1244_v17  ;;  %v1360_v48 = vadd.f32 %v1359_v36, %v1254_v60 }
0x10a3   :  { %v1440_v3 = vpop.f32.mrf.mxu0 }
0x10a4   :  { %v4750_v41 = vadd.f32 %v1440_v3, %v1336_v0 }
0x10a5   :  { %v1444_v58 = vpop.f32.mrf.mxu0 }
0x10a6   :  { %v1477_v33 = vadd.f32 %v1444_v58, %v1340_v30  ;;  %v1352_v58 = vadd.f32 %v1351_v15, %v1246_v24  ;;  %v1128_v15 = vld [vmem:[%s5320_s9] sm:$0x3]  ;;  %v1364_v24 = vadd.f32 %v1363_v23, %v1258_v27  ;;  %v1332_v23 = vadd.f32 %v4738_v6, %v4740_v12 }
0x10a7   :  { %v1446_v31 = vpop.f32.mrf.mxu0  ;;  %v1143_v12 = vpack.c.bf16 %v4517_v44, %v4483_v55 }
0x10a8   :  { %v4752_v4 = vadd.f32 %v1577_v25, %v1477_v33  ;;  %v1478_v35 = vadd.f32 %v1446_v31, %v1342_v53  ;;  %v1354_v25 = vadd.f32 %v1353_v11, %v1248_v52  ;;  %v1474_v27 = vadd.f32 %v1436_v9, %v1332_v23 }
0x10a9   :  { %v1448_v8 = vpop.f32.mrf.mxu0 }
0x10aa   :  { %v4754_v21 = vadd.f32 %v1579_v26, %v1478_v35  ;;  %v1479_v57 = vadd.f32 %v1448_v8, %v1344_v46  ;;  %v1330_v26 = vadd.f32 %v4736_v5, %v1224_v16  ;;  %v5356_v16 = vsub.s32 0, %v4254_v22 }
0x10ab   :  { %v1450_v13 = vpop.f32.mrf.mxu0 }
0x10ac   :  { %v4756_v59 = vadd.f32 %v1581_v19, %v1479_v57  ;;  %v4758_v0 = vadd.f32 %v1450_v13, %v1346_v20  ;;  %v1473_v40 = vadd.f32 %v1434_v38, %v1330_v26  ;;  %v4778_v34 = vrot.slane %v1128_v15, %v5356_v16  ;;  %v4827_v16 = vpop.f32.mrf.mxu1 }
0x10ad   :  { %v1454_v3 = vpop.f32.mrf.mxu0  ;;  %v1607_v57 = vadd.f32 %v4742_v61, %v1474_v27  ;;  %v5357_v19 = vsub.s32 1, %v4254_v22 }
0x10ae   :  { %v4760_v30 = vadd.f32 %v1454_v3, %v1350_v39  ;;  %v1606_v52 = vadd.f32 %v1567_v50, %v1473_v40  ;;  %v1500_v40 = vpop.permute.xlu0 %1499 }
0x10af   :  { %v1456_v42 = vpop.f32.mrf.mxu0  ;;  %v4790_v13 = vrot.slane %v1128_v15, %v5357_v19  ;;  %v5360_v19 = vld [vmem:[#allocation17_spill] sm:$0xff] }
0x10b0   :  { %v4762_v33 = vadd.f32 %v1456_v42, %v1352_v58  ;;  %v1633_v38 = vadd.f32 %v4778_v34, %v1606_v52 }
0x10b1   :  { %v1458_v53 = vpop.f32.mrf.mxu0 }
0x10b2   :  { %v4765_v8 = vadd.f32 %v1458_v53, %v1354_v25 }
0x10b3   :  { %v1460_v47 = vpop.f32.mrf.mxu0 }
0x10b4   :  { %v4767_v43 = vadd.f32 %v1460_v47, %v1356_v54 }
0x10b5   :  { %v1464_v7 = vpop.f32.mrf.mxu0 }
0x10b6   :  { %v4772_v11 = vadd.f32 %v1464_v7, %v1360_v48  ;;  %v5358_v48 = vmov 0  }
0x10b7   :  { %v1466_v17 = vpop.f32.mrf.mxu0 }
0x10b8   :  { %v4774_v5 = vadd.f32 %v1466_v17, %v1362_v51 }
0x10b9   :  { %v1468_v36 = vpop.f32.mrf.mxu0 }
0x10ba   :  { %v4780_v56 = vadd.f32 %v1468_v36, %v1364_v24 }
0x10bb   :  { %v1470_v60 = vpop.f32.mrf.mxu0 }
0x10bc   :  { %v4782_v31 = vadd.f32 %v1470_v60, %v1366_v63  ;;  %v1634_v63 = vadd.f32 %v4790_v13, %v1607_v57 }
0x10bd   :  { %v1723_v62 = vpop.f32.mrf.mxu0 }
0x10be   :  { %v1730_v1 = vadd.f32 %v1723_v62, %v1633_v38 }
0x10bf   :  { %v1725_v35 = vpop.f32.mrf.mxu0 }
0x10c0   :  { %v3363_v46 = vmul.f32 -1.442695, %v1730_v1  ;;  %v1731_v39 = vadd.f32 %v1725_v35, %v1634_v63 }
0x10c1   :  { %v1727_v50 = vpop.f32.mrf.mxu0 }
0x10c2   :  { %3873 = vpow2.f32 %v3363_v46  ;;  %v3364_v22 = vmul.f32 -1.442695, %v1731_v39 }
0x10c3   :  { %v1728_v20 = vpop.f32.mrf.mxu0  ;;  %3875 = vtanh.f32 %v1731_v39 }
0x10cf   :  { %v3874_v3 = vpop.eup %3873 }
0x10d0   :  { %v1735_v58 = vadd.f32 1.0, %v3874_v3  ;;  %v3876_v42 = vpop.eup %3875 }
0x10d2   :  { %3877 = vrcp.f32 %v1735_v58 }
0x10d3   :  { %3879 = vpow2.f32 %v3364_v22 }
0x10df   :  { %v3878_v25 = vpop.eup %3877 }
0x10e0   :  { %v1746_v6 = vmul.f32 %v3878_v25, %v3876_v42  ;;  %v3880_v61 = vpop.eup %3879  ;;  %v1745_v53 = vmul.f32 0.0, %v3878_v25 }
0x10e1   :  { %v1742_v9 = vadd.f32 1.0, %v3880_v61 }
0x10e2   :  { %1748 = vrot.lane.b32.xlu1 %v1746_v6, %s4071_s6 }
0x10e3   :  { %3881 = vrcp.f32 %v1742_v9 }
0x10e6   :  { %1497 = vrot.lane.b32.xlu1 %v1143_v12, %s4079_s28 }
0x10f0   :  { %v3882_v55 = vpop.eup %3881 }
0x1154   :  { %v1749_v26 = vpop.permute.xlu1 %1748 }
0x1155   :  { %v1751_v54 = vadd.f32 %v1749_v26, %v1745_v53 }
0x1157   :  { %3883 = vtanh.f32 %v1751_v54  ;;  %1760 = vrot.lane.b32.xlu0 %v1751_v54, %s4071_s6 }
0x1158   :  { %v1498_v47 = vpop.permute.xlu1 %1497 }
0x1159   :  { %3353 = vmatmul.mubr.msk.bf16.gmra.mxu1 %vm1177_vm0, %v1498_v47 }
0x115a   :  { %1595 = vmatprep.mubr.bf16.mxu1 %v5358_v48 }
0x1161   :  { %3354 = vmatmul.mubr.msk.bf16.gmra.mxu1 %vm1177_vm0, %v1500_v40 }
0x1162   :  { %1801 = vmatprep.mubr.bf16.mxu1 %v5358_v48 }
0x1164   :  { %v3884_v44 = vpop.eup %3883 }
0x1165   :  { %v1753_v7 = vmul.f32 %v3884_v44, %v3882_v55 }
0x1167   :  { %1755 = vrot.lane.b32.xlu1 %v1753_v7, %s4071_s6 }
0x11c9   :  { %v1761_v15 = vpop.permute.xlu0 %1760 }
0x11ca   :  { %v4806_v51 = vsel %vm487_vm2, %v1761_v15, 0.0 }
0x11cb   :  { %1826 = vrot.lane.b32.xlu1 %v4806_v51, %s4071_s6 }
0x11d9   :  { %v1756_v17 = vpop.permute.xlu1 %1755 }
0x11da   :  { %v4813_v24 = vsel %vm487_vm2, %v1756_v17, 0.0  ;;  %vm5370_vm2 = vcmp.gt.s32.totalorder %v4309_v18, 2 }
0x11db   :  { %v1765_v52 = vpack.c.bf16 %v4813_v24, %v4813_v24 }
0x11dd   :  { %3365 = vmatmul.mubr.msk.bf16.vlgmr.msra.gmra.mxu1 %vm417_vm3, %v1765_v52 }
0x11de   :  { %1946 = vmatpush1.bf16.msra.mxu1 %v4671_v37  ;;  %1969 = vmatprep.mubr.bf16.mxu1 %v5358_v48 }
0x11df   :  { %1947 = vmatprep.subr.bf16.mxu1 %v4675_v32 }
0x11e2   :  { %1948 = vmatpush1.bf16.msra.mxu1 %v4679_v45 }
0x11e3   :  { %1949 = vmatprep.subr.bf16.mxu1 %v4681_v10 }
0x11e6   :  { %1950 = vmatpush1.bf16.msra.mxu1 %v4687_v14 }
0x11e7   :  { %1951 = vmatprep.subr.bf16.mxu1 %v4690_v2 }
0x11ea   :  { %1952 = vmatpush1.bf16.msra.mxu1 %v4695_v49 }
0x11eb   :  { %2113 = vmatprep.subr.bf16.mxu1 %v5359_v28 }
0x1219   :  { %v1587_v36 = vpop.f32.mrf.mxu1 }
0x121a   :  { %v4830_v60 = vadd.f32 %v1587_v36, %v4760_v30 }
0x121b   :  { %v1589_v38 = vpop.f32.mrf.mxu1 }
0x121c   :  { %v4833_v62 = vadd.f32 %v1589_v38, %v4762_v33 }
0x121d   :  { %v1591_v1 = vpop.f32.mrf.mxu1 }
0x121e   :  { %v4836_v35 = vadd.f32 %v1591_v1, %v4765_v8  ;;  %v1608_v8 = vadd.f32 %v5360_v19, %v4748_v29 }
0x121f   :  { %v1593_v46 = vpop.f32.mrf.mxu1 }
0x1220   :  { %v4839_v23 = vadd.f32 %v1593_v46, %v4767_v43  ;;  %v1635_v43 = vadd.f32 %v4778_v34, %v1608_v8 }
0x1221   :  { %v1597_v50 = vpop.f32.mrf.mxu1 }
0x1222   :  { %v4842_v27 = vadd.f32 %v1597_v50, %v4772_v11 }
0x1223   :  { %v1599_v20 = vpop.f32.mrf.mxu1 }
0x1224   :  { %v4845_v30 = vadd.f32 %v1599_v20, %v4774_v5  ;;  %v5361_v5 = vld [vmem:[#allocation18_spill] sm:$0xff] }
0x1225   :  { %v1601_v57 = vpop.f32.mrf.mxu1  ;;  %v1609_v6 = vadd.f32 %v5361_v5, %v4750_v41 }
0x1226   :  { %v4848_v33 = vadd.f32 %v1601_v57, %v4780_v56 }
0x1227   :  { %v4852_v63 = vpop.f32.mrf.mxu1  ;;  %v1636_v56 = vadd.f32 %v4790_v13, %v1609_v6 }
0x123d   :  { %v1827_v47 = vpop.permute.xlu1 %1826 }
0x129d   :  { %v1803_v39 = vpop.f32.mrf.mxu1 }
0x129e   :  { %v1810_v3 = vadd.f32 %v1803_v39, %v1635_v43 }
0x129f   :  { %v1805_v58 = vpop.f32.mrf.mxu1 }
0x12a0   :  { %v3366_v11 = vmul.f32 -1.442695, %v1810_v3  ;;  %v1811_v12 = vadd.f32 %v1805_v58, %v1636_v56  ;;  %v1638_v3 = vadd.f32 %v4790_v13, %v4754_v21 }
0x12a1   :  { %v1807_v42 = vpop.f32.mrf.mxu1 }
0x12a2   :  { %3885 = vpow2.f32 %v3366_v11  ;;  %v3367_v26 = vmul.f32 -1.442695, %v1811_v12 }
0x12a3   :  { %v1808_v25 = vpop.f32.mrf.mxu1  ;;  %3887 = vtanh.f32 %v1811_v12 }
0x12af   :  { %v3886_v22 = vpop.eup %3885 }
0x12b0   :  { %v1815_v61 = vadd.f32 1.0, %v3886_v22  ;;  %v3888_v29 = vpop.eup %3887 }
0x12b2   :  { %3889 = vrcp.f32 %v1815_v61 }
0x12b3   :  { %3891 = vpow2.f32 %v3367_v26 }
0x12bf   :  { %v3890_v9 = vpop.eup %3889 }
0x12c0   :  { %v1830_v53 = vmul.f32 %v3890_v9, %v3888_v29  ;;  %v3892_v54 = vpop.eup %3891  ;;  %v1829_v55 = vmul.f32 %v3890_v9, %v1827_v47 }
0x12c1   :  { %v1822_v40 = vadd.f32 1.0, %v3892_v54 }
0x12c2   :  { %1832 = vrot.lane.b32.xlu0 %v1830_v53, %s4071_s6 }
0x12c3   :  { %3893 = vrcp.f32 %v1822_v40 }
0x12d0   :  { %v3894_v7 = vpop.eup %3893 }
0x1334   :  { %v1833_v44 = vpop.permute.xlu0 %1832 }
0x1335   :  { %v1835_v41 = vadd.f32 %v1833_v44, %v1829_v55 }
0x1337   :  { %3895 = vtanh.f32 %v1835_v41  ;;  %1844 = vrot.lane.b32.xlu0 %v1835_v41, %s4071_s6 }
0x1344   :  { %v3896_v15 = vpop.eup %3895 }
0x1345   :  { %v1837_v17 = vmul.f32 %v3896_v15, %v3894_v7  ;;  %v1639_v7 = vadd.f32 %v4778_v34, %v4756_v59 }
0x1347   :  { %1839 = vrot.lane.b32.xlu1 %v1837_v17, %s4071_s6 }
0x13a9   :  { %v1845_v52 = vpop.permute.xlu0 %1844 }
0x13aa   :  { %v1847_v38 = vsel %vm574_vm4, %v1845_v52, %v4806_v51  ;;  %v1637_v51 = vadd.f32 %v4778_v34, %v4752_v4 }
0x13ab   :  { %1910 = vrot.lane.b32.xlu1 %v1847_v38, %s4071_s6 }
0x13b9   :  { %v1840_v1 = vpop.permute.xlu1 %1839 }
0x13ba   :  { %v4870_v46 = vsel %vm574_vm4, %v1840_v1, %v4813_v24  ;;  %vm5371_vm4 = vcmp.gt.s32.totalorder %v4309_v18, 1 }
0x13bb   :  { %v1849_v50 = vpack.c.bf16 %v4870_v46, %v4870_v46 }
0x13bd   :  { %3368 = vmatmul.mubr.msk.bf16.vlgmr.msra.gmra.mxu0 %vm417_vm3, %v1849_v50  ;;  %v1613_v50 = vadd.f32 %v4827_v16, %v4758_v0 }
0x13be   :  { %2030 = vmatpush1.bf16.msra.mxu0 %v4671_v37  ;;  %2053 = vmatprep.mubr.bf16.mxu0 %v5358_v48 }
0x13bf   :  { %2031 = vmatprep.subr.bf16.mxu0 %v4675_v32 }
0x13c2   :  { %2032 = vmatpush1.bf16.msra.mxu0 %v4679_v45 }
0x13c3   :  { %2033 = vmatprep.subr.bf16.mxu0 %v4681_v10 }
0x13c6   :  { %2034 = vmatpush1.bf16.msra.mxu0 %v4687_v14 }
0x13c7   :  { %2035 = vmatprep.subr.bf16.mxu0 %v4690_v2 }
0x13ca   :  { %2036 = vmatpush1.bf16.msra.mxu0 %v4695_v49 }
0x13cb   :  { %2197 = vmatprep.subr.bf16.mxu0 %v5359_v28 }
0x141d   :  { %v1911_v12 = vpop.permute.xlu1 %1910 }
0x147d   :  { %v1887_v20 = vpop.f32.mrf.mxu0 }
0x147e   :  { %v1894_v57 = vadd.f32 %v1887_v20, %v1637_v51  ;;  %v1640_v51 = vadd.f32 %v4790_v13, %v1613_v50 }
0x147f   :  { %v1889_v19 = vpop.f32.mrf.mxu0 }
0x1480   :  { %v3369_v8 = vmul.f32 -1.442695, %v1894_v57  ;;  %v1895_v58 = vadd.f32 %v1889_v19, %v1638_v3 }
0x1481   :  { %v1891_v43 = vpop.f32.mrf.mxu0 }
0x1482   :  { %3897 = vpow2.f32 %v3369_v8  ;;  %v3370_v4 = vmul.f32 -1.442695, %v1895_v58 }
0x1483   :  { %v1892_v39 = vpop.f32.mrf.mxu0  ;;  %3899 = vtanh.f32 %v1895_v58 }
0x148f   :  { %v3898_v11 = vpop.eup %3897 }
0x1490   :  { %v1899_v42 = vadd.f32 1.0, %v3898_v11  ;;  %v3900_v25 = vpop.eup %3899 }
0x1492   :  { %3901 = vrcp.f32 %v1899_v42 }
0x1493   :  { %3903 = vpow2.f32 %v3370_v4 }
0x149f   :  { %v3902_v5 = vpop.eup %3901 }
0x14a0   :  { %v1914_v6 = vmul.f32 %v3902_v5, %v3900_v25  ;;  %v3904_v56 = vpop.eup %3903  ;;  %v1913_v61 = vmul.f32 %v3902_v5, %v1911_v12 }
0x14a1   :  { %v1906_v22 = vadd.f32 1.0, %v3904_v56 }
0x14a2   :  { %1916 = vrot.lane.b32.xlu0 %v1914_v6, %s4071_s6 }
0x14a3   :  { %3905 = vrcp.f32 %v1906_v22 }
0x14b0   :  { %v3906_v21 = vpop.eup %3905 }
0x1514   :  { %v1917_v29 = vpop.permute.xlu0 %1916 }
0x1515   :  { %v1919_v9 = vadd.f32 %v1917_v29, %v1913_v61  ;;  %v1641_v29 = vadd.f32 %v4778_v34, %v4830_v60 }
0x1517   :  { %3907 = vtanh.f32 %v1919_v9  ;;  %1928 = vrot.lane.b32.xlu0 %v1919_v9, %s4071_s6 }
0x1524   :  { %v3908_v53 = vpop.eup %3907 }
0x1525   :  { %v1921_v26 = vmul.f32 %v3908_v53, %v3906_v21 }
0x1527   :  { %1923 = vrot.lane.b32.xlu1 %v1921_v26, %s4071_s6 }
0x1589   :  { %v1929_v54 = vpop.permute.xlu0 %1928 }
0x158a   :  { %v1931_v40 = vsel %vm661_vm7, %v1929_v54, %v1847_v38 }
0x158b   :  { %1994 = vrot.lane.b32.xlu1 %v1931_v40, %s4071_s6 }
0x1599   :  { %v1924_v55 = vpop.permute.xlu1 %1923 }
0x159a   :  { %v4899_v44 = vsel %vm661_vm7, %v1924_v55, %v4870_v46  ;;  %vm5373_vm7 = vmmov %vm5369_vm1 }
0x159b   :  { %v1933_v41 = vpack.c.bf16 %v4899_v44, %v4899_v44 }
0x159d   :  { %3371 = vmatmul.mubr.msk.bf16.vlgmr.msra.gmra.mxu1 %vm417_vm3, %v1933_v41 }
0x159e   :  { %2114 = vmatpush1.bf16.msra.mxu1 %v4671_v37  ;;  %2137 = vmatprep.mubr.bf16.mxu1 %v5358_v48 }
0x159f   :  { %2115 = vmatprep.subr.bf16.mxu1 %v4675_v32 }
0x15a2   :  { %2116 = vmatpush1.bf16.msra.mxu1 %v4679_v45 }
0x15a3   :  { %2117 = vmatprep.subr.bf16.mxu1 %v4681_v10 }
0x15a6   :  { %2118 = vmatpush1.bf16.msra.mxu1 %v4687_v14 }
0x15a7   :  { %2119 = vmatprep.subr.bf16.mxu1 %v4690_v2 }
0x15aa   :  { %2120 = vmatpush1.bf16.msra.mxu1 %v4695_v49 }
0x15ab   :  { %2281 = vmatprep.subr.bf16.mxu1 %v5359_v28 }
0x15fd   :  { %v1995_v3 = vpop.permute.xlu1 %1994 }
0x165d   :  { %v1971_v15 = vpop.f32.mrf.mxu1 }
0x165e   :  { %v1978_v17 = vadd.f32 %v1971_v15, %v1639_v7 }
0x165f   :  { %v1973_v52 = vpop.f32.mrf.mxu1 }
0x1660   :  { %v3372_v36 = vmul.f32 -1.442695, %v1978_v17  ;;  %v1979_v20 = vadd.f32 %v1973_v52, %v1640_v51 }
0x1661   :  { %v1975_v38 = vpop.f32.mrf.mxu1 }
0x1662   :  { %3909 = vpow2.f32 %v3372_v36  ;;  %v3373_v43 = vmul.f32 -1.442695, %v1979_v20 }
0x1663   :  { %v1976_v1 = vpop.f32.mrf.mxu1  ;;  %3911 = vtanh.f32 %v1979_v20 }
0x166f   :  { %v3910_v57 = vpop.eup %3909 }
0x1670   :  { %v1983_v19 = vadd.f32 1.0, %v3910_v57  ;;  %v3912_v28 = vpop.eup %3911 }
0x1672   :  { %3913 = vrcp.f32 %v1983_v19 }
0x1673   :  { %3915 = vpow2.f32 %v3373_v43 }
0x167f   :  { %v3914_v8 = vpop.eup %3913 }
0x1680   :  { %v1998_v59 = vmul.f32 %v3914_v8, %v3912_v28  ;;  %v3916_v39 = vpop.eup %3915  ;;  %v1997_v11 = vmul.f32 %v3914_v8, %v1995_v3 }
0x1681   :  { %v1990_v58 = vadd.f32 1.0, %v3916_v39 }
0x1682   :  { %2000 = vrot.lane.b32.xlu0 %v1998_v59, %s4071_s6 }
0x1683   :  { %3917 = vrcp.f32 %v1990_v58  ;;  %v1643_v58 = vadd.f32 %v4778_v34, %v4836_v35 }
0x1690   :  { %v3918_v16 = vpop.eup %3917 }
0x16f4   :  { %v2001_v42 = vpop.permute.xlu0 %2000 }
0x16f5   :  { %v2003_v0 = vadd.f32 %v2001_v42, %v1997_v11 }
0x16f7   :  { %3919 = vtanh.f32 %v2003_v0  ;;  %2012 = vrot.lane.b32.xlu0 %v2003_v0, %s4071_s6 }
0x1704   :  { %v3920_v25 = vpop.eup %3919 }
0x1705   :  { %v2005_v5 = vmul.f32 %v3920_v25, %v3918_v16 }
0x1707   :  { %2007 = vrot.lane.b32.xlu1 %v2005_v5, %s4071_s6 }
0x1769   :  { %v2013_v6 = vpop.permute.xlu0 %2012 }
0x176a   :  { %v2015_v56 = vsel %vm748_vm8, %v2013_v6, %v1931_v40  ;;  %v1642_v40 = vadd.f32 %v4790_v13, %v4833_v62 }
0x176b   :  { %2078 = vrot.lane.b32.xlu1 %v2015_v56, %s4071_s6 }
0x1779   :  { %v2008_v12 = vpop.permute.xlu1 %2007 }
0x177a   :  { %v4929_v22 = vsel %vm748_vm8, %v2008_v12, %v4899_v44  ;;  %vm5374_vm8 = vmmov %vm5370_vm2 }
0x177b   :  { %v2017_v61 = vpack.c.bf16 %v4929_v22, %v4929_v22 }
0x177d   :  { %3374 = vmatmul.mubr.msk.bf16.vlgmr.msra.gmra.mxu0 %vm417_vm3, %v2017_v61 }
0x177e   :  { %2198 = vmatpush1.bf16.msra.mxu0 %v4671_v37  ;;  %2221 = vmatprep.mubr.bf16.mxu0 %v5358_v48 }
0x177f   :  { %2199 = vmatprep.subr.bf16.mxu0 %v4675_v32 }
0x1782   :  { %2200 = vmatpush1.bf16.msra.mxu0 %v4679_v45 }
0x1783   :  { %2201 = vmatprep.subr.bf16.mxu0 %v4681_v10 }
0x1786   :  { %2202 = vmatpush1.bf16.msra.mxu0 %v4687_v14 }
0x1787   :  { %2203 = vmatprep.subr.bf16.mxu0 %v4690_v2 }
0x178a   :  { %2204 = vmatpush1.bf16.msra.mxu0 %v4695_v49 }
0x17dd   :  { %v2079_v38 = vpop.permute.xlu1 %2078 }
0x183d   :  { %v2055_v9 = vpop.f32.mrf.mxu0 }
0x183e   :  { %v2062_v21 = vadd.f32 %v2055_v9, %v1641_v29 }
0x183f   :  { %v2057_v53 = vpop.f32.mrf.mxu0 }
0x1840   :  { %v3375_v26 = vmul.f32 -1.442695, %v2062_v21  ;;  %v2063_v55 = vadd.f32 %v2057_v53, %v1642_v40 }
0x1841   :  { %v2059_v54 = vpop.f32.mrf.mxu0 }
0x1842   :  { %3921 = vpow2.f32 %v3375_v26  ;;  %v3376_v60 = vmul.f32 -1.442695, %v2063_v55 }
0x1843   :  { %v2060_v47 = vpop.f32.mrf.mxu0  ;;  %3923 = vtanh.f32 %v2063_v55  ;;  %v1645_v55 = vadd.f32 %v4778_v34, %v4842_v27 }
0x184f   :  { %v3922_v41 = vpop.eup %3921 }
0x1850   :  { %v2067_v7 = vadd.f32 1.0, %v3922_v41  ;;  %v3924_v15 = vpop.eup %3923 }
0x1852   :  { %3925 = vrcp.f32 %v2067_v7 }
0x1853   :  { %3927 = vpow2.f32 %v3376_v60 }
0x185f   :  { %v3926_v17 = vpop.eup %3925 }
0x1860   :  { %v2082_v52 = vmul.f32 %v3926_v17, %v3924_v15  ;;  %v3928_v36 = vpop.eup %3927  ;;  %v2081_v50 = vmul.f32 %v3926_v17, %v2079_v38 }
0x1861   :  { %v2074_v1 = vadd.f32 1.0, %v3928_v36  ;;  %v1646_v36 = vadd.f32 %v4790_v13, %v4845_v30 }
0x1862   :  { %2084 = vrot.lane.b32.xlu0 %v2082_v52, %s4071_s6 }
0x1863   :  { %3929 = vrcp.f32 %v2074_v1 }
0x1870   :  { %v3930_v62 = vpop.eup %3929 }
0x18d4   :  { %v2085_v51 = vpop.permute.xlu0 %2084 }
0x18d5   :  { %v2087_v20 = vadd.f32 %v2085_v51, %v2081_v50 }
0x18d7   :  { %3931 = vtanh.f32 %v2087_v20  ;;  %2096 = vrot.lane.b32.xlu0 %v2087_v20, %s4071_s6 }
0x18e4   :  { %v3932_v57 = vpop.eup %3931 }
0x18e5   :  { %v2089_v19 = vmul.f32 %v3932_v57, %v3930_v62 }
0x18e7   :  { %2091 = vrot.lane.b32.xlu1 %v2089_v19, %s4071_s6 }
0x1949   :  { %v2097_v28 = vpop.permute.xlu0 %2096 }
0x194a   :  { %v2099_v59 = vsel %vm835_vm11, %v2097_v28, %v2015_v56 }
0x194b   :  { %2162 = vrot.lane.b32.xlu1 %v2099_v59, %s4071_s6 }
0x1959   :  { %v2092_v43 = vpop.permute.xlu1 %2091 }
0x195a   :  { %v4957_v39 = vsel %vm835_vm11, %v2092_v43, %v4929_v22  ;;  %vm5377_vm11 = vmmov %vm5371_vm4 }
0x195b   :  { %v2101_v3 = vpack.c.bf16 %v4957_v39, %v4957_v39 }
0x195d   :  { %3377 = vmatmul.mubr.msk.bf16.vlgmr.msra.gmra.mxu1 %vm417_vm3, %v2101_v3 }
0x195e   :  { %2282 = vmatpush1.bf16.msra.mxu1 %v4671_v37  ;;  %2305 = vmatprep.mubr.bf16.mxu1 %v5358_v48 }
0x195f   :  { %2283 = vmatprep.subr.bf16.mxu1 %v4675_v32 }
0x1962   :  { %2284 = vmatpush1.bf16.msra.mxu1 %v4679_v45  ;;  %v1644_v45 = vadd.f32 %v4790_v13, %v4839_v23 }
0x1963   :  { %2285 = vmatprep.subr.bf16.mxu1 %v4681_v10 }
0x1966   :  { %2286 = vmatpush1.bf16.msra.mxu1 %v4687_v14 }
0x1967   :  { %2287 = vmatprep.subr.bf16.mxu1 %v4690_v2 }
0x196a   :  { %2288 = vmatpush1.bf16.msra.mxu1 %v4695_v49 }
0x19bd   :  { %v2163_v6 = vpop.permute.xlu1 %2162 }
0x1a1d   :  { %v2139_v11 = vpop.f32.mrf.mxu1 }
0x1a1e   :  { %v2146_v42 = vadd.f32 %v2139_v11, %v1643_v58 }
0x1a1f   :  { %v2141_v37 = vpop.f32.mrf.mxu1 }
0x1a20   :  { %v3378_v0 = vmul.f32 -1.442695, %v2146_v42  ;;  %v2147_v10 = vadd.f32 %v2141_v37, %v1644_v45  ;;  %v5013_v45 = vsel %vm498_vm5, %v4813_v24, 0.0 }
0x1a21   :  { %v2143_v48 = vpop.f32.mrf.mxu1 }
0x1a22   :  { %3933 = vpow2.f32 %v3378_v0  ;;  %v3379_v35 = vmul.f32 -1.442695, %v2147_v10 }
0x1a23   :  { %v2144_v32 = vpop.f32.mrf.mxu1  ;;  %3935 = vtanh.f32 %v2147_v10  ;;  %v1647_v10 = vadd.f32 %v4778_v34, %v4848_v33 }
0x1a2f   :  { %v3934_v16 = vpop.eup %3933 }
0x1a30   :  { %v2151_v14 = vadd.f32 1.0, %v3934_v16  ;;  %v3936_v2 = vpop.eup %3935 }
0x1a32   :  { %3937 = vrcp.f32 %v2151_v14 }
0x1a33   :  { %3939 = vpow2.f32 %v3379_v35 }
0x1a3f   :  { %v3938_v49 = vpop.eup %3937 }
0x1a40   :  { %v2166_v25 = vmul.f32 %v3938_v49, %v3936_v2  ;;  %v3940_v5 = vpop.eup %3939  ;;  %v2165_v56 = vmul.f32 %v3938_v49, %v2163_v6 }
0x1a41   :  { %v2158_v4 = vadd.f32 1.0, %v3940_v5  ;;  %v1621_v5 = vadd.f32 %v4852_v63, %v4782_v31 }
0x1a42   :  { %2168 = vrot.lane.b32.xlu0 %v2166_v25, %s4071_s6 }
0x1a43   :  { %3941 = vrcp.f32 %v2158_v4  ;;  %v1648_v6 = vadd.f32 %v4790_v13, %v1621_v5 }
0x1a50   :  { %v3942_v23 = vpop.eup %3941 }
0x1ab4   :  { %v2169_v12 = vpop.permute.xlu0 %2168 }
0x1ab5   :  { %v2171_v61 = vadd.f32 %v2169_v12, %v2165_v56 }
0x1ab7   :  { %3943 = vtanh.f32 %v2171_v61  ;;  %2180 = vrot.lane.b32.xlu0 %v2171_v61, %s4071_s6 }
0x1ac4   :  { %v3944_v29 = vpop.eup %3943 }
0x1ac5   :  { %v2173_v9 = vmul.f32 %v3944_v29, %v3942_v23 }
0x1ac7   :  { %2175 = vrot.lane.b32.xlu1 %v2173_v9, %s4071_s6 }
0x1b29   :  { %v2181_v21 = vpop.permute.xlu0 %2180 }
0x1b2a   :  { %v2183_v26 = vsel %vm922_vm12, %v2181_v21, %v2099_v59 }
0x1b2b   :  { %2246 = vrot.lane.b32.xlu1 %v2183_v26, %s4071_s6 }
0x1b39   :  { %v2176_v54 = vpop.permute.xlu1 %2175 }
0x1b3a   :  { %v4985_v47 = vsel %vm922_vm12, %v2176_v54, %v4957_v39 }
0x1b3b   :  { %v2185_v40 = vpack.c.bf16 %v4985_v47, %v4985_v47 }
0x1b3d   :  { %3380 = vmatmul.mubr.msk.bf16.vlgmr.msra.gmra.mxu0 %vm417_vm3, %v2185_v40 }
0x1b9d   :  { %v2247_v19 = vpop.permute.xlu1 %2246 }
0x1bfd   :  { %v2223_v41 = vpop.f32.mrf.mxu0 }
0x1bfe   :  { %v2230_v7 = vadd.f32 %v2223_v41, %v1645_v55 }
0x1bff   :  { %v2225_v15 = vpop.f32.mrf.mxu0 }
0x1c00   :  { %v3381_v17 = vmul.f32 -1.442695, %v2230_v7  ;;  %v2231_v38 = vadd.f32 %v2225_v15, %v1646_v36  ;;  %v2184_v36 = vsel %vm933_vm14, %v4985_v47, 0.0 }
0x1c01   :  { %v2227_v52 = vpop.f32.mrf.mxu0 }
0x1c02   :  { %3945 = vpow2.f32 %v3381_v17  ;;  %v3382_v27 = vmul.f32 -1.442695, %v2231_v38 }
0x1c03   :  { %v2228_v60 = vpop.f32.mrf.mxu0  ;;  %3947 = vtanh.f32 %v2231_v38 }
0x1c0f   :  { %v3946_v1 = vpop.eup %3945 }
0x1c10   :  { %v2235_v50 = vadd.f32 1.0, %v3946_v1  ;;  %v3948_v51 = vpop.eup %3947  ;;  %v2100_v1 = vsel %vm846_vm13, %v4957_v39, 0.0 }
0x1c12   :  { %3949 = vrcp.f32 %v2235_v50 }
0x1c13   :  { %3951 = vpow2.f32 %v3382_v27 }
0x1c1f   :  { %v3950_v20 = vpop.eup %3949 }
0x1c20   :  { %v2250_v62 = vmul.f32 %v3950_v20, %v3948_v51  ;;  %v3952_v57 = vpop.eup %3951  ;;  %v2249_v8 = vmul.f32 %v3950_v20, %v2247_v19  ;;  %v2016_v51 = vsel %vm5369_vm1, %v4929_v22, 0.0 }
0x1c21   :  { %v2242_v28 = vadd.f32 1.0, %v3952_v57  ;;  %v1848_v57 = vsel %vm5371_vm4, %v4870_v46, 0.0 }
0x1c22   :  { %2252 = vrot.lane.b32.xlu0 %v2250_v62, %s4071_s6  ;;  %v1932_v62 = vsel %vm5370_vm2, %v4899_v44, 0.0 }
0x1c23   :  { %3953 = vrcp.f32 %v2242_v28 }
0x1c30   :  { %v3954_v30 = vpop.eup %3953 }
0x1c94   :  { %v2253_v59 = vpop.permute.xlu0 %2252 }
0x1c95   :  { %v2255_v43 = vadd.f32 %v2253_v59, %v2249_v8 }
0x1c97   :  { %3955 = vtanh.f32 %v2255_v43  ;;  %2264 = vrot.lane.b32.xlu0 %v2255_v43, %s4071_s6 }
0x1ca4   :  { %v3956_v3 = vpop.eup %3955 }
0x1ca5   :  { %v2257_v58 = vmul.f32 %v3956_v3, %v3954_v30  ;;  %v2631_v30 = vld [vmem:[#allocation2 + $0x8] sm:$0xff] }
0x1ca7   :  { %2259 = vrot.lane.b32.xlu1 %v2257_v58, %s4071_s6 }
0x1d09   :  { %v2265_v11 = vpop.permute.xlu0 %2264 }
0x1d0a   :  { %v2267_v37 = vsel %vm1009_vm15, %v2265_v11, %v2183_v26  ;;  %v2630_v11 = vld [vmem:[#allocation2] sm:$0xff] }
0x1d0b   :  { %2330 = vrot.lane.b32.xlu1 %v2267_v37, %s4071_s6 }
0x1d19   :  { %v2260_v0 = vpop.permute.xlu1 %2259 }
0x1d1a   :  { %v5005_v48 = vsel %vm1009_vm15, %v2260_v0, %v4985_v47 }
0x1d1b   :  { %v2269_v32 = vpack.c.bf16 %v5005_v48, %v5005_v48  ;;  %v2268_v52 = vsel %vm1020_vm9, %v5005_v48, 0.0 }
0x1d1d   :  { %3383 = vmatmul.mubr.msk.bf16.vlgmr.msra.gmra.mxu1 %vm417_vm3, %v2269_v32 }
0x1d1e   :  { %3591 = vmatprep.mubr.msk.f32.mxu1 %vm1177_vm0, %v5013_v45 }
0x1d7d   :  { %v2331_v33 = vpop.permute.xlu1 %2330 }
0x1ddd   :  { %v2307_v16 = vpop.f32.mrf.mxu1 }
0x1dde   :  { %v2314_v14 = vadd.f32 %v2307_v16, %v1647_v10 }
0x1ddf   :  { %v2309_v2 = vpop.f32.mrf.mxu1 }
0x1de0   :  { %v3384_v49 = vmul.f32 -1.442695, %v2314_v14  ;;  %v2315_v4 = vadd.f32 %v2309_v2, %v1648_v6  ;;  %v2632_v14 = vld [vmem:[#allocation2 + $0x10] sm:$0xff] }
0x1de1   :  { %v2311_v25 = vpop.f32.mrf.mxu1 }
0x1de2   :  { %3957 = vpow2.f32 %v3384_v49  ;;  %v3385_v31 = vmul.f32 -1.442695, %v2315_v4 }
0x1de3   :  { %v2312_v35 = vpop.f32.mrf.mxu1  ;;  %3959 = vtanh.f32 %v2315_v4 }
0x1de4   :  { %v2633_v35 = vld [vmem:[#allocation2 + $0x18] sm:$0xff] }
0x1def   :  { %v3958_v56 = vpop.eup %3957 }
0x1df0   :  { %v2319_v12 = vadd.f32 1.0, %v3958_v56  ;;  %v3960_v61 = vpop.eup %3959 }
0x1df2   :  { %3961 = vrcp.f32 %v2319_v12 }
0x1df3   :  { %3963 = vpow2.f32 %v3385_v31 }
0x1dff   :  { %v3962_v23 = vpop.eup %3961 }
0x1e00   :  { %v2334_v34 = vmul.f32 %v3962_v23, %v3960_v61  ;;  %v3964_v13 = vpop.eup %3963  ;;  %v2333_v29 = vmul.f32 %v3962_v23, %v2331_v33  ;;  %v2634_v23 = vld [vmem:[#allocation2 + $0x20] sm:$0xff] }
0x1e01   :  { %v2326_v63 = vadd.f32 1.0, %v3964_v13 }
0x1e02   :  { %2336 = vrot.lane.b32.xlu0 %v2334_v34, %s4071_s6 }
0x1e03   :  { %3965 = vrcp.f32 %v2326_v63 }
0x1e06   :  { %2370 = vrot.lane.b32.xlu0 %v4813_v24, %s4079_s28 }
0x1e0a   :  { %2366 = vrot.lane.b32.xlu0 %v4899_v44, %s4079_s28 }
0x1e0e   :  { %2362 = vrot.lane.b32.xlu0 %v4957_v39, %s4079_s28 }
0x1e10   :  { %v3966_v26 = vpop.eup %3965 }
0x1e12   :  { %2358 = vrot.lane.b32.xlu0 %v5005_v48, %s4079_s28 }
0x1e74   :  { %v2337_v9 = vpop.permute.xlu0 %2336 }
0x1e75   :  { %v2339_v21 = vadd.f32 %v2337_v9, %v2333_v29  ;;  %v2635_v9 = vld [vmem:[#allocation2 + $0x28] sm:$0xff] }
0x1e77   :  { %3967 = vtanh.f32 %v2339_v21 }
0x1e78   :  { %v5031_v53 = vpop.permute.xlu0 %2370 }
0x1e79   :  { %3547 = vmatprep.subr.msk.mxu0 %vm1177_vm0, %v5031_v53 }
0x1e7a   :  { %3548 = vmatpush3.xpose.msk.msra.mxu0 %vm1177_vm0, %v5031_v53 }
0x1e7c   :  { %v5065_v60 = vpop.permute.xlu0 %2366 }
0x1e80   :  { %v2363_v50 = vpop.permute.xlu0 %2362 }
0x1e84   :  { %v3968_v54 = vpop.eup %3967  ;;  %v2359_v27 = vpop.permute.xlu0 %2358 }
0x1e85   :  { %v2341_v40 = vmul.f32 %v3968_v54, %v3966_v26  ;;  %v2636_v54 = vld [vmem:[#allocation2 + $0x30] sm:$0xff] }
0x1e87   :  { %2343 = vrot.lane.b32.xlu1 %v2341_v40, %s4071_s6 }
0x1e8b   :  { %2368 = vrot.lane.b32.xlu1 %v4870_v46, %s4079_s28 }
0x1e8f   :  { %2364 = vrot.lane.b32.xlu1 %v4929_v22, %s4079_s28 }
0x1e93   :  { %2360 = vrot.lane.b32.xlu1 %v4985_v47, %s4079_s28 }
0x1ef9   :  { %v2344_v55 = vpop.permute.xlu1 %2343 }
0x1efa   :  { %v5048_v7 = vsel %vm1096_vm6, %v2344_v55, %v5005_v48  ;;  %vm5372_vm6 = vmmov %vm5369_vm1 }
0x1efb   :  { %2356 = vrot.lane.b32.xlu1 %v5048_v7, %s4079_s28  ;;  %v2347_v15 = vsel %vm1102_vm10, %v5048_v7, 0.0 }
0x1efc   :  { %3575 = vmatprep.subr.msk.mxu1 %vm1177_vm0, %v2347_v15 }
0x1efd   :  { %3576 = vmatpush3.xpose.msk.msra.mxu1 %vm1177_vm0, %v2347_v15  ;;  %v5057_v17 = vpop.permute.xlu1 %2368 }
0x1efe   :  { %3549 = vmatprep.subr.msk.mxu0 %vm1177_vm0, %v5057_v17  ;;  %3577 = vmatprep.subr.msk.mxu1 %vm1177_vm0, %v2268_v52 }
0x1eff   :  { %3550 = vmatpush3.xpose.msk.msra.mxu0 %vm1177_vm0, %v5057_v17 }
0x1f00   :  { %3551 = vmatprep.subr.msk.mxu0 %vm1177_vm0, %v5065_v60 }
0x1f01   :  { %3578 = vmatpush3.xpose.msk.msra.mxu1 %vm1177_vm0, %v2268_v52  ;;  %v5076_v38 = vpop.permute.xlu1 %2364 }
0x1f02   :  { %3579 = vmatprep.subr.msk.mxu1 %vm1177_vm0, %v2184_v36 }
0x1f03   :  { %3552 = vmatpush3.xpose.msk.msra.mxu0 %vm1177_vm0, %v5065_v60 }
0x1f04   :  { %3553 = vmatprep.subr.msk.mxu0 %vm1177_vm0, %v5076_v38 }
0x1f05   :  { %3580 = vmatpush3.xpose.msk.msra.mxu1 %vm1177_vm0, %v2184_v36  ;;  %v2361_v20 = vpop.permute.xlu1 %2360 }
0x1f06   :  { %3581 = vmatprep.subr.msk.mxu1 %vm1177_vm0, %v2100_v1 }
0x1f07   :  { %3554 = vmatpush3.xpose.msk.msra.mxu0 %vm1177_vm0, %v5076_v38 }
0x1f08   :  { %3555 = vmatprep.subr.msk.mxu0 %vm1177_vm0, %v2363_v50 }
0x1f09   :  { %3582 = vmatpush3.xpose.msk.msra.mxu1 %vm1177_vm0, %v2100_v1 }
0x1f0a   :  { %3583 = vmatprep.subr.msk.mxu1 %vm1177_vm0, %v2016_v51 }
0x1f0b   :  { %3556 = vmatpush3.xpose.msk.msra.mxu0 %vm1177_vm0, %v2363_v50 }
0x1f0c   :  { %3557 = vmatprep.subr.msk.mxu0 %vm1177_vm0, %v2361_v20 }
0x1f0d   :  { %3584 = vmatpush3.xpose.msk.msra.mxu1 %vm1177_vm0, %v2016_v51 }
0x1f0e   :  { %3585 = vmatprep.subr.msk.mxu1 %vm1177_vm0, %v1932_v62 }
0x1f0f   :  { %3558 = vmatpush3.xpose.msk.msra.mxu0 %vm1177_vm0, %v2361_v20 }
0x1f10   :  { %3559 = vmatprep.subr.msk.mxu0 %vm1177_vm0, %v2359_v27 }
0x1f11   :  { %3586 = vmatpush3.xpose.msk.msra.mxu1 %vm1177_vm0, %v1932_v62 }
0x1f12   :  { %3587 = vmatprep.subr.msk.mxu1 %vm1177_vm0, %v1848_v57 }
0x1f13   :  { %3560 = vmatpush3.xpose.msk.msra.mxu0 %vm1177_vm0, %v2359_v27 }
0x1f15   :  { %3588 = vmatpush3.xpose.msk.msra.mxu1 %vm1177_vm0, %v1848_v57 }
0x1f16   :  { %3589 = vmatprep.subr.msk.mxu1 %vm1177_vm0, %v5013_v45 }
0x1f19   :  { %3590 = vmatpush3.xpose.msk.msra.mxu1 %vm1177_vm0, %v5013_v45 }
0x1f1a   :  { %3631 = vmatprep.subr.mxu1 %v5031_v53 }
0x1f1c   :  { %3592 = vmatmul.mubr.msk.f32.vlgmr.msra.gmra.mxu1 %vm1177_vm0, %v1848_v57 }
0x1f1d   :  { %3594 = vmatprep.mubr.msk.f32.mxu1 %vm1177_vm0, %v1932_v62  ;;  %3632 = vmatpush3.msra.mxu1 %v5031_v53 }
0x1f1e   :  { %3633 = vmatprep.subr.mxu1 %v5057_v17 }
0x1f1f   :  { %3634 = vmatpush3.msra.mxu1 %v5057_v17 }
0x1f20   :  { %3595 = vmatmul.mubr.msk.f32.gmra.mxu1 %vm1177_vm0, %v2016_v51  ;;  %3635 = vmatprep.subr.mxu1 %v5065_v60 }
0x1f21   :  { %3597 = vmatprep.mubr.msk.f32.mxu1 %vm1177_vm0, %v2100_v1  ;;  %3636 = vmatpush3.msra.mxu1 %v5065_v60 }
0x1f22   :  { %3637 = vmatprep.subr.mxu1 %v5076_v38 }
0x1f23   :  { %3638 = vmatpush3.msra.mxu1 %v5076_v38 }
0x1f24   :  { %3598 = vmatmul.mubr.msk.f32.gmra.mxu1 %vm1177_vm0, %v2184_v36  ;;  %3639 = vmatprep.subr.mxu1 %v2363_v50 }
0x1f25   :  { %3600 = vmatprep.mubr.msk.f32.mxu1 %vm1177_vm0, %v2268_v52  ;;  %3640 = vmatpush3.msra.mxu1 %v2363_v50 }
0x1f26   :  { %3641 = vmatprep.subr.mxu1 %v2361_v20 }
0x1f27   :  { %3642 = vmatpush3.msra.mxu1 %v2361_v20 }
0x1f28   :  { %3601 = vmatmul.mubr.msk.f32.gmra.mxu1 %vm1177_vm0, %v2347_v15  ;;  %3643 = vmatprep.subr.mxu1 %v2359_v27  ;;  %v2637_v15 = vld [vmem:[#allocation2 + $0x38] sm:$0xff] }
0x1f29   :  { %3644 = vmatpush3.msra.mxu1 %v2359_v27 }
0x1f6d   :  { %v2357_v19 = vpop.permute.xlu1 %2356 }
0x1f6e   :  { %3561 = vmatprep.subr.msk.mxu0 %vm1177_vm0, %v2357_v19  ;;  %3563 = vmatprep.mubr.msk.f32.mxu0 %vm1177_vm0, %v2357_v19 }
0x1f6f   :  { %3645 = vmatprep.subr.mxu1 %v2357_v19  ;;  %3562 = vmatpush3.xpose.msk.msra.mxu0 %vm1177_vm0, %v2357_v19 }
0x1f70   :  { %3646 = vmatpush3.msra.mxu1 %v2357_v19  ;;  %3603 = vmatprep.subr.msk.mxu0 %vm1102_vm10, %v5048_v7 }
0x1f72   :  { %3564 = vmatmul.mubr.msk.f32.vlgmr.msra.gmra.mxu0 %vm1177_vm0, %v2359_v27 }
0x1f73   :  { %3566 = vmatprep.mubr.msk.f32.mxu0 %vm1177_vm0, %v2361_v20  ;;  %3604 = vmatpush3.msk.msra.mxu0 %vm1102_vm10, %v5048_v7  ;;  %vm5376_vm10 = vmmov %vm5371_vm4 }
0x1f74   :  { %3605 = vmatprep.subr.msk.mxu0 %vm1020_vm9, %v5005_v48 }
0x1f75   :  { %3606 = vmatpush3.msk.msra.mxu0 %vm1020_vm9, %v5005_v48  ;;  %vm5375_vm9 = vmmov %vm5370_vm2 }
0x1f76   :  { %3567 = vmatmul.mubr.msk.f32.gmra.mxu0 %vm1177_vm0, %v2363_v50  ;;  %3607 = vmatprep.subr.msk.mxu0 %vm933_vm14, %v4985_v47 }
0x1f77   :  { %3569 = vmatprep.mubr.msk.f32.mxu0 %vm1177_vm0, %v5076_v38  ;;  %3608 = vmatpush3.msk.msra.mxu0 %vm933_vm14, %v4985_v47 }
0x1f78   :  { %3609 = vmatprep.subr.msk.mxu0 %vm846_vm13, %v4957_v39 }
0x1f79   :  { %3610 = vmatpush3.msk.msra.mxu0 %vm846_vm13, %v4957_v39 }
0x1f7a   :  { %3570 = vmatmul.mubr.msk.f32.gmra.mxu0 %vm1177_vm0, %v5065_v60  ;;  %3611 = vmatprep.subr.msk.mxu0 %vm5372_vm6, %v4929_v22 }
0x1f7b   :  { %3572 = vmatprep.mubr.msk.f32.mxu0 %vm1177_vm0, %v5057_v17  ;;  %3612 = vmatpush3.msk.msra.mxu0 %vm5373_vm7, %v4929_v22 }
0x1f7c   :  { %3613 = vmatprep.subr.msk.mxu0 %vm5374_vm8, %v4899_v44 }
0x1f7d   :  { %3614 = vmatpush3.msk.msra.mxu0 %vm5375_vm9, %v4899_v44 }
0x1f7e   :  { %3573 = vmatmul.mubr.msk.f32.gmra.mxu0 %vm1177_vm0, %v5031_v53  ;;  %3615 = vmatprep.subr.msk.mxu0 %vm5376_vm10, %v4870_v46 }
0x1f7f   :  { %3616 = vmatpush3.msk.msra.mxu0 %vm5377_vm11, %v4870_v46 }
0x1f80   :  { %3617 = vmatprep.subr.msk.mxu0 %vm498_vm5, %v4813_v24 }
0x1f81   :  { %3618 = vmatpush3.msk.msra.mxu0 %vm498_vm5, %v4813_v24 }
0x1fdc   :  { %v3593_v44 = vpop.f32.mrf.mxu1 }
0x1fde   :  { %v2583_v22 = vpop.f32.mrf.mxu1 }
0x1fe0   :  { %v3596_v39 = vpop.f32.mrf.mxu1 }
0x1fe2   :  { %v2593_v47 = vpop.f32.mrf.mxu1 }
0x1fe4   :  { %v3599_v59 = vpop.f32.mrf.mxu1 }
0x1fe6   :  { %v2603_v48 = vpop.f32.mrf.mxu1 }
0x1fe8   :  { %v3602_v5 = vpop.f32.mrf.mxu1 }
0x1fea   :  { %v2613_v63 = vpop.f32.mrf.mxu1 }
0x2032   :  { %v3565_v28 = vpop.f32.mrf.mxu0 }
0x2033   :  { %v2589_v8 = vadd.f32 %v3593_v44, %v3565_v28 }
0x2034   :  { %v2454_v43 = vpop.f32.mrf.mxu0 }
0x2035   :  { %v2623_v3 = vmul.f32 0.125, %v2589_v8  ;;  %v2584_v58 = vadd.f32 %v2583_v22, %v2454_v43 }
0x2036   :  { %v3568_v46 = vpop.f32.mrf.mxu0 }
0x2037   :  { %v2622_v42 = vmul.f32 0.125, %v2584_v58  ;;  %v2599_v37 = vadd.f32 %v3596_v39, %v3568_v46  ;;  %v2639_v0 = vadd.f32 %v2631_v30, %v2623_v3 }
0x2038   :  { %v2464_v32 = vpop.f32.mrf.mxu0 }
0x2039   :  { %v2594_v18 = vadd.f32 %v2593_v47, %v2464_v32  ;;  %v2649_v24 = vsel %vm417_vm3, %v2639_v0, -inf  ;;  %v2638_v45 = vadd.f32 %v2630_v11, %v2622_v42  ;;  %v2625_v10 = vmul.f32 0.125, %v2599_v37 }
0x203a   :  { %2650 = vmax.xlane.f32.xlu1 %v2649_v24  ;;  %v3571_v16 = vpop.f32.mrf.mxu0 }
0x203b   :  { %v2624_v2 = vmul.f32 0.125, %v2594_v18  ;;  %v2609_v49 = vadd.f32 %v3599_v59, %v3571_v16  ;;  %v2646_v25 = vsel %vm417_vm3, %v2638_v45, -inf  ;;  %v2641_v61 = vadd.f32 %v2633_v35, %v2625_v10 }
0x203c   :  { %2647 = vmax.xlane.f32.xlu0 %v2646_v25  ;;  %v2474_v6 = vpop.f32.mrf.mxu0 }
0x203d   :  { %v2604_v4 = vadd.f32 %v2603_v48, %v2474_v6  ;;  %v2640_v56 = vadd.f32 %v2632_v14, %v2624_v2  ;;  %v2627_v34 = vmul.f32 0.125, %v2609_v49  ;;  %v2655_v26 = vsel %vm417_vm3, %v2641_v61, -inf }
0x203e   :  { %v3574_v12 = vpop.f32.mrf.mxu0 }
0x203f   :  { %v2626_v31 = vmul.f32 0.125, %v2604_v4  ;;  %v2619_v13 = vadd.f32 %v3602_v5, %v3574_v12  ;;  %v2652_v33 = vsel %vm417_vm3, %v2640_v56, -inf  ;;  %v2643_v7 = vadd.f32 %v2635_v9, %v2627_v34  ;;  %v2983_v12 = vld [vmem:[%s5321_s10 + $0x38] sm:$0xff] }
0x2040   :  { %2653 = vmax.xlane.f32.xlu0 %v2652_v33  ;;  %v2484_v29 = vpop.f32.mrf.mxu0  ;;  %3659 = vmatprep.subr.mxu0 %v2983_v12 }
0x2041   :  { %v2614_v21 = vadd.f32 %v2613_v63, %v2484_v29  ;;  %v2642_v53 = vadd.f32 %v2634_v23, %v2626_v31  ;;  %v2629_v40 = vmul.f32 0.125, %v2619_v13  ;;  %v2661_v52 = vsel %vm417_vm3, %v2643_v7, -inf }
0x2043   :  { %v2628_v55 = vmul.f32 0.125, %v2614_v21  ;;  %v2658_v41 = vsel %vm417_vm3, %v2642_v53, -inf  ;;  %v2645_v36 = vadd.f32 %v2637_v15, %v2629_v40  ;;  %v2982_v40 = vld [vmem:[%s5321_s10 + $0x30] sm:$0xff]  ;;  %v2981_v15 = vld [vmem:[%s5321_s10 + $0x28] sm:$0xff] }
0x2044   :  { %2656 = vmax.xlane.f32.xlu0 %v2655_v26  ;;  %2659 = vmax.xlane.f32.xlu1 %v2658_v41 }
0x2045   :  { %v2644_v17 = vadd.f32 %v2636_v54, %v2628_v55  ;;  %v2667_v38 = vsel %vm417_vm3, %v2645_v36, -inf  ;;  %v2978_v55 = vld [vmem:[%s5321_s10 + $0x10] sm:$0xff] }
0x2047   :  { %v2664_v60 = vsel %vm417_vm3, %v2644_v17, -inf }
0x2048   :  { %2662 = vmax.xlane.f32.xlu0 %v2661_v52  ;;  %2665 = vmax.xlane.f32.xlu1 %v2664_v60 }
0x204c   :  { %2668 = vmax.xlane.f32.xlu0 %v2667_v38 }
0x20c3   :  { %v2651_v1 = vpop.xlane.xlu1 %2650 }
0x20c4   :  { %v2671_v50 = vsub.f32 %v2639_v0, %v2651_v1 }
0x20c5   :  { %v2648_v51 = vpop.xlane.xlu0 %2647 }
0x20c6   :  { %v2680_v20 = vmul.f32 1.442695, %v2671_v50  ;;  %v2670_v62 = vsub.f32 %v2638_v45, %v2648_v51 }
0x20c8   :  { %3969 = vpow2.f32 %v2680_v20  ;;  %v2678_v27 = vmul.f32 1.442695, %v2670_v62 }
0x20c9   :  { %v2654_v57 = vpop.xlane.xlu0 %2653 }
0x20ca   :  { %3971 = vpow2.f32 %v2678_v27  ;;  %v2672_v19 = vsub.f32 %v2640_v56, %v2654_v57  ;;  %v2980_v57 = vld [vmem:[%s5321_s10 + $0x20] sm:$0xff] }
0x20cc   :  { %v2682_v44 = vmul.f32 1.442695, %v2672_v19  ;;  %v2976_v19 = vld [vmem:[%s5321_s10] sm:$0xff] }
0x20cd   :  { %v2657_v22 = vpop.xlane.xlu0 %2656  ;;  %v2660_v39 = vpop.xlane.xlu1 %2659 }
0x20ce   :  { %3973 = vpow2.f32 %v2682_v44  ;;  %v2673_v47 = vsub.f32 %v2641_v61, %v2657_v22  ;;  %v2674_v28 = vsub.f32 %v2642_v53, %v2660_v39  ;;  %v2979_v61 = vld [vmem:[%s5321_s10 + $0x18] sm:$0xff] }
0x20cf   :  { %3679 = vmatprep.subr.mxu1 %v2979_v61 }
0x20d0   :  { %v2684_v8 = vmul.f32 1.442695, %v2673_v47  ;;  %v2686_v59 = vmul.f32 1.442695, %v2674_v28 }
0x20d1   :  { %v2663_v43 = vpop.xlane.xlu0 %2662  ;;  %v2666_v30 = vpop.xlane.xlu1 %2665 }
0x20d2   :  { %3975 = vpow2.f32 %v2684_v8  ;;  %v2675_v3 = vsub.f32 %v2643_v7, %v2663_v43  ;;  %v2676_v58 = vsub.f32 %v2644_v17, %v2666_v30  ;;  %v2977_v17 = vld [vmem:[%s5321_s10 + $0x8] sm:$0xff] }
0x20d3   :  { %3977 = vpow2.f32 %v2686_v59 }
0x20d4   :  { %v2688_v46 = vmul.f32 1.442695, %v2675_v3  ;;  %v2690_v11 = vmul.f32 1.442695, %v2676_v58 }
0x20d5   :  { %v3970_v42 = vpop.eup %3969  ;;  %v2669_v37 = vpop.xlane.xlu0 %2668 }
0x20d6   :  { %3979 = vpow2.f32 %v2688_v46  ;;  %v2677_v0 = vsub.f32 %v2645_v36, %v2669_v37  ;;  %v2697_v48 = vsel %vm417_vm3, %v3970_v42, 0.0 }
0x20d7   :  { %v3972_v32 = vpop.eup %3971  ;;  %3981 = vpow2.f32 %v2690_v11  ;;  %2698 = vadd.xlane.f32.xlu0 %v2697_v48 }
0x20d8   :  { %v2692_v18 = vmul.f32 1.442695, %v2677_v0  ;;  %v2694_v24 = vsel %vm417_vm3, %v3972_v32, 0.0 }
0x20d9   :  { %2695 = vadd.xlane.f32.xlu1 %v2694_v24 }
0x20da   :  { %3983 = vpow2.f32 %v2692_v18 }
0x20db   :  { %v3974_v45 = vpop.eup %3973 }
0x20dc   :  { %v2700_v10 = vsel %vm417_vm3, %v3974_v45, 0.0 }
0x20dd   :  { %2701 = vadd.xlane.f32.xlu1 %v2700_v10 }
0x20df   :  { %v3976_v16 = vpop.eup %3975 }
0x20e0   :  { %v3978_v14 = vpop.eup %3977  ;;  %v2703_v2 = vsel %vm417_vm3, %v3976_v16, 0.0 }
0x20e1   :  { %2704 = vadd.xlane.f32.xlu0 %v2703_v2  ;;  %v2706_v49 = vsel %vm417_vm3, %v3978_v14, 0.0 }
0x20e2   :  { %2707 = vadd.xlane.f32.xlu1 %v2706_v49 }
0x20e3   :  { %v5205_v25 = vpop.eup %3979 }
0x20e4   :  { %v5207_v35 = vpop.eup %3981  ;;  %v2709_v5 = vsel %vm417_vm3, %v5205_v25, 0.0 }
0x20e5   :  { %2710 = vadd.xlane.f32.xlu0 %v2709_v5  ;;  %v2712_v6 = vsel %vm417_vm3, %v5207_v35, 0.0 }
0x20e6   :  { %2713 = vadd.xlane.f32.xlu1 %v2712_v6 }
0x20e7   :  { %v5213_v4 = vpop.eup %3983 }
0x20e8   :  { %v2715_v56 = vsel %vm417_vm3, %v5213_v4, 0.0 }
0x20e9   :  { %2716 = vadd.xlane.f32.xlu0 %v2715_v56 }
0x2160   :  { %v2699_v23 = vpop.xlane.xlu0 %2698 }
0x2161   :  { %3985 = vrcp.f32 %v2699_v23 }
0x2162   :  { %v2696_v34 = vpop.xlane.xlu1 %2695 }
0x2163   :  { %3987 = vrcp.f32 %v2696_v34 }
0x2166   :  { %v2702_v31 = vpop.xlane.xlu1 %2701 }
0x2167   :  { %3989 = vrcp.f32 %v2702_v31 }
0x216a   :  { %v2705_v13 = vpop.xlane.xlu0 %2704 }
0x216b   :  { %3991 = vrcp.f32 %v2705_v13  ;;  %v2708_v33 = vpop.xlane.xlu1 %2707 }
0x216c   :  { %3993 = vrcp.f32 %v2708_v33 }
0x216e   :  { %v2711_v63 = vpop.xlane.xlu0 %2710  ;;  %v3986_v29 = vpop.eup %3985 }
0x216f   :  { %3995 = vrcp.f32 %v2711_v63  ;;  %v2714_v9 = vpop.xlane.xlu1 %2713  ;;  %v2721_v26 = vmul.f32 %v3986_v29, %v3970_v42 }
0x2170   :  { %v3988_v21 = vpop.eup %3987  ;;  %3997 = vrcp.f32 %v2714_v9 }
0x2171   :  { %v2719_v53 = vmul.f32 %v3988_v21, %v3972_v32  ;;  %v3458_v32 = vld [vmem:[%s5322_s11] ss:$0 sm:$0xff] }
0x2172   :  { %v2717_v54 = vpop.xlane.xlu0 %2716 }
0x2173   :  { %3999 = vrcp.f32 %v2717_v54  ;;  %3619 = vmatprep.mubr.msk.f32.mxu0 %vm417_vm3, %v2719_v53  ;;  %3647 = vmatprep.mubr.msk.f32.mxu1 %vm417_vm3, %v2719_v53 }
0x2174   :  { %v3990_v41 = vpop.eup %3989  ;;  %3620 = vmatmul.mubr.msk.f32.vlgmr.msra.gmra.mxu0 %vm417_vm3, %v2721_v26  ;;  %3648 = vmatmul.mubr.msk.f32.vlgmr.msra.gmra.mxu1 %vm417_vm3, %v2721_v26 }
0x2175   :  { %v2723_v7 = vmul.f32 %v3990_v41, %v3974_v45  ;;  %3660 = vmatpush3.msra.mxu0 %v2983_v12  ;;  %3680 = vmatpush3.msra.mxu1 %v2979_v61 }
0x2176   :  { %3661 = vmatprep.subr.mxu0 %v2982_v40  ;;  %3681 = vmatprep.subr.mxu1 %v2978_v55 }
0x2177   :  { %3622 = vmatprep.mubr.msk.f32.mxu0 %vm417_vm3, %v2723_v7  ;;  %3650 = vmatprep.mubr.msk.f32.mxu1 %vm417_vm3, %v2723_v7 }
0x2178   :  { %v3992_v52 = vpop.eup %3991  ;;  %3662 = vmatpush3.msra.mxu0 %v2982_v40  ;;  %3682 = vmatpush3.msra.mxu1 %v2978_v55 }
0x2179   :  { %v3994_v60 = vpop.eup %3993  ;;  %v2725_v36 = vmul.f32 %v3992_v52, %v3976_v16  ;;  %3663 = vmatprep.subr.mxu0 %v2981_v15  ;;  %3683 = vmatprep.subr.mxu1 %v2977_v17 }
0x217a   :  { %v2727_v38 = vmul.f32 %v3994_v60, %v3978_v14  ;;  %3664 = vmatpush3.msra.mxu0 %v2981_v15  ;;  %3684 = vmatpush3.msra.mxu1 %v2977_v17 }
0x217b   :  { %3623 = vmatmul.mubr.msk.f32.gmra.mxu0 %vm417_vm3, %v2725_v36  ;;  %3651 = vmatmul.mubr.msk.f32.gmra.mxu1 %vm417_vm3, %v2725_v36 }
0x217c   :  { %v3996_v1 = vpop.eup %3995  ;;  %3625 = vmatprep.mubr.msk.f32.mxu0 %vm417_vm3, %v2727_v38  ;;  %3653 = vmatprep.mubr.msk.f32.mxu1 %vm417_vm3, %v2727_v38 }
0x217d   :  { %v3998_v50 = vpop.eup %3997  ;;  %v2729_v51 = vmul.f32 %v3996_v1, %v5205_v25  ;;  %3665 = vmatprep.subr.mxu0 %v2980_v57  ;;  %3685 = vmatprep.subr.mxu1 %v2976_v19 }
0x217e   :  { %v2731_v20 = vmul.f32 %v3998_v50, %v5207_v35  ;;  %3666 = vmatpush3.msra.mxu0 %v2980_v57  ;;  %3686 = vmatpush3.msra.mxu1 %v2976_v19 }
0x217f   :  { %3626 = vmatmul.mubr.msk.f32.gmra.mxu0 %vm417_vm3, %v2729_v51  ;;  %3654 = vmatmul.mubr.msk.f32.gmra.mxu1 %vm417_vm3, %v2729_v51 }
0x2180   :  { %v4000_v62 = vpop.eup %3999  ;;  %3628 = vmatprep.mubr.msk.f32.mxu0 %vm417_vm3, %v2731_v20  ;;  %3656 = vmatprep.mubr.msk.f32.mxu1 %vm417_vm3, %v2731_v20 }
0x2181   :  { %v2733_v27 = vmul.f32 %v4000_v62, %v5213_v4 }
0x2183   :  { %3629 = vmatmul.mubr.msk.f32.gmra.mxu0 %vm417_vm3, %v2733_v27  ;;  %3657 = vmatmul.mubr.msk.f32.gmra.mxu1 %vm417_vm3, %v2733_v27  ;;  %vm3257_vm3 = vcmask 64512  }
0x2234   :  { %v3621_v44 = vpop.f32.mrf.mxu0  ;;  %v3649_v22 = vpop.f32.mrf.mxu1 }
0x2236   :  { %v2824_v39 = vpop.f32.mrf.mxu0  ;;  %v2937_v47 = vpop.f32.mrf.mxu1 }
0x2237   :  { %3667 = vmatprep.mubr.msk.f32.mxu0 %vm1177_vm0, %v2937_v47  ;;  %3687 = vmatprep.mubr.msk.f32.mxu1 %vm1177_vm0, %v2824_v39 }
0x2238   :  { %3668 = vmatmul.mubr.msk.f32.vlgmr.msra.gmra.mxu0 %vm1177_vm0, %v3649_v22  ;;  %3688 = vmatmul.mubr.msk.f32.vlgmr.msra.gmra.mxu1 %vm1177_vm0, %v3621_v44 }
0x223b   :  { %v3624_v28 = vpop.f32.mrf.mxu0  ;;  %v3652_v8 = vpop.f32.mrf.mxu1 }
0x223d   :  { %v2834_v59 = vpop.f32.mrf.mxu0  ;;  %v2947_v43 = vpop.f32.mrf.mxu1 }
0x223e   :  { %3670 = vmatprep.mubr.msk.f32.mxu0 %vm1177_vm0, %v2947_v43  ;;  %3690 = vmatprep.mubr.msk.f32.mxu1 %vm1177_vm0, %v2834_v59 }
0x223f   :  { %v3627_v30 = vpop.f32.mrf.mxu0  ;;  %v3655_v3 = vpop.f32.mrf.mxu1  ;;  %3671 = vmatmul.mubr.msk.f32.gmra.mxu0 %vm1177_vm0, %v3652_v8  ;;  %3691 = vmatmul.mubr.msk.f32.gmra.mxu1 %vm1177_vm0, %v3624_v28 }
0x2241   :  { %v2844_v58 = vpop.f32.mrf.mxu0  ;;  %v2957_v46 = vpop.f32.mrf.mxu1 }
0x2242   :  { %3673 = vmatprep.mubr.msk.f32.mxu0 %vm1177_vm0, %v2957_v46  ;;  %3693 = vmatprep.mubr.msk.f32.mxu1 %vm1177_vm0, %v2844_v58 }
0x2243   :  { %v3630_v11 = vpop.f32.mrf.mxu0  ;;  %v3658_v42 = vpop.f32.mrf.mxu1  ;;  %3674 = vmatmul.mubr.msk.f32.gmra.mxu0 %vm1177_vm0, %v3655_v3  ;;  %3694 = vmatmul.mubr.msk.f32.gmra.mxu1 %vm1177_vm0, %v3627_v30 }
0x2245   :  { %v2854_v37 = vpop.f32.mrf.mxu0  ;;  %v2967_v0 = vpop.f32.mrf.mxu1 }
0x2246   :  { %3676 = vmatprep.mubr.msk.f32.mxu0 %vm1177_vm0, %v2967_v0  ;;  %3696 = vmatprep.mubr.msk.f32.mxu1 %vm1177_vm0, %v2854_v37 }
0x2247   :  { %3677 = vmatmul.mubr.msk.f32.gmra.mxu0 %vm1177_vm0, %v3658_v42  ;;  %3697 = vmatmul.mubr.msk.f32.gmra.mxu1 %vm1177_vm0, %v3630_v11 }
0x22f8   :  { %v3669_v48 = vpop.f32.mrf.mxu0  ;;  %v3689_v18 = vpop.f32.mrf.mxu1 }
0x22f9   :  { %v3210_v24 = vadd.f32 %v3689_v18, %v3669_v48 }
0x22fa   :  { %v3075_v45 = vpop.f32.mrf.mxu0  ;;  %v3204_v10 = vpop.f32.mrf.mxu1 }
0x22fb   :  { %v3250_v16 = vadd.f32 %v3458_v32, %v3210_v24  ;;  %v3205_v14 = vadd.f32 %v3204_v10, %v3075_v45 }
0x22fd   :  { %3259 = vst.msk [vmem:[%s5323_s12 + $0x8] sm:$0xff] %vm3257_vm3, %v3250_v16  ;;  %v3249_v2 = vadd.f32 %v3458_v32, %v3205_v14 }
0x22ff   :  { %3258 = vst.msk [vmem:[%s5323_s12] sm:$0xff] %vm3257_vm3, %v3249_v2  ;;  %v3672_v49 = vpop.f32.mrf.mxu0  ;;  %v3692_v25 = vpop.f32.mrf.mxu1 }
0x2300   :  { %v3220_v35 = vadd.f32 %v3692_v25, %v3672_v49 }
0x2301   :  { %v3085_v5 = vpop.f32.mrf.mxu0  ;;  %v3214_v6 = vpop.f32.mrf.mxu1 }
0x2302   :  { %v3252_v4 = vadd.f32 %v3458_v32, %v3220_v35  ;;  %v3215_v56 = vadd.f32 %v3214_v6, %v3085_v5 }
0x2303   :  { %v3675_v12 = vpop.f32.mrf.mxu0  ;;  %v3695_v61 = vpop.f32.mrf.mxu1 }
0x2304   :  { %3261 = vst.msk [vmem:[%s5323_s12 + $0x18] sm:$0xff] %vm3257_vm3, %v3252_v4  ;;  %v3251_v23 = vadd.f32 %v3458_v32, %v3215_v56  ;;  %v3230_v34 = vadd.f32 %v3695_v61, %v3675_v12 }
0x2305   :  { %v3095_v31 = vpop.f32.mrf.mxu0  ;;  %v3224_v13 = vpop.f32.mrf.mxu1 }
0x2306   :  { %3260 = vst.msk [vmem:[%s5323_s12 + $0x10] sm:$0xff] %vm3257_vm3, %v3251_v23  ;;  %v3254_v33 = vadd.f32 %v3458_v32, %v3230_v34  ;;  %v3225_v63 = vadd.f32 %v3224_v13, %v3095_v31 }
0x2307   :  { %v3678_v29 = vpop.f32.mrf.mxu0  ;;  %v3698_v9 = vpop.f32.mrf.mxu1 }
0x2308   :  { %3263 = vst.msk [vmem:[%s5323_s12 + $0x28] sm:$0xff] %vm3257_vm3, %v3254_v33  ;;  %v3253_v21 = vadd.f32 %v3458_v32, %v3225_v63  ;;  %v3240_v53 = vadd.f32 %v3698_v9, %v3678_v29 }
0x2309   :  { %v3105_v26 = vpop.f32.mrf.mxu0  ;;  %v3234_v54 = vpop.f32.mrf.mxu1 }
0x230a   :  { %3262 = vst.msk [vmem:[%s5323_s12 + $0x20] sm:$0xff] %vm3257_vm3, %v3253_v21  ;;  %v3256_v40 = vadd.f32 %v3458_v32, %v3240_v53  ;;  %v3235_v55 = vadd.f32 %v3234_v54, %v3105_v26 }
0x230c   :  { %3265 = vst.msk [vmem:[%s5323_s12 + $0x38] sm:$0xff] %vm3257_vm3, %v3256_v40  ;;  %v3255_v41 = vadd.f32 %v3458_v32, %v3235_v55 }
0x230e   :  { %3264 = vst.msk [vmem:[%s5323_s12 + $0x30] sm:$0xff] %vm3257_vm3, %v3255_v41 }
0x230f   :  { %3270 = vsyncpa [#allocation3], 1 }
0x2310   :  { %3271 = vsyncpa [#allocation5], 1 }

</bundles_post_ra>
